<compile_context>
chip_gen: v5e
topology: v5e:2x2
jax: 0.10.0
libtpu: 0.0.40
codegen_flags: <defaults>
</compile_context>

<pallas_src>
import functools
import jax
import jax.numpy as jnp
from jax.experimental import pallas as pl
from jax.experimental.pallas import tpu as pltpu

EPS = 1e-5


def _pick_row_tile(H, cap=32):
    """Largest divisor of H that is a multiple of 8 and <= cap; else full H."""
    for t in range(min(cap, H), 7, -1):
        if H % t == 0 and t % 8 == 0:
            return t
    return H


# ---------------------------------------------------------------------------
# Kernel A: dilated 3x3 conv on pre-ReLU'd input (MXU matmuls)
#           emits per-tile per-channel sum / sum-of-squares for BatchNorm1.
# ---------------------------------------------------------------------------
def _conv3x3_kernel(x_ref, w_ref, y_ref, s_ref, ss_ref,
                    *, TH, W, Cin, Cmid, dil, use_concat):
    h = pl.program_id(1)
    row0 = pl.multiple_of(h * TH, TH)
    # One superslab load per grid step (ReLU already applied in the wrapper).
    slab = x_ref[pl.ds(row0, TH + 2 * dil), :, :]           # (TH+2*dil, Wp, Cin) bf16

    acc = jnp.zeros((TH * W, Cmid), jnp.float32)
    if use_concat:
        # Small Cin: concat the 3 kx taps along channels -> K = 3*Cin fills the MXU.
        for ky in range(3):
            rows = slab[ky * dil:ky * dil + TH]
            taps = jnp.concatenate(
                [rows[:, kx * dil:kx * dil + W, :] for kx in range(3)], axis=-1)
            acc = acc + jnp.dot(taps.reshape(TH * W, 3 * Cin), w_ref[ky],
                                preferred_element_type=jnp.float32)
    else:
        # Large Cin (>= MXU depth): 9 accumulating matmuls, no tap-concat copies.
        for ky in range(3):
            w_k = w_ref[ky]                                  # (3*Cin, Cmid)
            rows = slab[ky * dil:ky * dil + TH]
            for kx in range(3):
                tap = rows[:, kx * dil:kx * dil + W, :]
                acc = acc + jnp.dot(tap.reshape(TH * W, Cin),
                                    w_k[kx * Cin:(kx + 1) * Cin, :],
                                    preferred_element_type=jnp.float32)

    y_ref[...] = acc.reshape(TH, W, Cmid).astype(y_ref.dtype)   # bf16 intermediate
    # Per-grid-step partial stats (f32) -> reduced outside the kernel.
    s_ref[...] = jnp.sum(acc, axis=0, keepdims=True)
    ss_ref[...] = jnp.sum(acc * acc, axis=0, keepdims=True)


# ---------------------------------------------------------------------------
# Kernel B: fused BN1 affine + ReLU + 1x1 conv (single MXU matmul)
#           emits per-tile per-channel sum / sum-of-squares for BatchNorm2.
# ---------------------------------------------------------------------------
def _bn_relu_conv1x1_kernel(y1_ref, sc_ref, sh_ref, w_ref, y_ref, s_ref, ss_ref,
                            *, TH, W, Cmid, Cout):
    z = y1_ref[...].astype(jnp.float32) * sc_ref[...] + sh_ref[...]   # f32 BN math
    z = jnp.maximum(z, 0.0).astype(jnp.bfloat16)
    acc = jnp.dot(z.reshape(TH * W, Cmid), w_ref[...],
                  preferred_element_type=jnp.float32)                 # (TH*W, Cout)
    y_ref[...] = acc.reshape(TH, W, Cout).astype(y_ref.dtype)         # bf16 out
    s_ref[...] = jnp.sum(acc, axis=0, keepdims=True)
    ss_ref[...] = jnp.sum(acc * acc, axis=0, keepdims=True)


def model_forward(x_nchw, w1, g1, b1, w2, g2, b2):
    """Forward pass matching the PyTorch module (training-mode BatchNorm)."""
    N, Cin, H, W = x_nchw.shape
    Cmid = w1.shape[-1]
    Cout = w2.shape[-1]
    dil, pad = 2, 2
    Hp, Wp = H + 2 * pad, W + 2 * pad
    TH = _pick_row_tile(H)               # row tile (>= 32 rows of MXU M when possible)
    n_h = H // TH
    cnt = float(N * H * W)
    use_concat = Cin < 256               # only concat kx taps when Cin underfills the MXU

    # NHWC; ReLU + bf16 cast + pad fused by XLA into one pass (ReLU(0)=0 so the
    # zero padding commutes with the ReLU).
    x = jnp.maximum(jnp.transpose(x_nchw, (0, 2, 3, 1)), 0.0).astype(jnp.bfloat16)
    xp = jnp.pad(x, ((0, 0), (pad, pad), (pad, pad), (0, 0)))
    w1r = w1.reshape(3, 3 * Cin, Cmid).astype(jnp.bfloat16)   # (ky, kx*Cin+cin, cmid)
    w2b = w2.astype(jnp.bfloat16)

    cparams = pltpu.CompilerParams(
        dimension_semantics=("parallel", "parallel"),
        vmem_limit_bytes=64 * 1024 * 1024)

    ce_a = pl.CostEstimate(
        flops=2 * N * H * W * 9 * Cin * Cmid,
        transcendentals=0,
        bytes_accessed=(N * Hp * Wp * Cin * 2 + 9 * Cin * Cmid * 2
                        + N * H * W * Cmid * 2 + 2 * N * n_h * Cmid * 4))
    ce_b = pl.CostEstimate(
        flops=2 * N * H * W * Cmid * Cout,
        transcendentals=0,
        bytes_accessed=(N * H * W * Cmid * 2 + Cmid * Cout * 2
                        + N * H * W * Cout * 2 + 2 * N * n_h * Cout * 4))

    # ---- Kernel A: dilated 3x3 conv + BN1 partial stats --------------------
    y1, s1p, ss1p = pl.pallas_call(
        functools.partial(_conv3x3_kernel, TH=TH, W=W, Cin=Cin, Cmid=Cmid,
                          dil=dil, use_concat=use_concat),
        out_shape=(jax.ShapeDtypeStruct((N, H, W, Cmid), jnp.bfloat16),
                   jax.ShapeDtypeStruct((N, n_h, 1, Cmid), jnp.float32),
                   jax.ShapeDtypeStruct((N, n_h, 1, Cmid), jnp.float32)),
        grid=(N, n_h),
        in_specs=[pl.BlockSpec((None, Hp, Wp, Cin), lambda n, h: (n, 0, 0, 0)),
                  pl.BlockSpec((3, 3 * Cin, Cmid), lambda n, h: (0, 0, 0))],
        out_specs=(pl.BlockSpec((None, TH, W, Cmid), lambda n, h: (n, h, 0, 0)),
                   pl.BlockSpec((None, None, 1, Cmid), lambda n, h: (n, h, 0, 0)),
                   pl.BlockSpec((None, None, 1, Cmid), lambda n, h: (n, h, 0, 0))),
        compiler_params=cparams,
        cost_estimate=ce_a,
    )(xp, w1r)

    # BN1 batch statistics (biased variance, PyTorch training mode), all f32.
    s1 = jnp.sum(s1p, axis=(0, 1, 2))
    ss1 = jnp.sum(ss1p, axis=(0, 1, 2))
    mu1 = s1 / cnt
    var1 = ss1 / cnt - mu1 * mu1
    inv1 = 1.0 / jnp.sqrt(var1 + EPS)
    scale1 = (g1 * inv1).reshape(1, Cmid).astype(jnp.float32)
    shift1 = (b1 - mu1 * g1 * inv1).reshape(1, Cmid).astype(jnp.float32)

    # ---- Kernel B: BN1 affine + relu + 1x1 conv + BN2 partial stats --------
    y4, s2p, ss2p = pl.pallas_call(
        functools.partial(_bn_relu_conv1x1_kernel, TH=TH, W=W, Cmid=Cmid, Cout=Cout),
        out_shape=(jax.ShapeDtypeStruct((N, H, W, Cout), jnp.bfloat16),
                   jax.ShapeDtypeStruct((N, n_h, 1, Cout), jnp.float32),
                   jax.ShapeDtypeStruct((N, n_h, 1, Cout), jnp.float32)),
        grid=(N, n_h),
        in_specs=[pl.BlockSpec((None, TH, W, Cmid), lambda n, h: (n, h, 0, 0)),
                  pl.BlockSpec((1, Cmid), lambda n, h: (0, 0)),
                  pl.BlockSpec((1, Cmid), lambda n, h: (0, 0)),
                  pl.BlockSpec((Cmid, Cout), lambda n, h: (0, 0))],
        out_specs=(pl.BlockSpec((None, TH, W, Cout), lambda n, h: (n, h, 0, 0)),
                   pl.BlockSpec((None, None, 1, Cout), lambda n, h: (n, h, 0, 0)),
                   pl.BlockSpec((None, None, 1, Cout), lambda n, h: (n, h, 0, 0))),
        compiler_params=cparams,
        cost_estimate=ce_b,
    )(y1, scale1, shift1, w2b)

    s2 = jnp.sum(s2p, axis=(0, 1, 2))
    ss2 = jnp.sum(ss2p, axis=(0, 1, 2))
    mu2 = s2 / cnt
    var2 = ss2 / cnt - mu2 * mu2
    inv2 = 1.0 / jnp.sqrt(var2 + EPS)
    scale2 = g2 * inv2
    shift2 = b2 - mu2 * scale2

    # BN2 affine + f32 cast fused (by XLA) with the NCHW transpose epilogue.
    y5 = y4.astype(jnp.float32) * scale2[None, None, None, :] + shift2[None, None, None, :]
    return jnp.transpose(y5, (0, 3, 1, 2))                    # back to NCHW


def ref_forward(x, w1, g1, b1, w2, g2, b2):
    """Pure-JAX f32 reference (mirrors the PyTorch module in training mode)."""
    x = jnp.maximum(x, 0.0)
    y1 = jax.lax.conv_general_dilated(
        x, jnp.transpose(w1, (3, 2, 0, 1)), window_strides=(1, 1),
        padding=((2, 2), (2, 2)), rhs_dilation=(2, 2),
        dimension_numbers=("NCHW", "OIHW", "NCHW"))
    mu = y1.mean(axis=(0, 2, 3), keepdims=True)
    var = y1.var(axis=(0, 2, 3), keepdims=True)
    y2 = (y1 - mu) / jnp.sqrt(var + EPS) * g1[None, :, None, None] + b1[None, :, None, None]
    y3 = jnp.maximum(y2, 0.0)
    y4 = jax.lax.conv_general_dilated(
        y3, jnp.transpose(w2)[:, :, None, None], window_strides=(1, 1),
        padding="VALID", dimension_numbers=("NCHW", "OIHW", "NCHW"))
    mu2 = y4.mean(axis=(0, 2, 3), keepdims=True)
    var2 = y4.var(axis=(0, 2, 3), keepdims=True)
    return (y4 - mu2) / jnp.sqrt(var2 + EPS) * g2[None, :, None, None] + b2[None, :, None, None]


if __name__ == "__main__":
    # Scaled-down shapes consistent with the module (512->512 3x3 dil=2, 512->2048 1x1):
    # Cin = Cmid = 128, Cout = 4 * Cmid = 512 (lane-dense channels), spatial 16x16, batch 2.
    N, Cin, Cmid, Cout, H, W = 2, 128, 128, 512, 16, 16

    key = jax.random.PRNGKey(0)
    k1, k2, k3, k4, k5, k6, kx = jax.random.split(key, 7)
    w1 = jax.random.normal(k1, (3, 3, Cin, Cmid), jnp.float32) * (1.0 / (3 * 3 * Cin) ** 0.5)
    g1 = 1.0 + 0.1 * jax.random.normal(k2, (Cmid,), jnp.float32)
    b1 = 0.1 * jax.random.normal(k3, (Cmid,), jnp.float32)
    w2 = jax.random.normal(k4, (Cmid, Cout), jnp.float32) * (1.0 / Cmid ** 0.5)
    g2 = 1.0 + 0.1 * jax.random.normal(k5, (Cout,), jnp.float32)
    b2 = 0.1 * jax.random.normal(k6, (Cout,), jnp.float32)
    x = jax.random.normal(kx, (N, Cin, H, W), jnp.float32)

    out = jax.jit(model_forward)(x, w1, g1, b1, w2, g2, b2)
    out = jax.block_until_ready(out)

    ref = ref_forward(x, w1, g1, b1, w2, g2, b2)
    assert out.shape == (N, Cout, H, W), out.shape
    err = float(jnp.max(jnp.abs(out - ref)))
    assert jnp.allclose(out, ref, atol=5e-2, rtol=5e-2), err

    print("KERNEL_OK")
</pallas_src>

<mosaic_0001>
module attributes {stable_mosaic.version = 11 : i64} {
  func.func @_conv3x3_kernel(%arg0: i32, %arg1: i32, %arg2: memref<1x20x20x128xbf16, #tpu.memory_space<vmem>>, %arg3: memref<3x384x128xbf16, #tpu.memory_space<vmem>>, %arg4: memref<1x16x16x128xbf16, #tpu.memory_space<vmem>>, %arg5: memref<1x1x1x128xf32, #tpu.memory_space<vmem>>, %arg6: memref<1x1x1x128xf32, #tpu.memory_space<vmem>>) attributes {dimension_semantics = [#tpu.dimension_semantics<parallel>, #tpu.dimension_semantics<parallel>], iteration_bounds = array<i64: 2, 1>, scalar_prefetch = 0 : i64, scratch_operands = 0 : i64, tpu.core_type = #tpu.core_type<tc>, window_params = [{transform_indices = @transform_0, window_bounds = array<i64: 1, 20, 20, 128>}, {pipeline_mode = #tpu.pipeline_mode<synchronous>, transform_indices = @transform_1, window_bounds = array<i64: 3, 384, 128>}, {transform_indices = @transform_2, window_bounds = array<i64: 1, 16, 16, 128>}, {transform_indices = @transform_3, window_bounds = array<i64: 1, 1, 1, 128>}, {transform_indices = @transform_4, window_bounds = array<i64: 1, 1, 1, 128>}]} {
    %c16_i32 = arith.constant 16 : i32
    %0 = arith.muli %arg1, %c16_i32 : i32
    %1 = tpu.assume_multiple %0, 16 : i32
    %c0 = arith.constant 0 : index
    %2 = arith.index_cast %1 : i32 to index
    %c0_0 = arith.constant 0 : index
    %c0_1 = arith.constant 0 : index
    %3 = vector.load %arg2[%c0, %2, %c0_0, %c0_1] : memref<1x20x20x128xbf16, #tpu.memory_space<vmem>>, vector<1x20x20x128xbf16>
    %4 = vector.shape_cast %3 : vector<1x20x20x128xbf16> to vector<20x20x128xbf16>
    %cst = arith.constant 0.000000e+00 : f32
    %5 = vector.broadcast %cst : f32 to vector<256x128xf32>
    %6 = vector.extract_strided_slice %4 {offsets = [0, 0, 0], sizes = [16, 20, 128], strides = [1, 1, 1]} : vector<20x20x128xbf16> to vector<16x20x128xbf16>
    %7 = vector.extract_strided_slice %6 {offsets = [0, 0, 0], sizes = [16, 16, 128], strides = [1, 1, 1]} : vector<16x20x128xbf16> to vector<16x16x128xbf16>
    %8 = vector.extract_strided_slice %6 {offsets = [0, 2, 0], sizes = [16, 16, 128], strides = [1, 1, 1]} : vector<16x20x128xbf16> to vector<16x16x128xbf16>
    %9 = vector.extract_strided_slice %6 {offsets = [0, 4, 0], sizes = [16, 16, 128], strides = [1, 1, 1]} : vector<16x20x128xbf16> to vector<16x16x128xbf16>
    %10 = tpu.concatenate %7, %8, %9 in 2 : vector<16x16x128xbf16>, vector<16x16x128xbf16>, vector<16x16x128xbf16> -> vector<16x16x384xbf16>
    %11 = vector.shape_cast %10 : vector<16x16x384xbf16> to vector<256x384xbf16>
    %c0_2 = arith.constant 0 : index
    %c0_3 = arith.constant 0 : index
    %c0_4 = arith.constant 0 : index
    %12 = vector.load %arg3[%c0_2, %c0_3, %c0_4] : memref<3x384x128xbf16, #tpu.memory_space<vmem>>, vector<1x384x128xbf16>
    %13 = vector.shape_cast %12 : vector<1x384x128xbf16> to vector<384x128xbf16>
    %cst_5 = arith.constant dense<0.000000e+00> : vector<256x128xf32>
    %14 = tpu.matmul %11, %13, %cst_5 {dimension_numbers = #tpu.dot_dimension_numbers<[1], [0], [0], [1], [0, 0, 1, 1], [], []>} : vector<256x384xbf16>, vector<384x128xbf16>, vector<256x128xf32> -> vector<256x128xf32>
    %15 = arith.addf %5, %14 : vector<256x128xf32>
    %16 = vector.extract_strided_slice %4 {offsets = [2, 0, 0], sizes = [16, 20, 128], strides = [1, 1, 1]} : vector<20x20x128xbf16> to vector<16x20x128xbf16>
    %17 = vector.extract_strided_slice %16 {offsets = [0, 0, 0], sizes = [16, 16, 128], strides = [1, 1, 1]} : vector<16x20x128xbf16> to vector<16x16x128xbf16>
    %18 = vector.extract_strided_slice %16 {offsets = [0, 2, 0], sizes = [16, 16, 128], strides = [1, 1, 1]} : vector<16x20x128xbf16> to vector<16x16x128xbf16>
    %19 = vector.extract_strided_slice %16 {offsets = [0, 4, 0], sizes = [16, 16, 128], strides = [1, 1, 1]} : vector<16x20x128xbf16> to vector<16x16x128xbf16>
    %20 = tpu.concatenate %17, %18, %19 in 2 : vector<16x16x128xbf16>, vector<16x16x128xbf16>, vector<16x16x128xbf16> -> vector<16x16x384xbf16>
    %21 = vector.shape_cast %20 : vector<16x16x384xbf16> to vector<256x384xbf16>
    %c1 = arith.constant 1 : index
    %c0_6 = arith.constant 0 : index
    %c0_7 = arith.constant 0 : index
    %22 = vector.load %arg3[%c1, %c0_6, %c0_7] : memref<3x384x128xbf16, #tpu.memory_space<vmem>>, vector<1x384x128xbf16>
    %23 = vector.shape_cast %22 : vector<1x384x128xbf16> to vector<384x128xbf16>
    %cst_8 = arith.constant dense<0.000000e+00> : vector<256x128xf32>
    %24 = tpu.matmul %21, %23, %cst_8 {dimension_numbers = #tpu.dot_dimension_numbers<[1], [0], [0], [1], [0, 0, 1, 1], [], []>} : vector<256x384xbf16>, vector<384x128xbf16>, vector<256x128xf32> -> vector<256x128xf32>
    %25 = arith.addf %15, %24 : vector<256x128xf32>
    %26 = vector.extract_strided_slice %4 {offsets = [4, 0, 0], sizes = [16, 20, 128], strides = [1, 1, 1]} : vector<20x20x128xbf16> to vector<16x20x128xbf16>
    %27 = vector.extract_strided_slice %26 {offsets = [0, 0, 0], sizes = [16, 16, 128], strides = [1, 1, 1]} : vector<16x20x128xbf16> to vector<16x16x128xbf16>
    %28 = vector.extract_strided_slice %26 {offsets = [0, 2, 0], sizes = [16, 16, 128], strides = [1, 1, 1]} : vector<16x20x128xbf16> to vector<16x16x128xbf16>
    %29 = vector.extract_strided_slice %26 {offsets = [0, 4, 0], sizes = [16, 16, 128], strides = [1, 1, 1]} : vector<16x20x128xbf16> to vector<16x16x128xbf16>
    %30 = tpu.concatenate %27, %28, %29 in 2 : vector<16x16x128xbf16>, vector<16x16x128xbf16>, vector<16x16x128xbf16> -> vector<16x16x384xbf16>
    %31 = vector.shape_cast %30 : vector<16x16x384xbf16> to vector<256x384xbf16>
    %c2 = arith.constant 2 : index
    %c0_9 = arith.constant 0 : index
    %c0_10 = arith.constant 0 : index
    %32 = vector.load %arg3[%c2, %c0_9, %c0_10] : memref<3x384x128xbf16, #tpu.memory_space<vmem>>, vector<1x384x128xbf16>
    %33 = vector.shape_cast %32 : vector<1x384x128xbf16> to vector<384x128xbf16>
    %cst_11 = arith.constant dense<0.000000e+00> : vector<256x128xf32>
    %34 = tpu.matmul %31, %33, %cst_11 {dimension_numbers = #tpu.dot_dimension_numbers<[1], [0], [0], [1], [0, 0, 1, 1], [], []>} : vector<256x384xbf16>, vector<384x128xbf16>, vector<256x128xf32> -> vector<256x128xf32>
    %35 = arith.addf %25, %34 : vector<256x128xf32>
    %36 = vector.shape_cast %35 : vector<256x128xf32> to vector<16x16x128xf32>
    %37 = arith.truncf %36 : vector<16x16x128xf32> to vector<16x16x128xbf16>
    %c0_12 = arith.constant 0 : index
    %c0_13 = arith.constant 0 : index
    %c0_14 = arith.constant 0 : index
    %c0_15 = arith.constant 0 : index
    %38 = vector.load %arg4[%c0_12, %c0_13, %c0_14, %c0_15] : memref<1x16x16x128xbf16, #tpu.memory_space<vmem>>, vector<1x16x16x128xbf16>
    %39 = vector.shape_cast %38 : vector<1x16x16x128xbf16> to vector<16x16x128xbf16>
    %40 = vector.shape_cast %37 : vector<16x16x128xbf16> to vector<1x16x16x128xbf16>
    tpu.vector_store %arg4[%c0_12, %c0_13, %c0_14, %c0_15], %40 {strides = array<i32>} : memref<1x16x16x128xbf16, #tpu.memory_space<vmem>>, vector<1x16x16x128xbf16>,
    %cst_16 = arith.constant dense<0.000000e+00> : vector<128xf32>
    %41 = vector.multi_reduction <add>, %35, %cst_16 [0] : vector<256x128xf32> to vector<128xf32>
    %42 = vector.shape_cast %41 : vector<128xf32> to vector<1x128xf32>
    %c0_17 = arith.constant 0 : index
    %c0_18 = arith.constant 0 : index
    %c0_19 = arith.constant 0 : index
    %c0_20 = arith.constant 0 : index
    %43 = vector.load %arg5[%c0_17, %c0_18, %c0_19, %c0_20] : memref<1x1x1x128xf32, #tpu.memory_space<vmem>>, vector<1x1x1x128xf32>
    %44 = vector.shape_cast %43 : vector<1x1x1x128xf32> to vector<1x128xf32>
    %45 = vector.shape_cast %42 : vector<1x128xf32> to vector<1x1x1x128xf32>
    tpu.vector_store %arg5[%c0_17, %c0_18, %c0_19, %c0_20], %45 {strides = array<i32>} : memref<1x1x1x128xf32, #tpu.memory_space<vmem>>, vector<1x1x1x128xf32>,
    %46 = arith.mulf %35, %35 : vector<256x128xf32>
    %cst_21 = arith.constant dense<0.000000e+00> : vector<128xf32>
    %47 = vector.multi_reduction <add>, %46, %cst_21 [0] : vector<256x128xf32> to vector<128xf32>
    %48 = vector.shape_cast %47 : vector<128xf32> to vector<1x128xf32>
    %c0_22 = arith.constant 0 : index
    %c0_23 = arith.constant 0 : index
    %c0_24 = arith.constant 0 : index
    %c0_25 = arith.constant 0 : index
    %49 = vector.load %arg6[%c0_22, %c0_23, %c0_24, %c0_25] : memref<1x1x1x128xf32, #tpu.memory_space<vmem>>, vector<1x1x1x128xf32>
    %50 = vector.shape_cast %49 : vector<1x1x1x128xf32> to vector<1x128xf32>
    %51 = vector.shape_cast %48 : vector<1x128xf32> to vector<1x1x1x128xf32>
    tpu.vector_store %arg6[%c0_22, %c0_23, %c0_24, %c0_25], %51 {strides = array<i32>} : memref<1x1x1x128xf32, #tpu.memory_space<vmem>>, vector<1x1x1x128xf32>,
    return
  }
  func.func @transform_0(%arg0: i32, %arg1: i32) -> (i32, i32, i32, i32) {
    %c0_i32 = arith.constant 0 : i32
    %c0_i32_0 = arith.constant 0 : i32
    %c0_i32_1 = arith.constant 0 : i32
    %c0_i32_2 = arith.constant 0 : i32
    return %arg0, %c0_i32, %c0_i32_0, %c0_i32_1 : i32, i32, i32, i32
  }
  func.func @transform_1(%arg0: i32, %arg1: i32) -> (i32, i32, i32) {
    %c0_i32 = arith.constant 0 : i32
    %c0_i32_0 = arith.constant 0 : i32
    %c0_i32_1 = arith.constant 0 : i32
    %c0_i32_2 = arith.constant 0 : i32
    return %c0_i32, %c0_i32_0, %c0_i32_1 : i32, i32, i32
  }
  func.func @transform_2(%arg0: i32, %arg1: i32) -> (i32, i32, i32, i32) {
    %c0_i32 = arith.constant 0 : i32
    %c0_i32_0 = arith.constant 0 : i32
    %c0_i32_1 = arith.constant 0 : i32
    return %arg0, %arg1, %c0_i32, %c0_i32_0 : i32, i32, i32, i32
  }
  func.func @transform_3(%arg0: i32, %arg1: i32) -> (i32, i32, i32, i32) {
    %c0_i32 = arith.constant 0 : i32
    %c0_i32_0 = arith.constant 0 : i32
    %c0_i32_1 = arith.constant 0 : i32
    return %arg0, %arg1, %c0_i32, %c0_i32_0 : i32, i32, i32, i32
  }
  func.func @transform_4(%arg0: i32, %arg1: i32) -> (i32, i32, i32, i32) {
    %c0_i32 = arith.constant 0 : i32
    %c0_i32_0 = arith.constant 0 : i32
    %c0_i32_1 = arith.constant 0 : i32
    return %arg0, %arg1, %c0_i32, %c0_i32_0 : i32, i32, i32, i32
  }
}

module attributes {stable_mosaic.version = 11 : i64} {
  func.func @_bn_relu_conv1x1_kernel(%arg0: i32, %arg1: i32, %arg2: memref<1x16x16x128xbf16, #tpu.memory_space<vmem>>, %arg3: memref<1x128xf32, #tpu.memory_space<vmem>>, %arg4: memref<1x128xf32, #tpu.memory_space<vmem>>, %arg5: memref<128x512xbf16, #tpu.memory_space<vmem>>, %arg6: memref<1x16x16x512xbf16, #tpu.memory_space<vmem>>, %arg7: memref<1x1x1x512xf32, #tpu.memory_space<vmem>>, %arg8: memref<1x1x1x512xf32, #tpu.memory_space<vmem>>) attributes {dimension_semantics = [#tpu.dimension_semantics<parallel>, #tpu.dimension_semantics<parallel>], iteration_bounds = array<i64: 2, 1>, scalar_prefetch = 0 : i64, scratch_operands = 0 : i64, tpu.core_type = #tpu.core_type<tc>, window_params = [{transform_indices = @transform_0, window_bounds = array<i64: 1, 16, 16, 128>}, {pipeline_mode = #tpu.pipeline_mode<synchronous>, transform_indices = @transform_1, window_bounds = array<i64: 1, 128>}, {pipeline_mode = #tpu.pipeline_mode<synchronous>, transform_indices = @transform_2, window_bounds = array<i64: 1, 128>}, {pipeline_mode = #tpu.pipeline_mode<synchronous>, transform_indices = @transform_3, window_bounds = array<i64: 128, 512>}, {transform_indices = @transform_4, window_bounds = array<i64: 1, 16, 16, 512>}, {transform_indices = @transform_5, window_bounds = array<i64: 1, 1, 1, 512>}, {transform_indices = @transform_6, window_bounds = array<i64: 1, 1, 1, 512>}]} {
    %c0 = arith.constant 0 : index
    %c0_0 = arith.constant 0 : index
    %c0_1 = arith.constant 0 : index
    %c0_2 = arith.constant 0 : index
    %0 = vector.load %arg2[%c0, %c0_0, %c0_1, %c0_2] : memref<1x16x16x128xbf16, #tpu.memory_space<vmem>>, vector<1x16x16x128xbf16>
    %1 = vector.shape_cast %0 : vector<1x16x16x128xbf16> to vector<16x16x128xbf16>
    %2 = arith.extf %1 : vector<16x16x128xbf16> to vector<16x16x128xf32>
    %c0_3 = arith.constant 0 : index
    %c0_4 = arith.constant 0 : index
    %3 = vector.load %arg3[%c0_3, %c0_4] : memref<1x128xf32, #tpu.memory_space<vmem>>, vector<1x128xf32>
    %4 = vector.shape_cast %3 : vector<1x128xf32> to vector<1x1x128xf32>
    %5 = vector.broadcast %4 : vector<1x1x128xf32> to vector<16x16x128xf32>
    %6 = arith.mulf %2, %5 : vector<16x16x128xf32>
    %c0_5 = arith.constant 0 : index
    %c0_6 = arith.constant 0 : index
    %7 = vector.load %arg4[%c0_5, %c0_6] : memref<1x128xf32, #tpu.memory_space<vmem>>, vector<1x128xf32>
    %8 = vector.shape_cast %7 : vector<1x128xf32> to vector<1x1x128xf32>
    %9 = vector.broadcast %8 : vector<1x1x128xf32> to vector<16x16x128xf32>
    %10 = arith.addf %6, %9 : vector<16x16x128xf32>
    %cst = arith.constant 0.000000e+00 : f32
    %11 = vector.broadcast %cst : f32 to vector<16x16x128xf32>
    %12 = arith.maximumf %10, %11 : vector<16x16x128xf32>
    %13 = arith.truncf %12 : vector<16x16x128xf32> to vector<16x16x128xbf16>
    %14 = vector.shape_cast %13 : vector<16x16x128xbf16> to vector<256x128xbf16>
    %c0_7 = arith.constant 0 : index
    %c0_8 = arith.constant 0 : index
    %15 = vector.load %arg5[%c0_7, %c0_8] : memref<128x512xbf16, #tpu.memory_space<vmem>>, vector<128x512xbf16>
    %cst_9 = arith.constant dense<0.000000e+00> : vector<256x512xf32>
    %16 = tpu.matmul %14, %15, %cst_9 {dimension_numbers = #tpu.dot_dimension_numbers<[1], [0], [0], [1], [0, 0, 1, 1], [], []>} : vector<256x128xbf16>, vector<128x512xbf16>, vector<256x512xf32> -> vector<256x512xf32>
    %17 = vector.shape_cast %16 : vector<256x512xf32> to vector<16x16x512xf32>
    %18 = arith.truncf %17 : vector<16x16x512xf32> to vector<16x16x512xbf16>
    %c0_10 = arith.constant 0 : index
    %c0_11 = arith.constant 0 : index
    %c0_12 = arith.constant 0 : index
    %c0_13 = arith.constant 0 : index
    %19 = vector.load %arg6[%c0_10, %c0_11, %c0_12, %c0_13] : memref<1x16x16x512xbf16, #tpu.memory_space<vmem>>, vector<1x16x16x512xbf16>
    %20 = vector.shape_cast %19 : vector<1x16x16x512xbf16> to vector<16x16x512xbf16>
    %21 = vector.shape_cast %18 : vector<16x16x512xbf16> to vector<1x16x16x512xbf16>
    tpu.vector_store %arg6[%c0_10, %c0_11, %c0_12, %c0_13], %21 {strides = array<i32>} : memref<1x16x16x512xbf16, #tpu.memory_space<vmem>>, vector<1x16x16x512xbf16>,
    %cst_14 = arith.constant dense<0.000000e+00> : vector<512xf32>
    %22 = vector.multi_reduction <add>, %16, %cst_14 [0] : vector<256x512xf32> to vector<512xf32>
    %23 = vector.shape_cast %22 : vector<512xf32> to vector<1x512xf32>
    %c0_15 = arith.constant 0 : index
    %c0_16 = arith.constant 0 : index
    %c0_17 = arith.constant 0 : index
    %c0_18 = arith.constant 0 : index
    %24 = vector.load %arg7[%c0_15, %c0_16, %c0_17, %c0_18] : memref<1x1x1x512xf32, #tpu.memory_space<vmem>>, vector<1x1x1x512xf32>
    %25 = vector.shape_cast %24 : vector<1x1x1x512xf32> to vector<1x512xf32>
    %26 = vector.shape_cast %23 : vector<1x512xf32> to vector<1x1x1x512xf32>
    tpu.vector_store %arg7[%c0_15, %c0_16, %c0_17, %c0_18], %26 {strides = array<i32>} : memref<1x1x1x512xf32, #tpu.memory_space<vmem>>, vector<1x1x1x512xf32>,
    %27 = arith.mulf %16, %16 : vector<256x512xf32>
    %cst_19 = arith.constant dense<0.000000e+00> : vector<512xf32>
    %28 = vector.multi_reduction <add>, %27, %cst_19 [0] : vector<256x512xf32> to vector<512xf32>
    %29 = vector.shape_cast %28 : vector<512xf32> to vector<1x512xf32>
    %c0_20 = arith.constant 0 : index
    %c0_21 = arith.constant 0 : index
    %c0_22 = arith.constant 0 : index
    %c0_23 = arith.constant 0 : index
    %30 = vector.load %arg8[%c0_20, %c0_21, %c0_22, %c0_23] : memref<1x1x1x512xf32, #tpu.memory_space<vmem>>, vector<1x1x1x512xf32>
    %31 = vector.shape_cast %30 : vector<1x1x1x512xf32> to vector<1x512xf32>
    %32 = vector.shape_cast %29 : vector<1x512xf32> to vector<1x1x1x512xf32>
    tpu.vector_store %arg8[%c0_20, %c0_21, %c0_22, %c0_23], %32 {strides = array<i32>} : memref<1x1x1x512xf32, #tpu.memory_space<vmem>>, vector<1x1x1x512xf32>,
    return
  }
  func.func @transform_0(%arg0: i32, %arg1: i32) -> (i32, i32, i32, i32) {
    %c0_i32 = arith.constant 0 : i32
    %c0_i32_0 = arith.constant 0 : i32
    %c0_i32_1 = arith.constant 0 : i32
    return %arg0, %arg1, %c0_i32, %c0_i32_0 : i32, i32, i32, i32
  }
  func.func @transform_1(%arg0: i32, %arg1: i32) -> (i32, i32) {
    %c0_i32 = arith.constant 0 : i32
    %c0_i32_0 = arith.constant 0 : i32
    %c0_i32_1 = arith.constant 0 : i32
    return %c0_i32, %c0_i32_0 : i32, i32
  }
  func.func @transform_2(%arg0: i32, %arg1: i32) -> (i32, i32) {
    %c0_i32 = arith.constant 0 : i32
    %c0_i32_0 = arith.constant 0 : i32
    %c0_i32_1 = arith.constant 0 : i32
    return %c0_i32, %c0_i32_0 : i32, i32
  }
  func.func @transform_3(%arg0: i32, %arg1: i32) -> (i32, i32) {
    %c0_i32 = arith.constant 0 : i32
    %c0_i32_0 = arith.constant 0 : i32
    %c0_i32_1 = arith.constant 0 : i32
    return %c0_i32, %c0_i32_0 : i32, i32
  }
  func.func @transform_4(%arg0: i32, %arg1: i32) -> (i32, i32, i32, i32) {
    %c0_i32 = arith.constant 0 : i32
    %c0_i32_0 = arith.constant 0 : i32
    %c0_i32_1 = arith.constant 0 : i32
    return %arg0, %arg1, %c0_i32, %c0_i32_0 : i32, i32, i32, i32
  }
  func.func @transform_5(%arg0: i32, %arg1: i32) -> (i32, i32, i32, i32) {
    %c0_i32 = arith.constant 0 : i32
    %c0_i32_0 = arith.constant 0 : i32
    %c0_i32_1 = arith.constant 0 : i32
    return %arg0, %arg1, %c0_i32, %c0_i32_0 : i32, i32, i32, i32
  }
  func.func @transform_6(%arg0: i32, %arg1: i32) -> (i32, i32, i32, i32) {
    %c0_i32 = arith.constant 0 : i32
    %c0_i32_0 = arith.constant 0 : i32
    %c0_i32_1 = arith.constant 0 : i32
    return %arg0, %arg1, %c0_i32, %c0_i32_0 : i32, i32, i32, i32
  }
}

</mosaic_0001>

<bundles_post_ra>
// kernel: model_forward.3
= control target key start
LH: loop header
LB: loop body
LE: loop exit
PB: predicated region body
PF: predicated region fallthrough
CT: control target
= control target key end

     0   :  { %s2293_s21 = smov 0   ;;  %s2295_s22 = smov 0   ;;  %s2867_s0 = inlined_call_operand.vmem [shape: bf16[2,16,16,128], index: 0, kind: input, shape index: {}]   ;;  %s2868_s1 = inlined_call_operand.vmem [shape: f32[1,128], index: 1, kind: input, shape index: {}]   ;;  %s2869_s2 = inlined_call_operand.vmem [shape: f32[1,128], index: 2, kind: input, shape index: {}]   ;;  %s2870_s3 = inlined_call_operand.vmem [shape: bf16[128,512], index: 3, kind: input, shape index: {}]   ;;  %s2871_s4 = inlined_call_operand.vmem [shape: bf16[2,16,16,512], index: 4, kind: output, shape index: {0}]   ;;  %s2872_s5 = inlined_call_operand.vmem [shape: f32[2,1,1,512], index: 5, kind: output, shape index: {1}]   ;;  %s2873_s6 = inlined_call_operand.vmem [shape: f32[2,1,1,512], index: 6, kind: output, shape index: {2}]  }
   0x1   :  { %s2297_s23 = smov 0  }
   0x2 LB: > { %s29_s24 = sadd.s32 1, %s2252_s22  ;;  %p1958_p0 = scmp.ge.s32.totalorder %s2256_s23, 1  ;;  %s2256_s23 = sphi %s2297_s23, %s17_s23   ;;  %s2252_s22 = sphi %s2295_s22, %s2875_s22   ;;  %s2248_s21 = sphi %s2293_s21, %s2874_s21  }
   0x3   : > { %p31_p1 = scmp.ge.s32.totalorder %s29_s24, 2  ;;  %p243_p2 = scmp.lt.s32.totalorder %s2256_s23, 3 }
   0x5   : > { %s2877_s24 = smov (%p31_p1, %s29_s24), 0  ;;  %p244_p3 = pnand %p1958_p0, %p243_p2 }
   0x6   : > { %p300_p4 = scmp.lt.s32.totalorder (!%p244_p3), %s2248_s21, 1 }
   0x7   : > { %247 = sbr.rel (%p244_p3) target bundleno = 454 (0x1c6), region = 36 }
   0xc   : > { %v2079_v0 = vld [vmem:[%s2870_s3 + $0xe0] sm:$0xf]  ;;  %v2127_v1 = vld [vmem:[%s2870_s3 + $0xec] sm:$0xf0]  ;;  %v2125_v2 = vld [vmem:[%s2870_s3 + $0xe4] sm:$0xf] }
   0xd   : > { %v2080_v3 = vor.u32 %v2127_v1, %v2079_v0  ;;  %v2081_v4 = vld [vmem:[%s2870_s3 + $0xf0] sm:$0xf0]  ;;  %v2087_v5 = vld [vmem:[%s2870_s3 + $0xe8] sm:$0xf]  ;;  %v2128_v6 = vld [vmem:[%s2870_s3 + $0xf4] sm:$0xf0] }
   0xe   : > { %v2084_v7 = vor.u32 %v2125_v2, %v2081_v4  ;;  %v2088_v8 = vor.u32 %v2128_v6, %v2087_v5  ;;  %v2126_v9 = vld [vmem:[%s2870_s3 + $0xec] sm:$0xf]  ;;  %v2089_v10 = vld [vmem:[%s2870_s3 + $0xf8] sm:$0xf0]  ;;  %v2063_v11 = vld [vmem:[%s2870_s3 + $0xc0] sm:$0xf] }
   0xf   : > { %825 = vmatpush.bf16.msra.mxu0 %v2080_v3  ;;  %v2092_v12 = vor.u32 %v2126_v9, %v2089_v10  ;;  %v2123_v13 = vld [vmem:[%s2870_s3 + $0xcc] sm:$0xf0]  ;;  %v2121_v14 = vld [vmem:[%s2870_s3 + $0xc4] sm:$0xf]  ;;  %v2065_v15 = vld [vmem:[%s2870_s3 + $0xd0] sm:$0xf0] }
  0x10   : > { %914 = vmatpush.bf16.msra.mxu1 %v2084_v7  ;;  %1003 = vmatpush.bf16.msra.mxu2 %v2088_v8  ;;  %v2064_v16 = vor.u32 %v2123_v13, %v2063_v11  ;;  %v2068_v17 = vor.u32 %v2121_v14, %v2065_v15  ;;  %v2071_v18 = vld [vmem:[%s2870_s3 + $0xc8] sm:$0xf]  ;;  %v2124_v19 = vld [vmem:[%s2870_s3 + $0xd4] sm:$0xf0]  ;;  %v2122_v20 = vld [vmem:[%s2870_s3 + $0xcc] sm:$0xf] }
  0x11   : > { %1092 = vmatpush.bf16.msra.mxu3 %v2092_v12  ;;  %v2072_v21 = vor.u32 %v2124_v19, %v2071_v18  ;;  %v2073_v22 = vld [vmem:[%s2870_s3 + $0xd8] sm:$0xf0]  ;;  %v2047_v23 = vld [vmem:[%s2870_s3 + $0xa0] sm:$0xf]  ;;  %v2119_v24 = vld [vmem:[%s2870_s3 + $0xac] sm:$0xf0] }
  0x12   : > { %v2076_v25 = vor.u32 %v2122_v20, %v2073_v22  ;;  %v2117_v26 = vld [vmem:[%s2870_s3 + $0xa4] sm:$0xf]  ;;  %v2049_v27 = vld [vmem:[%s2870_s3 + $0xb0] sm:$0xf0]  ;;  %v2055_v28 = vld [vmem:[%s2870_s3 + $0xa8] sm:$0xf]  ;;  %v2048_v29 = vor.u32 %v2119_v24, %v2047_v23 }
  0x13   : > { %826 = vmatpush.bf16.msra.mxu0 %v2064_v16  ;;  %v2120_v30 = vld [vmem:[%s2870_s3 + $0xb4] sm:$0xf0]  ;;  %v2118_v31 = vld [vmem:[%s2870_s3 + $0xac] sm:$0xf]  ;;  %v2057_v32 = vld [vmem:[%s2870_s3 + $0xb8] sm:$0xf0]  ;;  %v2052_v33 = vor.u32 %v2117_v26, %v2049_v27 }
  0x14   : > { %915 = vmatpush.bf16.msra.mxu1 %v2068_v17  ;;  %1004 = vmatpush.bf16.msra.mxu2 %v2072_v21  ;;  %v2056_v34 = vor.u32 %v2120_v30, %v2055_v28  ;;  %v2031_v35 = vld [vmem:[%s2870_s3 + $0x80] sm:$0xf]  ;;  %v2115_v36 = vld [vmem:[%s2870_s3 + $0x8c] sm:$0xf0]  ;;  %v2113_v37 = vld [vmem:[%s2870_s3 + $0x84] sm:$0xf]  ;;  %v2060_v38 = vor.u32 %v2118_v31, %v2057_v32 }
  0x15   : > { %1093 = vmatpush.bf16.msra.mxu3 %v2076_v25  ;;  %v2033_v39 = vld [vmem:[%s2870_s3 + $0x90] sm:$0xf0]  ;;  %v2039_v40 = vld [vmem:[%s2870_s3 + $0x88] sm:$0xf]  ;;  %v2116_v41 = vld [vmem:[%s2870_s3 + $0x94] sm:$0xf0]  ;;  %v2032_v44 = vor.u32 %v2115_v36, %v2031_v35 }
  0x16   : > { %v2114_v42 = vld [vmem:[%s2870_s3 + $0x8c] sm:$0xf]  ;;  %v2041_v43 = vld [vmem:[%s2870_s3 + $0x98] sm:$0xf0]  ;;  %v2036_v45 = vor.u32 %v2113_v37, %v2033_v39  ;;  %v2040_v46 = vor.u32 %v2116_v41, %v2039_v40  ;;  %v2015_v47 = vld [vmem:[%s2870_s3 + $0x60] sm:$0xf] }
  0x17   : > { %827 = vmatpush.bf16.msra.mxu0 %v2048_v29  ;;  %v2111_v48 = vld [vmem:[%s2870_s3 + $0x6c] sm:$0xf0]  ;;  %v2109_v49 = vld [vmem:[%s2870_s3 + $0x64] sm:$0xf]  ;;  %v2044_v50 = vor.u32 %v2114_v42, %v2041_v43  ;;  %v2017_v51 = vld [vmem:[%s2870_s3 + $0x70] sm:$0xf0] }
  0x18   : > { %916 = vmatpush.bf16.msra.mxu1 %v2052_v33  ;;  %1005 = vmatpush.bf16.msra.mxu2 %v2056_v34  ;;  %v2023_v52 = vld [vmem:[%s2870_s3 + $0x68] sm:$0xf]  ;;  %v2112_v53 = vld [vmem:[%s2870_s3 + $0x74] sm:$0xf0]  ;;  %v2110_v54 = vld [vmem:[%s2870_s3 + $0x6c] sm:$0xf]  ;;  %v2016_v56 = vor.u32 %v2111_v48, %v2015_v47  ;;  %v2020_v57 = vor.u32 %v2109_v49, %v2017_v51 }
  0x19   : > { %1094 = vmatpush.bf16.msra.mxu3 %v2060_v38  ;;  %v2025_v55 = vld [vmem:[%s2870_s3 + $0x78] sm:$0xf0]  ;;  %v2024_v58 = vor.u32 %v2112_v53, %v2023_v52  ;;  %v1999_v59 = vld [vmem:[%s2870_s3 + $0x40] sm:$0xf]  ;;  %v2107_v60 = vld [vmem:[%s2870_s3 + $0x4c] sm:$0xf0] }
  0x1a   : > { %v2105_v61 = vld [vmem:[%s2870_s3 + $0x44] sm:$0xf]  ;;  %v2028_v62 = vor.u32 %v2110_v54, %v2025_v55  ;;  %v2001_v63 = vld [vmem:[%s2870_s3 + $0x50] sm:$0xf0]  ;;  %v2007_v0 = vld [vmem:[%s2870_s3 + $0x48] sm:$0xf]  ;;  %v2000_v4 = vor.u32 %v2107_v60, %v1999_v59 }
  0x1b   : > { %828 = vmatpush.bf16.msra.mxu0 %v2032_v44  ;;  %v2108_v1 = vld [vmem:[%s2870_s3 + $0x54] sm:$0xf0]  ;;  %v2106_v2 = vld [vmem:[%s2870_s3 + $0x4c] sm:$0xf]  ;;  %v2009_v3 = vld [vmem:[%s2870_s3 + $0x58] sm:$0xf0]  ;;  %v2004_v7 = vor.u32 %v2105_v61, %v2001_v63 }
  0x1c   : > { %917 = vmatpush.bf16.msra.mxu1 %v2036_v45  ;;  %1006 = vmatpush.bf16.msra.mxu2 %v2040_v46  ;;  %v1983_v5 = vld [vmem:[%s2870_s3 + $0x20] sm:$0xf]  ;;  %v2103_v6 = vld [vmem:[%s2870_s3 + $0x2c] sm:$0xf0]  ;;  %v2008_v8 = vor.u32 %v2108_v1, %v2007_v0  ;;  %v2101_v9 = vld [vmem:[%s2870_s3 + $0x24] sm:$0xf]  ;;  %v2012_v12 = vor.u32 %v2106_v2, %v2009_v3 }
  0x1d   : > { %1095 = vmatpush.bf16.msra.mxu3 %v2044_v50  ;;  %v1985_v10 = vld [vmem:[%s2870_s3 + $0x30] sm:$0xf0]  ;;  %v1991_v11 = vld [vmem:[%s2870_s3 + $0x28] sm:$0xf]  ;;  %v2104_v13 = vld [vmem:[%s2870_s3 + $0x34] sm:$0xf0]  ;;  %v1984_v16 = vor.u32 %v2103_v6, %v1983_v5 }
  0x1e   : > { %v2102_v14 = vld [vmem:[%s2870_s3 + $0x2c] sm:$0xf]  ;;  %v1993_v15 = vld [vmem:[%s2870_s3 + $0x38] sm:$0xf0]  ;;  %v1967_v17 = vld [vmem:[%s2870_s3] sm:$0xf]  ;;  %v1988_v18 = vor.u32 %v2101_v9, %v1985_v10  ;;  %v1992_v19 = vor.u32 %v2104_v13, %v1991_v11 }
  0x1f   : > { %829 = vmatpush.bf16.msra.mxu0 %v2016_v56  ;;  %s2879_s21 = smov (!%p300_p4, %s2248_s21), 1  ;;  %v2099_v20 = vld [vmem:[%s2870_s3 + $0xc] sm:$0xf0]  ;;  %v2097_v21 = vld [vmem:[%s2870_s3 + $0x4] sm:$0xf]  ;;  %v1996_v23 = vor.u32 %v2102_v14, %v1993_v15  ;;  %vm1464_vm0 = vcmask 1040384  }
  0x20   : > { %918 = vmatpush.bf16.msra.mxu1 %v2020_v57  ;;  %1007 = vmatpush.bf16.msra.mxu2 %v2024_v58  ;;  %v1969_v22 = vld [vmem:[%s2870_s3 + $0x10] sm:$0xf0]  ;;  %v1975_v24 = vld [vmem:[%s2870_s3 + $0x8] sm:$0xf]  ;;  %v2100_v25 = vld [vmem:[%s2870_s3 + $0x14] sm:$0xf0]  ;;  %v1968_v29 = vor.u32 %v2099_v20, %v1967_v17 }
  0x21   : > { %1096 = vmatpush.bf16.msra.mxu3 %v2028_v62  ;;  %s2095_s29 = sshll.u32 %s2879_s21, 7  ;;  %v2098_v26 = vld [vmem:[%s2870_s3 + $0xc] sm:$0xf]  ;;  %v1977_v27 = vld [vmem:[%s2870_s3 + $0x18] sm:$0xf0]  ;;  %v1972_v32 = vor.u32 %v2097_v21, %v1969_v22  ;;  %v1976_v33 = vor.u32 %v2100_v25, %v1975_v24  ;;  %s2096_s17 = sshll.u32 %s2879_s21, 9 }
  0x22   : > { %s2513_s12 = scalar_lea.vmem %s2867_s0, %s2095_s29  ;;  %v2518_v28 = vld [vmem:[%s2868_s1] ss:$0 sm:$0xff]  ;;  %v1980_v37 = vor.u32 %v2098_v26, %v1977_v27  ;;  %s2580_s20 = scalar_lea.vmem %s2871_s4, %s2096_s17  ;;  %vm1466_vm1 = vcmask 1042434   ;;  %vm1468_vm2 = vcmask 1041408  }
  0x23   : > { %830 = vmatpush.bf16.msra.mxu0 %v2000_v4  ;;  %v2130_v30 = vld [vmem:[%s2513_s12] sm:$0xff]   ;;  %v2193_v31 = vld [vmem:[%s2513_s12 + $0x8] sm:$0xff]   ;;  %v2194_v57 = vld [vmem:[%s2513_s12 + $0x10] sm:$0xff]   ;;  %s1963_s25 = sshll.u32 %s2879_s21, 2 }
  0x24   : > { %919 = vmatpush.bf16.msra.mxu1 %v2004_v7  ;;  %1008 = vmatpush.bf16.msra.mxu2 %v2008_v8  ;;  %v2131_v34 = vunpack.c.l.bf16 %v2130_v30  ;;  %v2132_v35 = vunpack.c.h.bf16 %v2130_v30  ;;  %v2525_v36 = vld [vmem:[%s2869_s2] ss:$0 sm:$0xff]  ;;  %v2135_v40 = vunpack.c.l.bf16 %v2193_v31  ;;  %v2136_v41 = vunpack.c.h.bf16 %v2193_v31  ;;  %v2195_v7 = vld [vmem:[%s2513_s12 + $0x18] sm:$0xff]   ;;  %s328_s28 = scalar_lea.vmem %s2872_s5, %s1963_s25  ;;  %s336_s30 = scalar_lea.vmem %s2873_s6, %s1963_s25 }
  0x25   : > { %1097 = vmatpush.bf16.msra.mxu3 %v2012_v12  ;;  %v2139_v60 = vunpack.c.l.bf16 %v2194_v57  ;;  %v2140_v61 = vunpack.c.h.bf16 %v2194_v57  ;;  %v2143_v10 = vunpack.c.l.bf16 %v2195_v7  ;;  %v2144_v11 = vunpack.c.h.bf16 %v2195_v7  ;;  %v2196_v21 = vld [vmem:[%s2513_s12 + $0x20] sm:$0xff]  }
  0x26   : > { %v405_v38 = vmul.f32 %v2518_v28, %v2131_v34  ;;  %v406_v39 = vmul.f32 %v2518_v28, %v2132_v35  ;;  %v407_v46 = vmul.f32 %v2518_v28, %v2135_v40  ;;  %v408_v47 = vmul.f32 %v2518_v28, %v2136_v41 }
  0x27   : > { %831 = vmatpush.bf16.msra.mxu0 %v1984_v16  ;;  %v409_v0 = vmul.f32 %v2518_v28, %v2139_v60  ;;  %v410_v1 = vmul.f32 %v2518_v28, %v2140_v61  ;;  %v411_v14 = vmul.f32 %v2518_v28, %v2143_v10  ;;  %v412_v15 = vmul.f32 %v2518_v28, %v2144_v11 }
  0x28   : > { %920 = vmatpush.bf16.msra.mxu1 %v1988_v18  ;;  %1009 = vmatpush.bf16.msra.mxu2 %v1992_v19  ;;  %v441_v42 = vadd.f32 %v2525_v36, %v405_v38  ;;  %v442_v43 = vadd.f32 %v2525_v36, %v406_v39  ;;  %v443_v52 = vadd.f32 %v2525_v36, %v407_v46  ;;  %v2147_v24 = vunpack.c.l.bf16 %v2196_v21 }
  0x29   : > { %1098 = vmatpush.bf16.msra.mxu3 %v1996_v23  ;;  %v444_v53 = vadd.f32 %v2525_v36, %v408_v47  ;;  %v445_v3 = vadd.f32 %v2525_v36, %v409_v0  ;;  %v446_v4 = vadd.f32 %v2525_v36, %v410_v1  ;;  %v447_v17 = vadd.f32 %v2525_v36, %v411_v14  ;;  %v2199_v1 = vld [vmem:[%s2513_s12 + $0x38] sm:$0xff]  }
  0x2a   : > { %v473_v44 = vmax.f32 %v441_v42, 0.0  ;;  %v474_v45 = vmax.f32 %v442_v43, 0.0  ;;  %v475_v55 = vmax.f32 %v443_v52, 0.0  ;;  %v448_v18 = vadd.f32 %v2525_v36, %v412_v15  ;;  %v2200_v15 = vld [vmem:[%s2513_s12 + $0x40] sm:$0xff]  }
  0x2b   : > { %832 = vmatpush.bf16.msra.mxu0 %v1968_v29  ;;  %v476_v56 = vmax.f32 %v444_v53, 0.0  ;;  %v477_v5 = vmax.f32 %v445_v3, 0.0  ;;  %v478_v6 = vmax.f32 %v446_v4, 0.0  ;;  %v479_v19 = vmax.f32 %v447_v17, 0.0 }
  0x2c   : > { %921 = vmatpush.bf16.msra.mxu1 %v1972_v32  ;;  %1010 = vmatpush.bf16.msra.mxu2 %v1976_v33  ;;  %v505_v48 = vpack.c.bf16 %v473_v44, %v473_v44  ;;  %v506_v49 = vpack.c.bf16 %v474_v45, %v474_v45  ;;  %v507_v58 = vpack.c.bf16 %v475_v55, %v475_v55  ;;  %v480_v20 = vmax.f32 %v448_v18, 0.0 }
  0x2d   : > { %1099 = vmatpush.bf16.msra.mxu3 %v1980_v37  ;;  %v508_v59 = vpack.c.bf16 %v476_v56, %v476_v56  ;;  %v509_v8 = vpack.c.bf16 %v477_v5, %v477_v5  ;;  %v510_v9 = vpack.c.bf16 %v478_v6, %v478_v6  ;;  %v511_v22 = vpack.c.bf16 %v479_v19, %v479_v19  ;;  %v2197_v37 = vld [vmem:[%s2513_s12 + $0x28] sm:$0xff]  }
  0x2e   : > { %v601_v50 = vunpack.c.l.b16 %v505_v48  ;;  %v602_v51 = vunpack.c.l.b16 %v506_v49  ;;  %v603_v62 = vunpack.c.l.b16 %v507_v58  ;;  %v512_v23 = vpack.c.bf16 %v480_v20, %v480_v20 }
  0x2f   : > { %v604_v63 = vunpack.c.l.b16 %v508_v59  ;;  %v605_v12 = vunpack.c.l.b16 %v509_v8  ;;  %v606_v13 = vunpack.c.l.b16 %v510_v9  ;;  %v2148_v25 = vunpack.c.h.bf16 %v2196_v21 }
  0x30   : > { %v633_v54 = vpack.c.b16 %v602_v51, %v601_v50  ;;  %v607_v26 = vunpack.c.l.b16 %v511_v22  ;;  %v608_v27 = vunpack.c.l.b16 %v512_v23  ;;  %v413_v29 = vmul.f32 %v2518_v28, %v2147_v24  ;;  %v2198_v51 = vld [vmem:[%s2513_s12 + $0x30] sm:$0xff]  }
  0x31   : > { %v634_v2 = vpack.c.b16 %v604_v63, %v603_v62  ;;  %v635_v16 = vpack.c.b16 %v606_v13, %v605_v12  ;;  %v414_v30 = vmul.f32 %v2518_v28, %v2148_v25  ;;  %v2151_v40 = vunpack.c.l.bf16 %v2197_v37 }
  0x32   : > { %833 = vmatmul.bf16.vlgmr.msra.gmra.mxu0 %v633_v54  ;;  %922 = vmatmul.bf16.vlgmr.msra.gmra.mxu1 %v633_v54  ;;  %v636_v31 = vpack.c.b16 %v608_v27, %v607_v26  ;;  %v449_v32 = vadd.f32 %v2525_v36, %v413_v29  ;;  %v2152_v41 = vunpack.c.h.bf16 %v2197_v37  ;;  %v2156_v55 = vunpack.c.h.bf16 %v2198_v51  ;;  %v2201_v27 = vld [vmem:[%s2513_s12 + $0x48] sm:$0xff]  }
  0x33   : > { %1011 = vmatmul.bf16.vlgmr.msra.gmra.mxu2 %v633_v54  ;;  %1100 = vmatmul.bf16.vlgmr.msra.gmra.mxu3 %v633_v54  ;;  %v450_v33 = vadd.f32 %v2525_v36, %v414_v30  ;;  %v415_v44 = vmul.f32 %v2518_v28, %v2151_v40  ;;  %v2155_v54 = vunpack.c.l.bf16 %v2198_v51  ;;  %v2159_v4 = vunpack.c.l.bf16 %v2199_v1  ;;  %v2202_v40 = vld [vmem:[%s2513_s12 + $0x50] sm:$0xff]  }
  0x34   : > { %v481_v34 = vmax.f32 %v449_v32, 0.0  ;;  %v416_v45 = vmul.f32 %v2518_v28, %v2152_v41  ;;  %v418_v59 = vmul.f32 %v2518_v28, %v2156_v55  ;;  %v2160_v5 = vunpack.c.h.bf16 %v2199_v1 }
  0x35   : > { %v482_v35 = vmax.f32 %v450_v33, 0.0  ;;  %v451_v47 = vadd.f32 %v2525_v36, %v415_v44  ;;  %v417_v58 = vmul.f32 %v2518_v28, %v2155_v54  ;;  %v419_v8 = vmul.f32 %v2518_v28, %v2159_v4 }
  0x36   : > { %v513_v38 = vpack.c.bf16 %v481_v34, %v481_v34  ;;  %v452_v48 = vadd.f32 %v2525_v36, %v416_v45  ;;  %v454_v62 = vadd.f32 %v2525_v36, %v418_v59  ;;  %v420_v9 = vmul.f32 %v2518_v28, %v2160_v5 }
  0x37   : > { %v514_v39 = vpack.c.bf16 %v482_v35, %v482_v35  ;;  %v483_v49 = vmax.f32 %v451_v47, 0.0  ;;  %v453_v61 = vadd.f32 %v2525_v36, %v417_v58  ;;  %v455_v11 = vadd.f32 %v2525_v36, %v419_v8 }
  0x38   : > { %v609_v42 = vunpack.c.l.b16 %v513_v38  ;;  %v484_v50 = vmax.f32 %v452_v48, 0.0  ;;  %v486_v0 = vmax.f32 %v454_v62, 0.0  ;;  %v456_v12 = vadd.f32 %v2525_v36, %v420_v9 }
  0x39   : > { %v610_v43 = vunpack.c.l.b16 %v514_v39  ;;  %v515_v52 = vpack.c.bf16 %v483_v49, %v483_v49  ;;  %v485_v63 = vmax.f32 %v453_v61, 0.0  ;;  %v487_v13 = vmax.f32 %v455_v11, 0.0 }
  0x3a   : > { %v516_v53 = vpack.c.bf16 %v484_v50, %v484_v50  ;;  %v518_v3 = vpack.c.bf16 %v486_v0, %v486_v0  ;;  %v488_v14 = vmax.f32 %v456_v12, 0.0  ;;  %v2163_v18 = vunpack.c.l.bf16 %v2200_v15 }
  0x3b   : > { %v637_v46 = vpack.c.b16 %v610_v43, %v609_v42  ;;  %v611_v56 = vunpack.c.l.b16 %v515_v52  ;;  %v2164_v19 = vunpack.c.h.bf16 %v2200_v15  ;;  %v2168_v32 = vunpack.c.h.bf16 %v2201_v27 }
  0x3c   : > { %v612_v57 = vunpack.c.l.b16 %v516_v53  ;;  %v614_v7 = vunpack.c.l.b16 %v518_v3  ;;  %v520_v17 = vpack.c.bf16 %v488_v14, %v488_v14  ;;  %v421_v22 = vmul.f32 %v2518_v28, %v2163_v18 }
  0x3d   : > { %v422_v23 = vmul.f32 %v2518_v28, %v2164_v19  ;;  %v424_v37 = vmul.f32 %v2518_v28, %v2168_v32  ;;  %v2171_v43 = vunpack.c.l.bf16 %v2202_v40  ;;  %v2172_v50 = vunpack.c.h.bf16 %v2202_v40 }
  0x3e   : > { %v638_v60 = vpack.c.b16 %v612_v57, %v611_v56  ;;  %v616_v21 = vunpack.c.l.b16 %v520_v17  ;;  %v457_v25 = vadd.f32 %v2525_v36, %v421_v22 }
  0x3f   : > { %v458_v26 = vadd.f32 %v2525_v36, %v422_v23  ;;  %v460_v42 = vadd.f32 %v2525_v36, %v424_v37  ;;  %v425_v51 = vmul.f32 %v2518_v28, %v2171_v43  ;;  %v426_v54 = vmul.f32 %v2518_v28, %v2172_v50 }
  0x40   : > { %v489_v29 = vmax.f32 %v457_v25, 0.0 }
  0x41   : > { %v490_v30 = vmax.f32 %v458_v26, 0.0  ;;  %v492_v49 = vmax.f32 %v460_v42, 0.0  ;;  %v461_v55 = vadd.f32 %v2525_v36, %v425_v51 }
  0x42   : > { %838 = vmatmul.bf16.gmra.mxu0 %v634_v2  ;;  %927 = vmatmul.bf16.gmra.mxu1 %v634_v2  ;;  %v521_v33 = vpack.c.bf16 %v489_v29, %v489_v29 }
  0x43   : > { %1016 = vmatmul.bf16.gmra.mxu2 %v634_v2  ;;  %1105 = vmatmul.bf16.gmra.mxu3 %v634_v2  ;;  %v517_v2 = vpack.c.bf16 %v485_v63, %v485_v63  ;;  %v522_v34 = vpack.c.bf16 %v490_v30, %v490_v30  ;;  %v524_v53 = vpack.c.bf16 %v492_v49, %v492_v49 }
  0x44   : > { %v617_v38 = vunpack.c.l.b16 %v521_v33 }
  0x45   : > { %v613_v6 = vunpack.c.l.b16 %v517_v2  ;;  %v618_v39 = vunpack.c.l.b16 %v522_v34  ;;  %v620_v5 = vunpack.c.l.b16 %v524_v53 }
  0x47   : > { %v639_v10 = vpack.c.b16 %v614_v7, %v613_v6  ;;  %v641_v44 = vpack.c.b16 %v618_v39, %v617_v38  ;;  %v462_v6 = vadd.f32 %v2525_v36, %v426_v54  ;;  %v493_v7 = vmax.f32 %v461_v55, 0.0 }
  0x49   : > { %v494_v12 = vmax.f32 %v462_v6, 0.0 }
  0x4b   : > { %v526_v37 = vpack.c.bf16 %v494_v12, %v494_v12 }
  0x52   : > { %843 = vmatmul.bf16.gmra.mxu0 %v635_v16  ;;  %932 = vmatmul.bf16.gmra.mxu1 %v635_v16 }
  0x53   : > { %1021 = vmatmul.bf16.gmra.mxu2 %v635_v16  ;;  %1110 = vmatmul.bf16.gmra.mxu3 %v635_v16  ;;  %v519_v16 = vpack.c.bf16 %v487_v13, %v487_v13  ;;  %v525_v13 = vpack.c.bf16 %v493_v7, %v493_v7 }
  0x55   : > { %v615_v20 = vunpack.c.l.b16 %v519_v16  ;;  %v621_v43 = vunpack.c.l.b16 %v525_v13 }
  0x57   : > { %v640_v24 = vpack.c.b16 %v616_v21, %v615_v20 }
  0x62   : > { %848 = vmatmul.bf16.gmra.mxu0 %v636_v31  ;;  %937 = vmatmul.bf16.gmra.mxu1 %v636_v31 }
  0x63   : > { %1026 = vmatmul.bf16.gmra.mxu2 %v636_v31  ;;  %1115 = vmatmul.bf16.gmra.mxu3 %v636_v31  ;;  %v2167_v31 = vunpack.c.l.bf16 %v2201_v27 }
  0x65   : > { %v423_v35 = vmul.f32 %v2518_v28, %v2167_v31 }
  0x67   : > { %v459_v41 = vadd.f32 %v2525_v36, %v423_v35 }
  0x69   : > { %v491_v47 = vmax.f32 %v459_v41, 0.0 }
  0x6b   : > { %v523_v52 = vpack.c.bf16 %v491_v47, %v491_v47 }
  0x6d   : > { %v619_v63 = vunpack.c.l.b16 %v523_v52 }
  0x6f   : > { %v642_v11 = vpack.c.b16 %v620_v5, %v619_v63 }
  0x72   : > { %853 = vmatmul.bf16.gmra.mxu0 %v637_v46  ;;  %942 = vmatmul.bf16.gmra.mxu1 %v637_v46 }
  0x73   : > { %1031 = vmatmul.bf16.gmra.mxu2 %v637_v46  ;;  %1120 = vmatmul.bf16.gmra.mxu3 %v637_v46 }
  0x82   : > { %858 = vmatmul.bf16.gmra.mxu0 %v638_v60  ;;  %947 = vmatmul.bf16.gmra.mxu1 %v638_v60 }
  0x83   : > { %1036 = vmatmul.bf16.gmra.mxu2 %v638_v60  ;;  %1125 = vmatmul.bf16.gmra.mxu3 %v638_v60 }
  0x92   : > { %863 = vmatmul.bf16.gmra.mxu0 %v639_v10  ;;  %952 = vmatmul.bf16.gmra.mxu1 %v639_v10 }
  0x93   : > { %1041 = vmatmul.bf16.gmra.mxu2 %v639_v10  ;;  %1130 = vmatmul.bf16.gmra.mxu3 %v639_v10  ;;  %v2203_v10 = vld [vmem:[%s2513_s12 + $0x58] sm:$0xff]  }
  0x94   : > { %v2175_v18 = vunpack.c.l.bf16 %v2203_v10  ;;  %v2176_v19 = vunpack.c.h.bf16 %v2203_v10 }
  0x96   : > { %v427_v38 = vmul.f32 %v2518_v28, %v2175_v18  ;;  %v428_v40 = vmul.f32 %v2518_v28, %v2176_v19 }
  0xa2   : > { %868 = vmatmul.bf16.gmra.mxu0 %v640_v24  ;;  %957 = vmatmul.bf16.gmra.mxu1 %v640_v24 }
  0xa3   : > { %1046 = vmatmul.bf16.gmra.mxu2 %v640_v24  ;;  %1135 = vmatmul.bf16.gmra.mxu3 %v640_v24 }
  0xaf   : > { %v834_v45 = vpop.f32.mrf.mxu0  ;;  %v923_v46 = vpop.f32.mrf.mxu1 }
  0xb0   : > { %v1181_v48 = vpack.c.bf16 %v923_v46, %v834_v45  ;;  %v1476_v56 = vmul.f32 %v834_v45, %v834_v45  ;;  %v1477_v59 = vmul.f32 %v923_v46, %v923_v46 }
  0xb2   : > { %1245 = vst [vmem:[%s2580_s20] sm:$0xff] %v1181_v48  ;;  %873 = vmatmul.bf16.gmra.mxu0 %v641_v44  ;;  %962 = vmatmul.bf16.gmra.mxu1 %v641_v44 }
  0xb3   : > { %1051 = vmatmul.bf16.gmra.mxu2 %v641_v44  ;;  %1140 = vmatmul.bf16.gmra.mxu3 %v641_v44  ;;  %v622_v44 = vunpack.c.l.b16 %v526_v37 }
  0xb6   : > { %v1012_v57 = vpop.f32.mrf.mxu2  ;;  %v1101_v58 = vpop.f32.mrf.mxu3 }
  0xb7   : > { %v1182_v60 = vpack.c.bf16 %v1101_v58, %v1012_v57  ;;  %v836_v61 = vpop.f32.mrf.mxu0  ;;  %v925_v62 = vpop.f32.mrf.mxu1  ;;  %v1478_v14 = vmul.f32 %v1012_v57, %v1012_v57  ;;  %v1479_v15 = vmul.f32 %v1101_v58, %v1101_v58 }
  0xb8   : > { %v1480_v0 = vmul.f32 %v836_v61, %v836_v61  ;;  %v1183_v1 = vpack.c.bf16 %v925_v62, %v836_v61  ;;  %v1481_v2 = vmul.f32 %v925_v62, %v925_v62  ;;  %v1309_v3 = vadd.f32 %v836_v61, %v834_v45 }
  0xb9   : > { %1246 = vst [vmem:[%s2580_s20 + $0x8] sm:$0xff] %v1182_v60  ;;  %v1346_v4 = vadd.f32 %v925_v62, %v923_v46  ;;  %v463_v45 = vadd.f32 %v2525_v36, %v427_v38 }
  0xba   : > { %1247 = vst [vmem:[%s2580_s20 + $0x10] sm:$0xff] %v1183_v1  ;;  %v1604_v8 = vadd.f32 %v1480_v0, %v1476_v56  ;;  %v1641_v9 = vadd.f32 %v1481_v2, %v1477_v59  ;;  %v464_v59 = vadd.f32 %v2525_v36, %v428_v40  ;;  %v2204_v0 = vld [vmem:[%s2513_s12 + $0x60] sm:$0xff]   ;;  %v643_v1 = vpack.c.b16 %v622_v44, %v621_v43 }
  0xbb   : > { %v495_v63 = vmax.f32 %v463_v45, 0.0  ;;  %v2179_v6 = vunpack.c.l.bf16 %v2204_v0  ;;  %v2180_v7 = vunpack.c.h.bf16 %v2204_v0 }
  0xbd   : > { %v527_v5 = vpack.c.bf16 %v495_v63, %v495_v63  ;;  %v2205_v63 = vld [vmem:[%s2513_s12 + $0x68] sm:$0xff]  }
  0xbe   : > { %v1014_v16 = vpop.f32.mrf.mxu2  ;;  %v1103_v17 = vpop.f32.mrf.mxu3 }
  0xbf   : > { %v1482_v20 = vmul.f32 %v1014_v16, %v1014_v16  ;;  %v1184_v21 = vpack.c.bf16 %v1103_v17, %v1014_v16  ;;  %v1483_v22 = vmul.f32 %v1103_v17, %v1103_v17  ;;  %v839_v23 = vpop.f32.mrf.mxu0  ;;  %v928_v24 = vpop.f32.mrf.mxu1  ;;  %v1383_v25 = vadd.f32 %v1014_v16, %v1012_v57 }
  0xc0   : > { %v1310_v26 = vadd.f32 %v1309_v3, %v839_v23  ;;  %v1484_v27 = vmul.f32 %v839_v23, %v839_v23  ;;  %v1185_v29 = vpack.c.bf16 %v928_v24, %v839_v23  ;;  %v1347_v30 = vadd.f32 %v1346_v4, %v928_v24 }
  0xc1   : > { %1248 = vst [vmem:[%s2580_s20 + $0x18] sm:$0xff] %v1184_v21  ;;  %v1485_v31 = vmul.f32 %v928_v24, %v928_v24  ;;  %v1678_v32 = vadd.f32 %v1482_v20, %v1478_v14  ;;  %v1420_v33 = vadd.f32 %v1103_v17, %v1101_v58  ;;  %v1715_v34 = vadd.f32 %v1483_v22, %v1479_v15 }
  0xc2   : > { %v1605_v35 = vadd.f32 %v1604_v8, %v1484_v27  ;;  %1249 = vst [vmem:[%s2580_s20 + $0x20] sm:$0xff] %v1185_v29  ;;  %878 = vmatmul.bf16.gmra.mxu0 %v642_v11  ;;  %967 = vmatmul.bf16.gmra.mxu1 %v642_v11  ;;  %v496_v4 = vmax.f32 %v464_v59, 0.0  ;;  %v429_v24 = vmul.f32 %v2518_v28, %v2179_v6 }
  0xc3   : > { %v1642_v39 = vadd.f32 %v1641_v9, %v1485_v31  ;;  %1056 = vmatmul.bf16.gmra.mxu2 %v642_v11  ;;  %1145 = vmatmul.bf16.gmra.mxu3 %v642_v11 }
  0xc4   : > { %v528_v23 = vpack.c.bf16 %v496_v4, %v496_v4 }
  0xc6   : > { %v1017_v41 = vpop.f32.mrf.mxu2  ;;  %v1106_v42 = vpop.f32.mrf.mxu3  ;;  %v624_v31 = vunpack.c.l.b16 %v528_v23 }
  0xc7   : > { %v1384_v46 = vadd.f32 %v1383_v25, %v1017_v41  ;;  %v1486_v47 = vmul.f32 %v1017_v41, %v1017_v41  ;;  %v1186_v48 = vpack.c.bf16 %v1106_v42, %v1017_v41  ;;  %v1421_v49 = vadd.f32 %v1420_v33, %v1106_v42  ;;  %v841_v50 = vpop.f32.mrf.mxu0  ;;  %v930_v51 = vpop.f32.mrf.mxu1 }
  0xc8   : > { %v1487_v52 = vmul.f32 %v1106_v42, %v1106_v42  ;;  %v1488_v53 = vmul.f32 %v841_v50, %v841_v50  ;;  %v1187_v54 = vpack.c.bf16 %v930_v51, %v841_v50  ;;  %v1489_v55 = vmul.f32 %v930_v51, %v930_v51 }
  0xc9   : > { %v1679_v56 = vadd.f32 %v1678_v32, %v1486_v47  ;;  %1250 = vst [vmem:[%s2580_s20 + $0x28] sm:$0xff] %v1186_v48  ;;  %v1311_v57 = vadd.f32 %v1310_v26, %v841_v50  ;;  %v1348_v58 = vadd.f32 %v1347_v30, %v930_v51  ;;  %v430_v26 = vmul.f32 %v2518_v28, %v2180_v7 }
  0xca   : > { %v1716_v60 = vadd.f32 %v1715_v34, %v1487_v52  ;;  %1251 = vst [vmem:[%s2580_s20 + $0x30] sm:$0xff] %v1187_v54  ;;  %v1606_v61 = vadd.f32 %v1605_v35, %v1488_v53  ;;  %v1643_v62 = vadd.f32 %v1642_v39, %v1489_v55  ;;  %v623_v30 = vunpack.c.l.b16 %v527_v5 }
  0xcb   : > { %v465_v32 = vadd.f32 %v2525_v36, %v429_v24  ;;  %v466_v47 = vadd.f32 %v2525_v36, %v430_v26 }
  0xcc   : > { %v644_v54 = vpack.c.b16 %v624_v31, %v623_v30 }
  0xcd   : > { %v497_v51 = vmax.f32 %v465_v32, 0.0  ;;  %v498_v55 = vmax.f32 %v466_v47, 0.0 }
  0xce   : > { %v1019_v2 = vpop.f32.mrf.mxu2  ;;  %v1108_v3 = vpop.f32.mrf.mxu3 }
  0xcf   : > { %v1490_v8 = vmul.f32 %v1019_v2, %v1019_v2  ;;  %v1188_v9 = vpack.c.bf16 %v1108_v3, %v1019_v2  ;;  %v1491_v10 = vmul.f32 %v1108_v3, %v1108_v3  ;;  %v844_v11 = vpop.f32.mrf.mxu0  ;;  %v933_v12 = vpop.f32.mrf.mxu1  ;;  %v1385_v13 = vadd.f32 %v1384_v46, %v1019_v2 }
  0xd0   : > { %v1312_v14 = vadd.f32 %v1311_v57, %v844_v11  ;;  %v1492_v15 = vmul.f32 %v844_v11, %v844_v11  ;;  %v1189_v16 = vpack.c.bf16 %v933_v12, %v844_v11  ;;  %v1349_v17 = vadd.f32 %v1348_v58, %v933_v12 }
  0xd1   : > { %1252 = vst [vmem:[%s2580_s20 + $0x38] sm:$0xff] %v1188_v9  ;;  %v1493_v18 = vmul.f32 %v933_v12, %v933_v12  ;;  %v1680_v19 = vadd.f32 %v1679_v56, %v1490_v8  ;;  %v1422_v20 = vadd.f32 %v1421_v49, %v1108_v3  ;;  %v1717_v21 = vadd.f32 %v1716_v60, %v1491_v10 }
  0xd2   : > { %v1607_v22 = vadd.f32 %v1606_v61, %v1492_v15  ;;  %1253 = vst [vmem:[%s2580_s20 + $0x40] sm:$0xff] %v1189_v16  ;;  %883 = vmatmul.bf16.gmra.mxu0 %v643_v1  ;;  %972 = vmatmul.bf16.gmra.mxu1 %v643_v1  ;;  %v529_v56 = vpack.c.bf16 %v497_v51, %v497_v51  ;;  %v2183_v10 = vunpack.c.l.bf16 %v2205_v63  ;;  %v2184_v12 = vunpack.c.h.bf16 %v2205_v63 }
  0xd3   : > { %v1644_v25 = vadd.f32 %v1643_v62, %v1493_v18  ;;  %1061 = vmatmul.bf16.gmra.mxu2 %v643_v1  ;;  %1150 = vmatmul.bf16.gmra.mxu3 %v643_v1  ;;  %v530_v9 = vpack.c.bf16 %v498_v55, %v498_v55 }
  0xd4   : > { %v625_v15 = vunpack.c.l.b16 %v529_v56  ;;  %v432_v32 = vmul.f32 %v2518_v28, %v2184_v12 }
  0xd5   : > { %v626_v16 = vunpack.c.l.b16 %v530_v9 }
  0xd6   : > { %v1022_v27 = vpop.f32.mrf.mxu2  ;;  %v1111_v29 = vpop.f32.mrf.mxu3 }
  0xd7   : > { %v1386_v33 = vadd.f32 %v1385_v13, %v1022_v27  ;;  %v1494_v34 = vmul.f32 %v1022_v27, %v1022_v27  ;;  %v1190_v35 = vpack.c.bf16 %v1111_v29, %v1022_v27  ;;  %v1423_v37 = vadd.f32 %v1422_v20, %v1111_v29  ;;  %v846_v38 = vpop.f32.mrf.mxu0  ;;  %v935_v39 = vpop.f32.mrf.mxu1 }
  0xd8   : > { %v1495_v40 = vmul.f32 %v1111_v29, %v1111_v29  ;;  %v1496_v41 = vmul.f32 %v846_v38, %v846_v38  ;;  %v1191_v42 = vpack.c.bf16 %v935_v39, %v846_v38  ;;  %v1497_v43 = vmul.f32 %v935_v39, %v935_v39 }
  0xd9   : > { %v1681_v44 = vadd.f32 %v1680_v19, %v1494_v34  ;;  %1254 = vst [vmem:[%s2580_s20 + $0x48] sm:$0xff] %v1190_v35  ;;  %v1313_v45 = vadd.f32 %v1312_v14, %v846_v38  ;;  %v1350_v46 = vadd.f32 %v1349_v17, %v935_v39  ;;  %v431_v17 = vmul.f32 %v2518_v28, %v2183_v10 }
  0xda   : > { %v1718_v48 = vadd.f32 %v1717_v21, %v1495_v40  ;;  %1255 = vst [vmem:[%s2580_s20 + $0x50] sm:$0xff] %v1191_v42  ;;  %v1608_v49 = vadd.f32 %v1607_v22, %v1496_v41  ;;  %v1645_v50 = vadd.f32 %v1644_v25, %v1497_v43  ;;  %v645_v40 = vpack.c.b16 %v626_v16, %v625_v15 }
  0xdb   : > { %v468_v41 = vadd.f32 %v2525_v36, %v432_v32 }
  0xde   : > { %v1024_v52 = vpop.f32.mrf.mxu2  ;;  %v1113_v53 = vpop.f32.mrf.mxu3 }
  0xdf   : > { %v1498_v57 = vmul.f32 %v1024_v52, %v1024_v52  ;;  %v1192_v58 = vpack.c.bf16 %v1113_v53, %v1024_v52  ;;  %v1499_v59 = vmul.f32 %v1113_v53, %v1113_v53  ;;  %v849_v60 = vpop.f32.mrf.mxu0  ;;  %v938_v61 = vpop.f32.mrf.mxu1  ;;  %v1387_v62 = vadd.f32 %v1386_v33, %v1024_v52 }
  0xe0   : > { %v1314_v0 = vadd.f32 %v1313_v45, %v849_v60  ;;  %v1500_v1 = vmul.f32 %v849_v60, %v849_v60  ;;  %v1193_v2 = vpack.c.bf16 %v938_v61, %v849_v60  ;;  %v1351_v3 = vadd.f32 %v1350_v46, %v938_v61 }
  0xe1   : > { %1256 = vst [vmem:[%s2580_s20 + $0x58] sm:$0xff] %v1192_v58  ;;  %v1501_v4 = vmul.f32 %v938_v61, %v938_v61  ;;  %v1682_v5 = vadd.f32 %v1681_v44, %v1498_v57  ;;  %v1424_v6 = vadd.f32 %v1423_v37, %v1113_v53  ;;  %v1719_v7 = vadd.f32 %v1718_v48, %v1499_v59 }
  0xe2   : > { %v1609_v8 = vadd.f32 %v1608_v49, %v1500_v1  ;;  %1257 = vst [vmem:[%s2580_s20 + $0x60] sm:$0xff] %v1193_v2  ;;  %888 = vmatmul.bf16.gmra.mxu0 %v644_v54  ;;  %977 = vmatmul.bf16.gmra.mxu1 %v644_v54  ;;  %v467_v37 = vadd.f32 %v2525_v36, %v431_v17  ;;  %v2206_v49 = vld [vmem:[%s2513_s12 + $0x70] sm:$0xff]   ;;  %v500_v59 = vmax.f32 %v468_v41, 0.0 }
  0xe3   : > { %v1646_v11 = vadd.f32 %v1645_v50, %v1501_v4  ;;  %1066 = vmatmul.bf16.gmra.mxu2 %v644_v54  ;;  %1155 = vmatmul.bf16.gmra.mxu3 %v644_v54  ;;  %v2187_v61 = vunpack.c.l.bf16 %v2206_v49  ;;  %v2188_v63 = vunpack.c.h.bf16 %v2206_v49  ;;  %v2207_v49 = vld [vmem:[%s2513_s12 + $0x78] sm:$0xff]  }
  0xe4   : > { %v499_v42 = vmax.f32 %v467_v37, 0.0  ;;  %v532_v2 = vpack.c.bf16 %v500_v59, %v500_v59 }
  0xe5   : > { %v433_v4 = vmul.f32 %v2518_v28, %v2187_v61 }
  0xe6   : > { %v1027_v13 = vpop.f32.mrf.mxu2  ;;  %v1116_v14 = vpop.f32.mrf.mxu3  ;;  %v531_v60 = vpack.c.bf16 %v499_v42, %v499_v42 }
  0xe7   : > { %v1388_v18 = vadd.f32 %v1387_v62, %v1027_v13  ;;  %v1502_v19 = vmul.f32 %v1027_v13, %v1027_v13  ;;  %v1194_v20 = vpack.c.bf16 %v1116_v14, %v1027_v13  ;;  %v1425_v21 = vadd.f32 %v1424_v6, %v1116_v14  ;;  %v851_v22 = vpop.f32.mrf.mxu0  ;;  %v940_v23 = vpop.f32.mrf.mxu1 }
  0xe8   : > { %v1503_v24 = vmul.f32 %v1116_v14, %v1116_v14  ;;  %v1504_v25 = vmul.f32 %v851_v22, %v851_v22  ;;  %v1195_v26 = vpack.c.bf16 %v940_v23, %v851_v22  ;;  %v1505_v27 = vmul.f32 %v940_v23, %v940_v23 }
  0xe9   : > { %v1683_v29 = vadd.f32 %v1682_v5, %v1502_v19  ;;  %1258 = vst [vmem:[%s2580_s20 + $0x68] sm:$0xff] %v1194_v20  ;;  %v1315_v30 = vadd.f32 %v1314_v0, %v851_v22  ;;  %v1352_v31 = vadd.f32 %v1351_v3, %v940_v23  ;;  %v627_v3 = vunpack.c.l.b16 %v531_v60 }
  0xea   : > { %v1720_v33 = vadd.f32 %v1719_v7, %v1503_v24  ;;  %1259 = vst [vmem:[%s2580_s20 + $0x70] sm:$0xff] %v1195_v26  ;;  %v1610_v34 = vadd.f32 %v1609_v8, %v1504_v25  ;;  %v1647_v35 = vadd.f32 %v1646_v11, %v1505_v27  ;;  %v469_v22 = vadd.f32 %v2525_v36, %v433_v4 }
  0xee   : > { %v1029_v38 = vpop.f32.mrf.mxu2  ;;  %v1118_v39 = vpop.f32.mrf.mxu3 }
  0xef   : > { %v1506_v43 = vmul.f32 %v1029_v38, %v1029_v38  ;;  %v1196_v44 = vpack.c.bf16 %v1118_v39, %v1029_v38  ;;  %v1507_v45 = vmul.f32 %v1118_v39, %v1118_v39  ;;  %v854_v46 = vpop.f32.mrf.mxu0  ;;  %v943_v47 = vpop.f32.mrf.mxu1  ;;  %v1389_v48 = vadd.f32 %v1388_v18, %v1029_v38 }
  0xf0   : > { %v1316_v50 = vadd.f32 %v1315_v30, %v854_v46  ;;  %v1508_v51 = vmul.f32 %v854_v46, %v854_v46  ;;  %v1197_v52 = vpack.c.bf16 %v943_v47, %v854_v46  ;;  %v1353_v53 = vadd.f32 %v1352_v31, %v943_v47 }
  0xf1   : > { %1260 = vst [vmem:[%s2580_s20 + $0x78] sm:$0xff] %v1196_v44  ;;  %v1509_v54 = vmul.f32 %v943_v47, %v943_v47  ;;  %v1684_v55 = vadd.f32 %v1683_v29, %v1506_v43  ;;  %v1426_v56 = vadd.f32 %v1425_v21, %v1118_v39  ;;  %v1721_v57 = vadd.f32 %v1720_v33, %v1507_v45 }
  0xf2   : > { %v1611_v58 = vadd.f32 %v1610_v34, %v1508_v51  ;;  %1261 = vst [vmem:[%s2580_s20 + $0x80] sm:$0xff] %v1197_v52  ;;  %893 = vmatmul.bf16.gmra.mxu0 %v645_v40  ;;  %982 = vmatmul.bf16.gmra.mxu1 %v645_v40  ;;  %v434_v18 = vmul.f32 %v2518_v28, %v2188_v63  ;;  %v628_v21 = vunpack.c.l.b16 %v532_v2  ;;  %v501_v29 = vmax.f32 %v469_v22, 0.0 }
  0xf3   : > { %v1648_v62 = vadd.f32 %v1647_v35, %v1509_v54  ;;  %1071 = vmatmul.bf16.gmra.mxu2 %v645_v40  ;;  %1160 = vmatmul.bf16.gmra.mxu3 %v645_v40  ;;  %v2191_v54 = vunpack.c.l.bf16 %v2207_v49 }
  0xf4   : > { %v470_v24 = vadd.f32 %v2525_v36, %v434_v18  ;;  %v646_v27 = vpack.c.b16 %v628_v21, %v627_v3  ;;  %v533_v47 = vpack.c.bf16 %v501_v29, %v501_v29 }
  0xf6   : > { %v1032_v0 = vpop.f32.mrf.mxu2  ;;  %v1121_v1 = vpop.f32.mrf.mxu3  ;;  %v502_v44 = vmax.f32 %v470_v24, 0.0 }
  0xf7   : > { %v1390_v5 = vadd.f32 %v1389_v48, %v1032_v0  ;;  %v1510_v6 = vmul.f32 %v1032_v0, %v1032_v0  ;;  %v1198_v7 = vpack.c.bf16 %v1121_v1, %v1032_v0  ;;  %v1427_v8 = vadd.f32 %v1426_v56, %v1121_v1  ;;  %v856_v9 = vpop.f32.mrf.mxu0  ;;  %v945_v10 = vpop.f32.mrf.mxu1 }
  0xf8   : > { %v1511_v11 = vmul.f32 %v1121_v1, %v1121_v1  ;;  %v1317_v12 = vadd.f32 %v1316_v50, %v856_v9  ;;  %v1512_v13 = vmul.f32 %v856_v9, %v856_v9  ;;  %v1199_v14 = vpack.c.bf16 %v945_v10, %v856_v9 }
  0xf9   : > { %v1685_v15 = vadd.f32 %v1684_v55, %v1510_v6  ;;  %1262 = vst [vmem:[%s2580_s20 + $0x88] sm:$0xff] %v1198_v7  ;;  %v1354_v16 = vadd.f32 %v1353_v53, %v945_v10  ;;  %v1513_v17 = vmul.f32 %v945_v10, %v945_v10  ;;  %v534_v50 = vpack.c.bf16 %v502_v44, %v502_v44 }
  0xfa   : > { %v1722_v19 = vadd.f32 %v1721_v57, %v1511_v11  ;;  %v1612_v20 = vadd.f32 %v1611_v58, %v1512_v13  ;;  %1263 = vst [vmem:[%s2580_s20 + $0x90] sm:$0xff] %v1199_v14  ;;  %v629_v53 = vunpack.c.l.b16 %v533_v47  ;;  %v2192_v55 = vunpack.c.h.bf16 %v2207_v49 }
  0xfb   : > { %v1649_v23 = vadd.f32 %v1648_v62, %v1513_v17 }
  0xfc   : > { %v436_v9 = vmul.f32 %v2518_v28, %v2192_v55 }
  0xfe   : > { %v1034_v25 = vpop.f32.mrf.mxu2  ;;  %v1123_v26 = vpop.f32.mrf.mxu3 }
  0xff   : > { %v1391_v30 = vadd.f32 %v1390_v5, %v1034_v25  ;;  %v1514_v31 = vmul.f32 %v1034_v25, %v1034_v25  ;;  %v1200_v32 = vpack.c.bf16 %v1123_v26, %v1034_v25  ;;  %v1428_v33 = vadd.f32 %v1427_v8, %v1123_v26  ;;  %v859_v34 = vpop.f32.mrf.mxu0  ;;  %v948_v35 = vpop.f32.mrf.mxu1 }
 0x100   : > { %v1515_v37 = vmul.f32 %v1123_v26, %v1123_v26  ;;  %v1318_v38 = vadd.f32 %v1317_v12, %v859_v34  ;;  %v1516_v39 = vmul.f32 %v859_v34, %v859_v34  ;;  %v1201_v40 = vpack.c.bf16 %v948_v35, %v859_v34 }
 0x101   : > { %v1686_v41 = vadd.f32 %v1685_v15, %v1514_v31  ;;  %1264 = vst [vmem:[%s2580_s20 + $0x98] sm:$0xff] %v1200_v32  ;;  %v1355_v42 = vadd.f32 %v1354_v16, %v948_v35  ;;  %v1517_v43 = vmul.f32 %v948_v35, %v948_v35  ;;  %v630_v5 = vunpack.c.l.b16 %v534_v50 }
 0x102   : > { %v1723_v45 = vadd.f32 %v1722_v19, %v1515_v37  ;;  %v1613_v46 = vadd.f32 %v1612_v20, %v1516_v39  ;;  %1265 = vst [vmem:[%s2580_s20 + $0xa0] sm:$0xff] %v1201_v40  ;;  %898 = vmatmul.bf16.gmra.mxu0 %v646_v27  ;;  %987 = vmatmul.bf16.gmra.mxu1 %v646_v27 }
 0x103   : > { %v1650_v48 = vadd.f32 %v1649_v23, %v1517_v43  ;;  %1076 = vmatmul.bf16.gmra.mxu2 %v646_v27  ;;  %1165 = vmatmul.bf16.gmra.mxu3 %v646_v27  ;;  %v435_v8 = vmul.f32 %v2518_v28, %v2191_v54  ;;  %v647_v13 = vpack.c.b16 %v630_v5, %v629_v53 }
 0x104   : > { %v472_v15 = vadd.f32 %v2525_v36, %v436_v9 }
 0x105   : > { %v471_v14 = vadd.f32 %v2525_v36, %v435_v8 }
 0x106   : > { %v1037_v51 = vpop.f32.mrf.mxu2  ;;  %v1126_v52 = vpop.f32.mrf.mxu3  ;;  %v504_v31 = vmax.f32 %v472_v15, 0.0 }
 0x107   : > { %v1392_v56 = vadd.f32 %v1391_v30, %v1037_v51  ;;  %v1518_v57 = vmul.f32 %v1037_v51, %v1037_v51  ;;  %v1202_v58 = vpack.c.bf16 %v1126_v52, %v1037_v51  ;;  %v1429_v59 = vadd.f32 %v1428_v33, %v1126_v52  ;;  %v861_v60 = vpop.f32.mrf.mxu0  ;;  %v950_v61 = vpop.f32.mrf.mxu1 }
 0x108   : > { %v1519_v62 = vmul.f32 %v1126_v52, %v1126_v52  ;;  %v1319_v63 = vadd.f32 %v1318_v38, %v861_v60  ;;  %v1520_v0 = vmul.f32 %v861_v60, %v861_v60  ;;  %v1203_v1 = vpack.c.bf16 %v950_v61, %v861_v60 }
 0x109   : > { %v1687_v2 = vadd.f32 %v1686_v41, %v1518_v57  ;;  %1266 = vst [vmem:[%s2580_s20 + $0xa8] sm:$0xff] %v1202_v58  ;;  %v1356_v3 = vadd.f32 %v1355_v42, %v950_v61  ;;  %v1521_v4 = vmul.f32 %v950_v61, %v950_v61  ;;  %v503_v36 = vmax.f32 %v471_v14, 0.0 }
 0x10a   : > { %v1724_v6 = vadd.f32 %v1723_v45, %v1519_v62  ;;  %v1614_v7 = vadd.f32 %v1613_v46, %v1520_v0  ;;  %1267 = vst [vmem:[%s2580_s20 + $0xb0] sm:$0xff] %v1203_v1  ;;  %v536_v37 = vpack.c.bf16 %v504_v31, %v504_v31 }
 0x10b   : > { %v1651_v10 = vadd.f32 %v1650_v48, %v1521_v4  ;;  %v535_v35 = vpack.c.bf16 %v503_v36, %v503_v36 }
 0x10c   : > { %v632_v54 = vunpack.c.l.b16 %v536_v37 }
 0x10d   : > { %v631_v53 = vunpack.c.l.b16 %v535_v35 }
 0x10e   : > { %v1039_v11 = vpop.f32.mrf.mxu2  ;;  %v1128_v12 = vpop.f32.mrf.mxu3 }
 0x10f   : > { %v1393_v16 = vadd.f32 %v1392_v56, %v1039_v11  ;;  %v1522_v17 = vmul.f32 %v1039_v11, %v1039_v11  ;;  %v1204_v18 = vpack.c.bf16 %v1128_v12, %v1039_v11  ;;  %v1430_v19 = vadd.f32 %v1429_v59, %v1128_v12  ;;  %v864_v20 = vpop.f32.mrf.mxu0  ;;  %v953_v21 = vpop.f32.mrf.mxu1 }
 0x110   : > { %v1523_v22 = vmul.f32 %v1128_v12, %v1128_v12  ;;  %v1320_v23 = vadd.f32 %v1319_v63, %v864_v20  ;;  %v1524_v24 = vmul.f32 %v864_v20, %v864_v20  ;;  %v1205_v28 = vpack.c.bf16 %v953_v21, %v864_v20 }
 0x111   : > { %v1688_v25 = vadd.f32 %v1687_v2, %v1522_v17  ;;  %1268 = vst [vmem:[%s2580_s20 + $0xb8] sm:$0xff] %v1204_v18  ;;  %v1357_v26 = vadd.f32 %v1356_v3, %v953_v21  ;;  %v1525_v27 = vmul.f32 %v953_v21, %v953_v21  ;;  %v648_v58 = vpack.c.b16 %v632_v54, %v631_v53 }
 0x112   : > { %v1725_v29 = vadd.f32 %v1724_v6, %v1523_v22  ;;  %v1615_v30 = vadd.f32 %v1614_v7, %v1524_v24  ;;  %1269 = vst [vmem:[%s2580_s20 + $0xc0] sm:$0xff] %v1205_v28  ;;  %903 = vmatmul.bf16.gmra.mxu0 %v647_v13  ;;  %992 = vmatmul.bf16.gmra.mxu1 %v647_v13 }
 0x113   : > { %v1652_v32 = vadd.f32 %v1651_v10, %v1525_v27  ;;  %1081 = vmatmul.bf16.gmra.mxu2 %v647_v13  ;;  %1170 = vmatmul.bf16.gmra.mxu3 %v647_v13 }
 0x116   : > { %v1042_v33 = vpop.f32.mrf.mxu2  ;;  %v1131_v34 = vpop.f32.mrf.mxu3 }
 0x117   : > { %v1394_v38 = vadd.f32 %v1393_v16, %v1042_v33  ;;  %v1526_v39 = vmul.f32 %v1042_v33, %v1042_v33  ;;  %v1206_v40 = vpack.c.bf16 %v1131_v34, %v1042_v33  ;;  %v1431_v41 = vadd.f32 %v1430_v19, %v1131_v34  ;;  %v866_v42 = vpop.f32.mrf.mxu0  ;;  %v955_v43 = vpop.f32.mrf.mxu1 }
 0x118   : > { %v1527_v44 = vmul.f32 %v1131_v34, %v1131_v34  ;;  %v1321_v45 = vadd.f32 %v1320_v23, %v866_v42  ;;  %v1528_v46 = vmul.f32 %v866_v42, %v866_v42  ;;  %v1207_v47 = vpack.c.bf16 %v955_v43, %v866_v42 }
 0x119   : > { %v1689_v48 = vadd.f32 %v1688_v25, %v1526_v39  ;;  %1270 = vst [vmem:[%s2580_s20 + $0xc8] sm:$0xff] %v1206_v40  ;;  %v1358_v49 = vadd.f32 %v1357_v26, %v955_v43  ;;  %v1529_v50 = vmul.f32 %v955_v43, %v955_v43 }
 0x11a   : > { %v1726_v51 = vadd.f32 %v1725_v29, %v1527_v44  ;;  %v1616_v52 = vadd.f32 %v1615_v30, %v1528_v46  ;;  %1271 = vst [vmem:[%s2580_s20 + $0xd0] sm:$0xff] %v1207_v47 }
 0x11b   : > { %v1653_v55 = vadd.f32 %v1652_v32, %v1529_v50 }
 0x11e   : > { %v1044_v56 = vpop.f32.mrf.mxu2  ;;  %v1133_v57 = vpop.f32.mrf.mxu3 }
 0x11f   : > { %v1395_v59 = vadd.f32 %v1394_v38, %v1044_v56  ;;  %v1530_v60 = vmul.f32 %v1044_v56, %v1044_v56  ;;  %v1208_v61 = vpack.c.bf16 %v1133_v57, %v1044_v56  ;;  %v1432_v62 = vadd.f32 %v1431_v41, %v1133_v57  ;;  %v869_v63 = vpop.f32.mrf.mxu0  ;;  %v958_v0 = vpop.f32.mrf.mxu1 }
 0x120   : > { %v1531_v1 = vmul.f32 %v1133_v57, %v1133_v57  ;;  %v1322_v2 = vadd.f32 %v1321_v45, %v869_v63  ;;  %v1532_v3 = vmul.f32 %v869_v63, %v869_v63  ;;  %v1209_v4 = vpack.c.bf16 %v958_v0, %v869_v63 }
 0x121   : > { %v1690_v5 = vadd.f32 %v1689_v48, %v1530_v60  ;;  %1272 = vst [vmem:[%s2580_s20 + $0xd8] sm:$0xff] %v1208_v61  ;;  %v1359_v6 = vadd.f32 %v1358_v49, %v958_v0  ;;  %v1533_v7 = vmul.f32 %v958_v0, %v958_v0 }
 0x122   : > { %v1727_v8 = vadd.f32 %v1726_v51, %v1531_v1  ;;  %v1617_v9 = vadd.f32 %v1616_v52, %v1532_v3  ;;  %1273 = vst [vmem:[%s2580_s20 + $0xe0] sm:$0xff] %v1209_v4  ;;  %908 = vmatmul.bf16.gmra.mxu0 %v648_v58  ;;  %997 = vmatmul.bf16.gmra.mxu1 %v648_v58 }
 0x123   : > { %v1654_v10 = vadd.f32 %v1653_v55, %v1533_v7  ;;  %1086 = vmatmul.bf16.gmra.mxu2 %v648_v58  ;;  %1175 = vmatmul.bf16.gmra.mxu3 %v648_v58 }
 0x126   : > { %v1047_v11 = vpop.f32.mrf.mxu2  ;;  %v1136_v12 = vpop.f32.mrf.mxu3 }
 0x127   : > { %v1396_v13 = vadd.f32 %v1395_v59, %v1047_v11  ;;  %v1534_v14 = vmul.f32 %v1047_v11, %v1047_v11  ;;  %v1210_v15 = vpack.c.bf16 %v1136_v12, %v1047_v11  ;;  %v1433_v16 = vadd.f32 %v1432_v62, %v1136_v12  ;;  %v871_v17 = vpop.f32.mrf.mxu0  ;;  %v960_v18 = vpop.f32.mrf.mxu1 }
 0x128   : > { %v1535_v19 = vmul.f32 %v1136_v12, %v1136_v12  ;;  %v1323_v20 = vadd.f32 %v1322_v2, %v871_v17  ;;  %v1536_v21 = vmul.f32 %v871_v17, %v871_v17  ;;  %v1211_v22 = vpack.c.bf16 %v960_v18, %v871_v17 }
 0x129   : > { %v1691_v23 = vadd.f32 %v1690_v5, %v1534_v14  ;;  %1274 = vst [vmem:[%s2580_s20 + $0xe8] sm:$0xff] %v1210_v15  ;;  %v1360_v24 = vadd.f32 %v1359_v6, %v960_v18  ;;  %v1537_v28 = vmul.f32 %v960_v18, %v960_v18 }
 0x12a   : > { %v1728_v25 = vadd.f32 %v1727_v8, %v1535_v19  ;;  %v1618_v26 = vadd.f32 %v1617_v9, %v1536_v21  ;;  %1275 = vst [vmem:[%s2580_s20 + $0xf0] sm:$0xff] %v1211_v22 }
 0x12b   : > { %v1655_v27 = vadd.f32 %v1654_v10, %v1537_v28 }
 0x12e   : > { %v1049_v29 = vpop.f32.mrf.mxu2  ;;  %v1138_v30 = vpop.f32.mrf.mxu3 }
 0x12f   : > { %v1397_v36 = vadd.f32 %v1396_v13, %v1049_v29  ;;  %v1538_v31 = vmul.f32 %v1049_v29, %v1049_v29  ;;  %v1212_v32 = vpack.c.bf16 %v1138_v30, %v1049_v29  ;;  %v1434_v33 = vadd.f32 %v1433_v16, %v1138_v30  ;;  %v874_v34 = vpop.f32.mrf.mxu0  ;;  %v963_v35 = vpop.f32.mrf.mxu1 }
 0x130   : > { %v1539_v37 = vmul.f32 %v1138_v30, %v1138_v30  ;;  %v1324_v38 = vadd.f32 %v1323_v20, %v874_v34  ;;  %v1540_v39 = vmul.f32 %v874_v34, %v874_v34  ;;  %v1213_v40 = vpack.c.bf16 %v963_v35, %v874_v34 }
 0x131   : > { %v1692_v41 = vadd.f32 %v1691_v23, %v1538_v31  ;;  %1276 = vst [vmem:[%s2580_s20 + $0xf8] sm:$0xff] %v1212_v32  ;;  %v1361_v42 = vadd.f32 %v1360_v24, %v963_v35  ;;  %v1541_v43 = vmul.f32 %v963_v35, %v963_v35 }
 0x132   : > { %v1729_v44 = vadd.f32 %v1728_v25, %v1539_v37  ;;  %v1619_v45 = vadd.f32 %v1618_v26, %v1540_v39  ;;  %1277 = vst [vmem:[%s2580_s20 + $0x100] sm:$0xff] %v1213_v40 }
 0x133   : > { %v1656_v46 = vadd.f32 %v1655_v27, %v1541_v43 }
 0x136   : > { %v1052_v47 = vpop.f32.mrf.mxu2  ;;  %v1141_v48 = vpop.f32.mrf.mxu3 }
 0x137   : > { %v1398_v49 = vadd.f32 %v1397_v36, %v1052_v47  ;;  %v1542_v50 = vmul.f32 %v1052_v47, %v1052_v47  ;;  %v1214_v51 = vpack.c.bf16 %v1141_v48, %v1052_v47  ;;  %v1435_v52 = vadd.f32 %v1434_v33, %v1141_v48  ;;  %v876_v53 = vpop.f32.mrf.mxu0  ;;  %v965_v54 = vpop.f32.mrf.mxu1 }
 0x138   : > { %v1543_v55 = vmul.f32 %v1141_v48, %v1141_v48  ;;  %v1325_v56 = vadd.f32 %v1324_v38, %v876_v53  ;;  %v1544_v57 = vmul.f32 %v876_v53, %v876_v53  ;;  %v1215_v58 = vpack.c.bf16 %v965_v54, %v876_v53 }
 0x139   : > { %v1693_v59 = vadd.f32 %v1692_v41, %v1542_v50  ;;  %1278 = vst [vmem:[%s2580_s20 + $0x108] sm:$0xff] %v1214_v51  ;;  %v1362_v60 = vadd.f32 %v1361_v42, %v965_v54  ;;  %v1545_v61 = vmul.f32 %v965_v54, %v965_v54 }
 0x13a   : > { %v1730_v62 = vadd.f32 %v1729_v44, %v1543_v55  ;;  %v1620_v63 = vadd.f32 %v1619_v45, %v1544_v57  ;;  %1279 = vst [vmem:[%s2580_s20 + $0x110] sm:$0xff] %v1215_v58 }
 0x13b   : > { %v1657_v0 = vadd.f32 %v1656_v46, %v1545_v61 }
 0x13e   : > { %v1054_v1 = vpop.f32.mrf.mxu2  ;;  %v1143_v2 = vpop.f32.mrf.mxu3 }
 0x13f   : > { %v1399_v3 = vadd.f32 %v1398_v49, %v1054_v1  ;;  %v1546_v4 = vmul.f32 %v1054_v1, %v1054_v1  ;;  %v1216_v5 = vpack.c.bf16 %v1143_v2, %v1054_v1  ;;  %v1436_v6 = vadd.f32 %v1435_v52, %v1143_v2  ;;  %v879_v7 = vpop.f32.mrf.mxu0  ;;  %v968_v8 = vpop.f32.mrf.mxu1 }
 0x140   : > { %v1547_v9 = vmul.f32 %v1143_v2, %v1143_v2  ;;  %v1326_v10 = vadd.f32 %v1325_v56, %v879_v7  ;;  %v1548_v11 = vmul.f32 %v879_v7, %v879_v7  ;;  %v1217_v12 = vpack.c.bf16 %v968_v8, %v879_v7 }
 0x141   : > { %v1694_v13 = vadd.f32 %v1693_v59, %v1546_v4  ;;  %1280 = vst [vmem:[%s2580_s20 + $0x118] sm:$0xff] %v1216_v5  ;;  %v1363_v14 = vadd.f32 %v1362_v60, %v968_v8  ;;  %v1549_v15 = vmul.f32 %v968_v8, %v968_v8 }
 0x142   : > { %v1731_v16 = vadd.f32 %v1730_v62, %v1547_v9  ;;  %v1621_v17 = vadd.f32 %v1620_v63, %v1548_v11  ;;  %1281 = vst [vmem:[%s2580_s20 + $0x120] sm:$0xff] %v1217_v12 }
 0x143   : > { %v1658_v18 = vadd.f32 %v1657_v0, %v1549_v15 }
 0x146   : > { %v1057_v19 = vpop.f32.mrf.mxu2  ;;  %v1146_v20 = vpop.f32.mrf.mxu3 }
 0x147   : > { %v1400_v21 = vadd.f32 %v1399_v3, %v1057_v19  ;;  %v1550_v22 = vmul.f32 %v1057_v19, %v1057_v19  ;;  %v1218_v23 = vpack.c.bf16 %v1146_v20, %v1057_v19  ;;  %v1437_v24 = vadd.f32 %v1436_v6, %v1146_v20  ;;  %v881_v28 = vpop.f32.mrf.mxu0  ;;  %v970_v25 = vpop.f32.mrf.mxu1 }
 0x148   : > { %v1551_v26 = vmul.f32 %v1146_v20, %v1146_v20  ;;  %v1327_v27 = vadd.f32 %v1326_v10, %v881_v28  ;;  %v1552_v29 = vmul.f32 %v881_v28, %v881_v28  ;;  %v1219_v30 = vpack.c.bf16 %v970_v25, %v881_v28 }
 0x149   : > { %v1695_v36 = vadd.f32 %v1694_v13, %v1550_v22  ;;  %1282 = vst [vmem:[%s2580_s20 + $0x128] sm:$0xff] %v1218_v23  ;;  %v1364_v31 = vadd.f32 %v1363_v14, %v970_v25  ;;  %v1553_v32 = vmul.f32 %v970_v25, %v970_v25 }
 0x14a   : > { %v1732_v33 = vadd.f32 %v1731_v16, %v1551_v26  ;;  %v1622_v34 = vadd.f32 %v1621_v17, %v1552_v29  ;;  %1283 = vst [vmem:[%s2580_s20 + $0x130] sm:$0xff] %v1219_v30 }
 0x14b   : > { %v1659_v35 = vadd.f32 %v1658_v18, %v1553_v32 }
 0x14e   : > { %v1059_v37 = vpop.f32.mrf.mxu2  ;;  %v1148_v38 = vpop.f32.mrf.mxu3 }
 0x14f   : > { %v1401_v39 = vadd.f32 %v1400_v21, %v1059_v37  ;;  %v1554_v40 = vmul.f32 %v1059_v37, %v1059_v37  ;;  %v1220_v41 = vpack.c.bf16 %v1148_v38, %v1059_v37  ;;  %v1438_v42 = vadd.f32 %v1437_v24, %v1148_v38  ;;  %v884_v43 = vpop.f32.mrf.mxu0  ;;  %v973_v44 = vpop.f32.mrf.mxu1 }
 0x150   : > { %v1555_v45 = vmul.f32 %v1148_v38, %v1148_v38  ;;  %v1328_v46 = vadd.f32 %v1327_v27, %v884_v43  ;;  %v1556_v47 = vmul.f32 %v884_v43, %v884_v43  ;;  %v1221_v48 = vpack.c.bf16 %v973_v44, %v884_v43 }
 0x151   : > { %v1696_v49 = vadd.f32 %v1695_v36, %v1554_v40  ;;  %1284 = vst [vmem:[%s2580_s20 + $0x138] sm:$0xff] %v1220_v41  ;;  %v1365_v50 = vadd.f32 %v1364_v31, %v973_v44  ;;  %v1557_v51 = vmul.f32 %v973_v44, %v973_v44 }
 0x152   : > { %v1733_v52 = vadd.f32 %v1732_v33, %v1555_v45  ;;  %v1623_v53 = vadd.f32 %v1622_v34, %v1556_v47  ;;  %1285 = vst [vmem:[%s2580_s20 + $0x140] sm:$0xff] %v1221_v48 }
 0x153   : > { %v1660_v54 = vadd.f32 %v1659_v35, %v1557_v51 }
 0x156   : > { %v1062_v55 = vpop.f32.mrf.mxu2  ;;  %v1151_v56 = vpop.f32.mrf.mxu3 }
 0x157   : > { %v2652_v57 = vadd.f32 %v1401_v39, %v1062_v55  ;;  %v1558_v58 = vmul.f32 %v1062_v55, %v1062_v55  ;;  %v1222_v59 = vpack.c.bf16 %v1151_v56, %v1062_v55  ;;  %v2654_v60 = vadd.f32 %v1438_v42, %v1151_v56  ;;  %v886_v61 = vpop.f32.mrf.mxu0  ;;  %v975_v62 = vpop.f32.mrf.mxu1 }
 0x158   : > { %v1559_v63 = vmul.f32 %v1151_v56, %v1151_v56  ;;  %v1329_v0 = vadd.f32 %v1328_v46, %v886_v61  ;;  %v1560_v1 = vmul.f32 %v886_v61, %v886_v61  ;;  %v1223_v2 = vpack.c.bf16 %v975_v62, %v886_v61 }
 0x159   : > { %v2656_v3 = vadd.f32 %v1696_v49, %v1558_v58  ;;  %1286 = vst [vmem:[%s2580_s20 + $0x148] sm:$0xff] %v1222_v59  ;;  %v2659_v4 = vadd.f32 %v1365_v50, %v975_v62  ;;  %v1561_v5 = vmul.f32 %v975_v62, %v975_v62 }
 0x15a   : > { %v2661_v6 = vadd.f32 %v1733_v52, %v1559_v63  ;;  %v1624_v7 = vadd.f32 %v1623_v53, %v1560_v1  ;;  %1287 = vst [vmem:[%s2580_s20 + $0x150] sm:$0xff] %v1223_v2 }
 0x15b   : > { %v1661_v8 = vadd.f32 %v1660_v54, %v1561_v5 }
 0x15e   : > { %v1064_v9 = vpop.f32.mrf.mxu2  ;;  %v1153_v10 = vpop.f32.mrf.mxu3 }
 0x15f   : > { %v1224_v11 = vpack.c.bf16 %v1153_v10, %v1064_v9  ;;  %v889_v12 = vpop.f32.mrf.mxu0  ;;  %v2664_v13 = vpop.f32.mrf.mxu1  ;;  %v1562_v50 = vmul.f32 %v1064_v9, %v1064_v9  ;;  %v1563_v51 = vmul.f32 %v1153_v10, %v1153_v10  ;;  %v1403_v52 = vadd.f32 %v2652_v57, %v1064_v9 }
 0x160   : > { %v2666_v14 = vadd.f32 %v1329_v0, %v889_v12  ;;  %v1564_v15 = vmul.f32 %v889_v12, %v889_v12  ;;  %v1225_v16 = vpack.c.bf16 %v2664_v13, %v889_v12  ;;  %v1565_v17 = vmul.f32 %v2664_v13, %v2664_v13 }
 0x161   : > { %1288 = vst [vmem:[%s2580_s20 + $0x158] sm:$0xff] %v1224_v11  ;;  %v1440_v55 = vadd.f32 %v2654_v60, %v1153_v10  ;;  %v1698_v63 = vadd.f32 %v2656_v3, %v1562_v50  ;;  %v1735_v60 = vadd.f32 %v2661_v6, %v1563_v51  ;;  %v1367_v2 = vadd.f32 %v2659_v4, %v2664_v13 }
 0x162   : > { %v2672_v18 = vadd.f32 %v1624_v7, %v1564_v15  ;;  %1289 = vst [vmem:[%s2580_s20 + $0x160] sm:$0xff] %v1225_v16  ;;  %v2675_v19 = vadd.f32 %v1661_v8, %v1565_v17 }
 0x166   : > { %v1067_v20 = vpop.f32.mrf.mxu2  ;;  %v1156_v21 = vpop.f32.mrf.mxu3 }
 0x167   : > { %v1226_v22 = vpack.c.bf16 %v1156_v21, %v1067_v20  ;;  %v891_v23 = vpop.f32.mrf.mxu0  ;;  %v2677_v24 = vpop.f32.mrf.mxu1  ;;  %v1566_v56 = vmul.f32 %v1067_v20, %v1067_v20  ;;  %v1567_v58 = vmul.f32 %v1156_v21, %v1156_v21  ;;  %v1404_v5 = vadd.f32 %v1403_v52, %v1067_v20 }
 0x168   : > { %v1227_v28 = vpack.c.bf16 %v2677_v24, %v891_v23  ;;  %v1568_v57 = vmul.f32 %v891_v23, %v891_v23  ;;  %v1569_v0 = vmul.f32 %v2677_v24, %v2677_v24  ;;  %v1441_v8 = vadd.f32 %v1440_v55, %v1156_v21 }
 0x169   : > { %1290 = vst [vmem:[%s2580_s20 + $0x168] sm:$0xff] %v1226_v22  ;;  %v1331_v3 = vadd.f32 %v2666_v14, %v891_v23  ;;  %v1699_v11 = vadd.f32 %v1698_v63, %v1566_v56  ;;  %v1736_v6 = vadd.f32 %v1735_v60, %v1567_v58  ;;  %v1368_v12 = vadd.f32 %v1367_v2, %v2677_v24 }
 0x16a   : > { %1291 = vst [vmem:[%s2580_s20 + $0x170] sm:$0xff] %v1227_v28  ;;  %v1626_v13 = vadd.f32 %v2672_v18, %v1568_v57  ;;  %v1663_v15 = vadd.f32 %v2675_v19, %v1569_v0 }
 0x16e   : > { %v2682_v25 = vpop.f32.mrf.mxu2  ;;  %v2684_v26 = vpop.f32.mrf.mxu3 }
 0x16f   : > { %v1228_v27 = vpack.c.bf16 %v2684_v26, %v2682_v25  ;;  %v2688_v29 = vpop.f32.mrf.mxu0  ;;  %v2690_v30 = vpop.f32.mrf.mxu1  ;;  %v1570_v7 = vmul.f32 %v2682_v25, %v2682_v25  ;;  %v1571_v9 = vmul.f32 %v2684_v26, %v2684_v26  ;;  %v1405_v14 = vadd.f32 %v1404_v5, %v2682_v25 }
 0x170   : > { %v1229_v36 = vpack.c.bf16 %v2690_v30, %v2688_v29  ;;  %v1572_v10 = vmul.f32 %v2688_v29, %v2688_v29  ;;  %v1573_v4 = vmul.f32 %v2690_v30, %v2690_v30  ;;  %v1442_v16 = vadd.f32 %v1441_v8, %v2684_v26 }
 0x171   : > { %1292 = vst [vmem:[%s2580_s20 + $0x178] sm:$0xff] %v1228_v27  ;;  %v1700_v17 = vadd.f32 %v1699_v11, %v1570_v7  ;;  %v1332_v20 = vadd.f32 %v1331_v3, %v2688_v29  ;;  %v1369_v21 = vadd.f32 %v1368_v12, %v2690_v30  ;;  %v1737_v23 = vadd.f32 %v1736_v6, %v1571_v9 }
 0x172   : > { %1293 = vst [vmem:[%s2580_s20 + $0x180] sm:$0xff] %v1229_v36  ;;  %v1627_v24 = vadd.f32 %v1626_v13, %v1572_v10  ;;  %v1664_v26 = vadd.f32 %v1663_v15, %v1573_v4 }
 0x176   : > { %v2696_v31 = vpop.f32.mrf.mxu2  ;;  %v2698_v32 = vpop.f32.mrf.mxu3 }
 0x177   : > { %v1230_v33 = vpack.c.bf16 %v2698_v32, %v2696_v31  ;;  %v2702_v34 = vpop.f32.mrf.mxu0  ;;  %v2704_v35 = vpop.f32.mrf.mxu1  ;;  %v1574_v22 = vmul.f32 %v2696_v31, %v2696_v31  ;;  %v1575_v28 = vmul.f32 %v2698_v32, %v2698_v32  ;;  %v1406_v27 = vadd.f32 %v1405_v14, %v2696_v31 }
 0x178   : > { %v1231_v37 = vpack.c.bf16 %v2704_v35, %v2702_v34  ;;  %v1576_v18 = vmul.f32 %v2702_v34, %v2702_v34  ;;  %v1577_v29 = vmul.f32 %v2704_v35, %v2704_v35  ;;  %v1370_v55 = vadd.f32 %v1369_v21, %v2704_v35 }
 0x179   : > { %1294 = vst [vmem:[%s2580_s20 + $0x188] sm:$0xff] %v1230_v33  ;;  %v1738_v52 = vadd.f32 %v1737_v23, %v1575_v28 }
 0x17a   : > { %1295 = vst [vmem:[%s2580_s20 + $0x190] sm:$0xff] %v1231_v37  ;;  %v1443_v37 = vadd.f32 %v1442_v16, %v2698_v32  ;;  %v1628_v32 = vadd.f32 %v1627_v24, %v1576_v18  ;;  %v1665_v58 = vadd.f32 %v1664_v26, %v1577_v29 }
 0x17e   : > { %v2710_v38 = vpop.f32.mrf.mxu2  ;;  %v2712_v39 = vpop.f32.mrf.mxu3 }
 0x17f   : > { %v1232_v40 = vpack.c.bf16 %v2712_v39, %v2710_v38  ;;  %v2716_v41 = vpop.f32.mrf.mxu0  ;;  %v2718_v42 = vpop.f32.mrf.mxu1 }
 0x180   : > { %v1233_v43 = vpack.c.bf16 %v2718_v42, %v2716_v41  ;;  %v1580_v50 = vmul.f32 %v2716_v41, %v2716_v41  ;;  %v1581_v51 = vmul.f32 %v2718_v42, %v2718_v42 }
 0x181   : > { %1296 = vst [vmem:[%s2580_s20 + $0x198] sm:$0xff] %v1232_v40  ;;  %v1578_v40 = vmul.f32 %v2710_v38, %v2710_v38 }
 0x182   : > { %1297 = vst [vmem:[%s2580_s20 + $0x1a0] sm:$0xff] %v1233_v43  ;;  %v1579_v43 = vmul.f32 %v2712_v39, %v2712_v39  ;;  %v1629_v2 = vadd.f32 %v1628_v32, %v1580_v50  ;;  %v1666_v35 = vadd.f32 %v1665_v58, %v1581_v51 }
 0x184   : > { %v1739_v0 = vadd.f32 %v1738_v52, %v1579_v43 }
 0x186   : > { %v2724_v44 = vpop.f32.mrf.mxu2  ;;  %v2726_v45 = vpop.f32.mrf.mxu3 }
 0x187   : > { %v1234_v46 = vpack.c.bf16 %v2726_v45, %v2724_v44  ;;  %v2730_v47 = vpop.f32.mrf.mxu0  ;;  %v2732_v48 = vpop.f32.mrf.mxu1  ;;  %v1582_v56 = vmul.f32 %v2724_v44, %v2724_v44  ;;  %v1583_v60 = vmul.f32 %v2726_v45, %v2726_v45 }
 0x188   : > { %v1235_v49 = vpack.c.bf16 %v2732_v48, %v2730_v47  ;;  %v1584_v5 = vmul.f32 %v2730_v47, %v2730_v47  ;;  %v1585_v7 = vmul.f32 %v2732_v48, %v2732_v48 }
 0x189   : > { %1298 = vst [vmem:[%s2580_s20 + $0x1a8] sm:$0xff] %v1234_v46  ;;  %v1701_v46 = vadd.f32 %v1700_v17, %v1574_v22  ;;  %v1740_v4 = vadd.f32 %v1739_v0, %v1583_v60 }
 0x18a   : > { %1299 = vst [vmem:[%s2580_s20 + $0x1b0] sm:$0xff] %v1235_v49  ;;  %v1333_v49 = vadd.f32 %v1332_v20, %v2702_v34  ;;  %v1444_v34 = vadd.f32 %v1443_v37, %v2712_v39  ;;  %v1630_v15 = vadd.f32 %v1629_v2, %v1584_v5  ;;  %v1667_v14 = vadd.f32 %v1666_v35, %v1585_v7 }
 0x18b   : > { %v1702_v57 = vadd.f32 %v1701_v46, %v1578_v40 }
 0x18c   : > { %v1334_v63 = vadd.f32 %v1333_v49, %v2716_v41  ;;  %v1445_v41 = vadd.f32 %v1444_v34, %v2726_v45 }
 0x18d   : > { %v1703_v39 = vadd.f32 %v1702_v57, %v1582_v56 }
 0x18e   : > { %v2739_v53 = vpop.f32.mrf.mxu2  ;;  %v2741_v54 = vpop.f32.mrf.mxu3  ;;  %v1335_v8 = vadd.f32 %v1334_v63, %v2730_v47 }
 0x18f   : > { %v1236_v59 = vpack.c.bf16 %v2741_v54, %v2739_v53  ;;  %v2746_v61 = vpop.f32.mrf.mxu0  ;;  %v2748_v62 = vpop.f32.mrf.mxu1  ;;  %v1586_v9 = vmul.f32 %v2739_v53, %v2739_v53  ;;  %v1587_v10 = vmul.f32 %v2741_v54, %v2741_v54  ;;  %v1446_v17 = vadd.f32 %v1445_v41, %v2741_v54 }
 0x190   : > { %v1237_v1 = vpack.c.bf16 %v2748_v62, %v2746_v61  ;;  %v1588_v11 = vmul.f32 %v2746_v61, %v2746_v61  ;;  %v1589_v47 = vmul.f32 %v2748_v62, %v2748_v62  ;;  %v1336_v20 = vadd.f32 %v1335_v8, %v2746_v61 }
 0x191   : > { %1300 = vst [vmem:[%s2580_s20 + $0x1b8] sm:$0xff] %v1236_v59  ;;  %v1407_v59 = vadd.f32 %v1406_v27, %v2710_v38  ;;  %v1704_v23 = vadd.f32 %v1703_v39, %v1586_v9  ;;  %v1741_v24 = vadd.f32 %v1740_v4, %v1587_v10 }
 0x192   : > { %1301 = vst [vmem:[%s2580_s20 + $0x1c0] sm:$0xff] %v1237_v1  ;;  %v1371_v1 = vadd.f32 %v1370_v55, %v2718_v42  ;;  %v1631_v28 = vadd.f32 %v1630_v15, %v1588_v11  ;;  %v1668_v26 = vadd.f32 %v1667_v14, %v1589_v47 }
 0x193   : > { %v1408_v38 = vadd.f32 %v1407_v59, %v2724_v44 }
 0x194   : > { %v1372_v45 = vadd.f32 %v1371_v1, %v2732_v48 }
 0x195   : > { %v1409_v16 = vadd.f32 %v1408_v38, %v2739_v53 }
 0x196   : > { %v2782_v19 = vpop.f32.mrf.mxu2  ;;  %v2784_v25 = vpop.f32.mrf.mxu3  ;;  %v1373_v18 = vadd.f32 %v1372_v45, %v2748_v62 }
 0x197   : > { %v1238_v30 = vpack.c.bf16 %v2784_v25, %v2782_v19  ;;  %v906_v36 = vpop.f32.mrf.mxu0  ;;  %v2791_v33 = vpop.f32.mrf.mxu1  ;;  %v1590_v21 = vmul.f32 %v2782_v19, %v2782_v19  ;;  %v1410_v53 = vadd.f32 %v1409_v16, %v2782_v19  ;;  %v1447_v61 = vadd.f32 %v1446_v17, %v2784_v25 }
 0x198   : > { %v1239_v31 = vpack.c.bf16 %v2791_v33, %v906_v36  ;;  %v1592_v22 = vmul.f32 %v906_v36, %v906_v36  ;;  %v1593_v48 = vmul.f32 %v2791_v33, %v2791_v33  ;;  %v1337_v54 = vadd.f32 %v1336_v20, %v906_v36 }
 0x199   : > { %1302 = vst [vmem:[%s2580_s20 + $0x1c8] sm:$0xff] %v1238_v30  ;;  %v1591_v29 = vmul.f32 %v2784_v25, %v2784_v25  ;;  %v1374_v30 = vadd.f32 %v1373_v18, %v2791_v33  ;;  %v1705_v40 = vadd.f32 %v1704_v23, %v1590_v21 }
 0x19a   : > { %1303 = vst [vmem:[%s2580_s20 + $0x1d0] sm:$0xff] %v1239_v31  ;;  %v1632_v43 = vadd.f32 %v1631_v28, %v1592_v22  ;;  %v1669_v31 = vadd.f32 %v1668_v26, %v1593_v48 }
 0x19b   : > { %v1742_v33 = vadd.f32 %v1741_v24, %v1591_v29 }
 0x19e   : > { %v1084_v3 = vpop.f32.mrf.mxu2  ;;  %v1173_v42 = vpop.f32.mrf.mxu3 }
 0x19f   : > { %v1240_v6 = vpack.c.bf16 %v1173_v42, %v1084_v3  ;;  %v909_v44 = vpop.f32.mrf.mxu0  ;;  %v998_v12 = vpop.f32.mrf.mxu1  ;;  %v1594_v50 = vmul.f32 %v1084_v3, %v1084_v3  ;;  %v1595_v51 = vmul.f32 %v1173_v42, %v1173_v42  ;;  %v1411_v2 = vadd.f32 %v1410_v53, %v1084_v3 }
 0x1a0   : > { %v1241_v13 = vpack.c.bf16 %v998_v12, %v909_v44  ;;  %v1596_v27 = vmul.f32 %v909_v44, %v909_v44  ;;  %v1597_v37 = vmul.f32 %v998_v12, %v998_v12  ;;  %v1338_v46 = vadd.f32 %v1337_v54, %v909_v44 }
 0x1a1   : > { %1304 = vst [vmem:[%s2580_s20 + $0x1d8] sm:$0xff] %v1240_v6  ;;  %v1375_v19 = vadd.f32 %v1374_v30, %v998_v12  ;;  %v1448_v35 = vadd.f32 %v1447_v61, %v1173_v42  ;;  %v1706_v38 = vadd.f32 %v1705_v40, %v1594_v50  ;;  %v1743_v39 = vadd.f32 %v1742_v33, %v1595_v51 }
 0x1a2   : > { %1305 = vst [vmem:[%s2580_s20 + $0x1e0] sm:$0xff] %v1241_v13  ;;  %v1633_v55 = vadd.f32 %v1632_v43, %v1596_v27  ;;  %v1670_v59 = vadd.f32 %v1669_v31, %v1597_v37 }
 0x1a6   : > { %v1087_v49 = vpop.f32.mrf.mxu2  ;;  %v1176_v62 = vpop.f32.mrf.mxu3 }
 0x1a7   : > { %v1242_v36 = vpack.c.bf16 %v1176_v62, %v1087_v49  ;;  %v911_v52 = vpop.f32.mrf.mxu0  ;;  %v1000_v32 = vpop.f32.mrf.mxu1  ;;  %v1598_v57 = vmul.f32 %v1087_v49, %v1087_v49  ;;  %v1599_v0 = vmul.f32 %v1176_v62, %v1176_v62  ;;  %v1412_v9 = vadd.f32 %v1411_v2, %v1087_v49 }
 0x1a8   : > { %v1339_v56 = vadd.f32 %v1338_v46, %v911_v52  ;;  %v1600_v25 = vmul.f32 %v911_v52, %v911_v52  ;;  %v1243_v58 = vpack.c.bf16 %v1000_v32, %v911_v52  ;;  %v1376_v34 = vadd.f32 %v1375_v19, %v1000_v32 }
 0x1a9   : > { %1306 = vst [vmem:[%s2580_s20 + $0x1e8] sm:$0xff] %v1242_v36  ;;  %v1601_v63 = vmul.f32 %v1000_v32, %v1000_v32  ;;  %v1449_v10 = vadd.f32 %v1448_v35, %v1176_v62  ;;  %v1707_v44 = vadd.f32 %v1706_v38, %v1598_v57  ;;  %v1744_v12 = vadd.f32 %v1743_v39, %v1599_v0 }
 0x1aa   : > { %v1340_v1 = vrot.slane %v1339_v56, 4  ;;  %v1634_v60 = vadd.f32 %v1633_v55, %v1600_v25  ;;  %1307 = vst [vmem:[%s2580_s20 + $0x1f0] sm:$0xff] %v1243_v58  ;;  %v1377_v5 = vrot.slane %v1376_v34, 4  ;;  %v1471_v2 = vlaneseq }
 0x1ab   : > { %v1671_v7 = vadd.f32 %v1670_v59, %v1601_v63 }
 0x1ac   : > { %v1341_v41 = vadd.f32 %v1340_v1, %v1339_v56  ;;  %v1635_v8 = vrot.slane %v1634_v60, 4  ;;  %v1378_v11 = vadd.f32 %v1377_v5, %v1376_v34  ;;  %vm1473_vm3 = vcmp.lt.s32.totalorder %v1471_v2, 512 }
 0x1ad   : > { %v1672_v6 = vrot.slane %v1671_v7, 4 }
 0x1ae   : > { %v1342_v4 = vrot.slane %v1341_v41, 2  ;;  %v1636_v45 = vadd.f32 %v1635_v8, %v1634_v60  ;;  %v1089_v47 = vpop.f32.mrf.mxu2  ;;  %v1178_v13 = vpop.f32.mrf.mxu3  ;;  %v1379_v15 = vrot.slane %v1378_v11, 2 }
 0x1af   : > { %v1673_v3 = vadd.f32 %v1672_v6, %v1671_v7  ;;  %v1413_v42 = vadd.f32 %v1412_v9, %v1089_v47  ;;  %v1602_v14 = vmul.f32 %v1089_v47, %v1089_v47  ;;  %v1244_v20 = vpack.c.bf16 %v1178_v13, %v1089_v47 }
 0x1b0   : > { %v1343_v16 = vadd.f32 %v1342_v4, %v1341_v41  ;;  %v1637_v17 = vrot.slane %v1636_v45, 2  ;;  %v1450_v21 = vadd.f32 %v1449_v10, %v1178_v13  ;;  %v1380_v22 = vadd.f32 %v1379_v15, %v1378_v11 }
 0x1b1   : > { %v1674_v48 = vrot.slane %v1673_v3, 2  ;;  %v1414_v23 = vrot.slane %v1413_v42, 4  ;;  %v1708_v24 = vadd.f32 %v1707_v44, %v1602_v14  ;;  %1308 = vst [vmem:[%s2580_s20 + $0x1f8] sm:$0xff] %v1244_v20  ;;  %v1603_v53 = vmul.f32 %v1178_v13, %v1178_v13 }
 0x1b2   : > { %v1344_v28 = vrot.slane %v1343_v16, 1  ;;  %v1638_v18 = vadd.f32 %v1637_v17, %v1636_v45  ;;  %v1451_v26 = vrot.slane %v1450_v21, 4  ;;  %v1381_v54 = vrot.slane %v1380_v22, 1 }
 0x1b3   : > { %v1675_v27 = vadd.f32 %v1674_v48, %v1673_v3  ;;  %v1415_v61 = vadd.f32 %v1414_v23, %v1413_v42  ;;  %v1709_v29 = vrot.slane %v1708_v24, 4  ;;  %v1745_v40 = vadd.f32 %v1744_v12, %v1603_v53 }
 0x1b4   : > { %v1639_v30 = vrot.slane %v1638_v18, 1  ;;  %v1452_v37 = vadd.f32 %v1451_v26, %v1450_v21  ;;  %v1382_v43 = vadd.f32 %v1381_v54, %v1380_v22  ;;  %v1345_v62 = vadd.f32 %v1344_v28, %v1343_v16 }
 0x1b5   : > { %v1676_v31 = vrot.slane %v1675_v27, 1  ;;  %v1416_v46 = vrot.slane %v1415_v61, 2  ;;  %v1710_v49 = vadd.f32 %v1709_v29, %v1708_v24  ;;  %v1746_v51 = vrot.slane %v1745_v40, 4 }
 0x1b6   : > { %v1453_v50 = vrot.slane %v1452_v37, 2  ;;  %v1461_v19 = vrot.slane %v1382_v43, 7  ;;  %v1640_v55 = vadd.f32 %v1639_v30, %v1638_v18 }
 0x1b7   : > { %v1677_v36 = vadd.f32 %v1676_v31, %v1675_v27  ;;  %v1417_v52 = vadd.f32 %v1416_v46, %v1415_v61  ;;  %v1711_v32 = vrot.slane %v1710_v49, 2  ;;  %v1747_v25 = vadd.f32 %v1746_v51, %v1745_v40 }
 0x1b8   : > { %v1454_v56 = vadd.f32 %v1453_v50, %v1452_v37  ;;  %v1465_v58 = vsel %vm1464_vm0, %v1345_v62, %v1461_v19 }
 0x1b9   : > { %v1756_v33 = vrot.slane %v1677_v36, 7  ;;  %v1418_v59 = vrot.slane %v1417_v52, 1  ;;  %v1712_v34 = vadd.f32 %v1711_v32, %v1710_v49  ;;  %v1748_v57 = vrot.slane %v1747_v25, 2 }
 0x1ba   : > { %v1455_v63 = vrot.slane %v1454_v56, 1 }
 0x1bb   : > { %v1759_v0 = vsel %vm1464_vm0, %v1640_v55, %v1756_v33  ;;  %v1419_v1 = vadd.f32 %v1418_v59, %v1417_v52  ;;  %v1713_v60 = vrot.slane %v1712_v34, 1  ;;  %v1749_v5 = vadd.f32 %v1748_v57, %v1747_v25 }
 0x1bc   : > { %v1456_v35 = vadd.f32 %v1455_v63, %v1454_v56 }
 0x1bd   : > { %v1462_v7 = vrot.slane %v1419_v1, 6  ;;  %v1714_v38 = vadd.f32 %v1713_v60, %v1712_v34  ;;  %v1750_v41 = vrot.slane %v1749_v5, 1 }
 0x1be   : > { %v1463_v39 = vrot.slane %v1456_v35, 5 }
 0x1bf   : > { %v1757_v8 = vrot.slane %v1714_v38, 6  ;;  %v1751_v10 = vadd.f32 %v1750_v41, %v1749_v5 }
 0x1c0   : > { %v1467_v9 = vsel %vm1466_vm1, %v1462_v7, %v1463_v39 }
 0x1c1   : > { %v1469_v11 = vsel %vm1468_vm2, %v1465_v58, %v1467_v9  ;;  %v1758_v6 = vrot.slane %v1751_v10, 5 }
 0x1c2   : > { %1475 = vst.msk [vmem:[%s328_s28] sm:$0xf] %vm1473_vm3, %v1469_v11 }
 0x1c3   : > { %v1760_v44 = vsel %vm1466_vm1, %v1757_v8, %v1758_v6 }
 0x1c4   : > { %v1761_v12 = vsel %vm1468_vm2, %v1759_v0, %v1760_v44 }
 0x1c5   : > { %1763 = vst.msk [vmem:[%s336_s30] sm:$0xf] %vm1473_vm3, %v1761_v12 }
 0x1c6 PF: > { %s17_s23 = sadd.s32 1, %s2256_s23   ;;  %s2874_s21 = smov %s2252_s22 }
 0x1c7   : > { %p14_p5 = scmp.ge.s32.totalorder %s17_s23, 4   ;;  %s2875_s22 = smov %s2877_s24 }
 0x1c9   :  { %16 = sbr.rel (!%p14_p5) target bundleno = 2 (0x2), region = 90 }

// kernel: model_forward.2
= control target key start
LH: loop header
LB: loop body
LE: loop exit
PB: predicated region body
PF: predicated region fallthrough
CT: control target
= control target key end

     0   :  { %s3176_s15 = smov 0   ;;  %s3178_s16 = smov 0   ;;  %s4003_s0 = inlined_call_operand.vmem [shape: bf16[2,20,20,128], index: 0, kind: input, shape index: {}]   ;;  %s4004_s1 = inlined_call_operand.vmem [shape: bf16[3,384,128], index: 1, kind: input, shape index: {}]   ;;  %s4005_s2 = inlined_call_operand.vmem [shape: bf16[2,16,16,128], index: 2, kind: output, shape index: {0}]   ;;  %s4006_s3 = inlined_call_operand.vmem [shape: f32[2,1,1,128], index: 3, kind: output, shape index: {1}]   ;;  %s4007_s4 = inlined_call_operand.vmem [shape: f32[2,1,1,128], index: 4, kind: output, shape index: {2}]  }
   0x1   :  { %s3180_s17 = smov 0  }
   0x2 LB: > { %s27_s18 = sadd.s32 1, %s3145_s16  ;;  %p2408_p0 = scmp.ge.s32.totalorder %s3149_s17, 1  ;;  %s3149_s17 = sphi %s3180_s17, %s15_s17   ;;  %s3145_s16 = sphi %s3178_s16, %s4068_s16   ;;  %s3141_s15 = sphi %s3176_s15, %s4067_s15  }
   0x3   : > { %p29_p1 = scmp.ge.s32.totalorder %s27_s18, 2  ;;  %p185_p2 = scmp.lt.s32.totalorder %s3149_s17, 3 }
   0x5   : > { %s4070_s18 = smov (%p29_p1, %s27_s18), 0  ;;  %p186_p3 = pnand %p2408_p0, %p185_p2 }
   0x7   : > { %189 = sbr.rel (%p186_p3) target bundleno = 768 (0x300), region = 28 }
   0xc   : > { %v2930_v0 = vld [vmem:[%s4004_s1 + $0xf8] sm:$0xff]  ;;  %v2929_v1 = vld [vmem:[%s4004_s1 + $0xf0] sm:$0xff]  ;;  %v2928_v2 = vld [vmem:[%s4004_s1 + $0xe8] sm:$0xff]  ;;  %p228_p4 = scmp.lt.s32.totalorder %s3141_s15, 1  ;;  %vm464_vm0 = vcmask 1046528   ;;  %vm529_vm1 = vcmask 1045504  }
   0xd   : > { %869 = vmatpush.bf16.msra.mxu0 %v2930_v0  ;;  %3066 = vmatpush.bf16.msra.mxu1 %v2930_v0  ;;  %v2927_v3 = vld [vmem:[%s4004_s1 + $0xe0] sm:$0xff]  ;;  %v2926_v4 = vld [vmem:[%s4004_s1 + $0xd8] sm:$0xff]  ;;  %v2925_v5 = vld [vmem:[%s4004_s1 + $0xd0] sm:$0xff] }
   0xe   : > { %3067 = vmatpush.bf16.msra.mxu2 %v2930_v0  ;;  %3068 = vmatpush.bf16.msra.mxu3 %v2930_v0  ;;  %s4072_s15 = smov (!%p228_p4, %s3141_s15), 1  ;;  %v2924_v6 = vld [vmem:[%s4004_s1 + $0xc8] sm:$0xff]  ;;  %v2923_v7 = vld [vmem:[%s4004_s1 + $0xc0] sm:$0xff]  ;;  %v2946_v8 = vld [vmem:[%s4004_s1 + $0x178] sm:$0xff] }
   0xf   : > { %s3090_s7 = smul.u32 240, %s4072_s15  ;;  %v2906_v9 = vld [vmem:[%s4004_s1 + $0x38] sm:$0xff]  ;;  %v2945_v16 = vld [vmem:[%s4004_s1 + $0x170] sm:$0xff]  ;;  %v2944_v20 = vld [vmem:[%s4004_s1 + $0x168] sm:$0xff]  ;;  %s2878_s19 = sshll.u32 %s4072_s15, 7 }
  0x10   : > { %v2938_v14 = vld [vmem:[%s4004_s1 + $0x138] sm:$0xff]  ;;  %v2905_v17 = vld [vmem:[%s4004_s1 + $0x30] sm:$0xff]  ;;  %v2904_v21 = vld [vmem:[%s4004_s1 + $0x28] sm:$0xff]  ;;  %s3912_s22 = scalar_lea.vmem %s4005_s2, %s2878_s19  ;;  %s249_s24 = scalar_lea.vmem %s4006_s3, %s4072_s15 }
  0x11   : > { %870 = vmatpush.bf16.msra.mxu0 %v2929_v1  ;;  %3069 = vmatpush.bf16.msra.mxu1 %v2929_v1  ;;  %s3228_s12 = scalar_lea.vmem %s4003_s0, %s3090_s7  ;;  %v2914_v15 = vld [vmem:[%s4004_s1 + $0x78] sm:$0xff]  ;;  %v2937_v18 = vld [vmem:[%s4004_s1 + $0x130] sm:$0xff]  ;;  %v2936_v22 = vld [vmem:[%s4004_s1 + $0x128] sm:$0xff]  ;;  %s255_s27 = scalar_lea.vmem %s4007_s4, %s4072_s15 }
  0x12   : > { %3070 = vmatpush.bf16.msra.mxu2 %v2929_v1  ;;  %3071 = vmatpush.bf16.msra.mxu3 %v2929_v1  ;;  %v3237_v10 = vld [vmem:[%s3228_s12 + $0x18] sm:$0xff]  ;;  %v3240_v11 = vld [vmem:[%s3228_s12 + $0x48] sm:$0xff]  ;;  %v2913_v19 = vld [vmem:[%s4004_s1 + $0x70] sm:$0xff] }
  0x13   : > { %v3243_v12 = vld [vmem:[%s3228_s12 + $0x78] sm:$0xff]  ;;  %v3246_v13 = vld [vmem:[%s3228_s12 + $0xa8] sm:$0xff]  ;;  %v2943_v24 = vld [vmem:[%s4004_s1 + $0x160] sm:$0xff] }
  0x14   : > { %v2912_v23 = vld [vmem:[%s4004_s1 + $0x68] sm:$0xff]  ;;  %v2903_v25 = vld [vmem:[%s4004_s1 + $0x20] sm:$0xff]  ;;  %v2942_v28 = vld [vmem:[%s4004_s1 + $0x158] sm:$0xff] }
  0x15   : > { %871 = vmatpush.bf16.msra.mxu0 %v2928_v2  ;;  %3072 = vmatpush.bf16.msra.mxu1 %v2928_v2  ;;  %v2935_v26 = vld [vmem:[%s4004_s1 + $0x120] sm:$0xff]  ;;  %v2902_v29 = vld [vmem:[%s4004_s1 + $0x18] sm:$0xff]  ;;  %v2941_v36 = vld [vmem:[%s4004_s1 + $0x150] sm:$0xff] }
  0x16   : > { %3073 = vmatpush.bf16.msra.mxu2 %v2928_v2  ;;  %3074 = vmatpush.bf16.msra.mxu3 %v2928_v2  ;;  %v2911_v27 = vld [vmem:[%s4004_s1 + $0x60] sm:$0xff]  ;;  %v3304_v31 = vld [vmem:[%s3228_s12 + $0x54] sm:$0xff]  ;;  %v2940_v40 = vld [vmem:[%s4004_s1 + $0x148] sm:$0xff] }
  0x17   : > { %v3301_v30 = vld [vmem:[%s3228_s12 + $0x24] sm:$0xff]  ;;  %v3310_v33 = vld [vmem:[%s3228_s12 + $0xb4] sm:$0xff]  ;;  %v3387_v56 = vld [vmem:[%s3228_s12 + $0x3c] sm:$0xff] }
  0x18   : > { %v3307_v32 = vld [vmem:[%s3228_s12 + $0x84] sm:$0xff]  ;;  %v2934_v34 = vld [vmem:[%s4004_s1 + $0x118] sm:$0xff]  ;;  %v2901_v37 = vld [vmem:[%s4004_s1 + $0x10] sm:$0xff] }
  0x19   : > { %872 = vmatpush.bf16.msra.mxu0 %v2927_v3  ;;  %3075 = vmatpush.bf16.msra.mxu1 %v2927_v3  ;;  %v2910_v35 = vld [vmem:[%s4004_s1 + $0x58] sm:$0xff]  ;;  %v2933_v38 = vld [vmem:[%s4004_s1 + $0x110] sm:$0xff]  ;;  %v2900_v41 = vld [vmem:[%s4004_s1 + $0x8] sm:$0xff] }
  0x1a   : > { %3076 = vmatpush.bf16.msra.mxu2 %v2927_v3  ;;  %3077 = vmatpush.bf16.msra.mxu3 %v2927_v3  ;;  %v2909_v39 = vld [vmem:[%s4004_s1 + $0x50] sm:$0xff]  ;;  %v2932_v42 = vld [vmem:[%s4004_s1 + $0x108] sm:$0xff]  ;;  %v2939_v44 = vld [vmem:[%s4004_s1 + $0x140] sm:$0xff]  ;;  %v471_v3 = vrot.slane %v3237_v10, 1 }
  0x1b   : > { %v2908_v43 = vld [vmem:[%s4004_s1 + $0x48] sm:$0xff]  ;;  %v2899_v45 = vld [vmem:[%s4004_s1] sm:$0xff]  ;;  %v3359_v48 = vld [vmem:[%s3228_s12 + $0x30] sm:$0xff] }
  0x1c   : > { %v2931_v46 = vld [vmem:[%s4004_s1 + $0x100] sm:$0xff]  ;;  %v3365_v50 = vld [vmem:[%s3228_s12 + $0x90] sm:$0xff]  ;;  %v2954_v52 = vld [vmem:[%s4004_s1 + $0x1b8] sm:$0xff] }
  0x1d   : > { %873 = vmatpush.bf16.msra.mxu0 %v2926_v4  ;;  %3078 = vmatpush.bf16.msra.mxu1 %v2926_v4  ;;  %v2907_v47 = vld [vmem:[%s4004_s1 + $0x40] sm:$0xff]  ;;  %v2962_v53 = vld [vmem:[%s4004_s1 + $0x1f8] sm:$0xff]  ;;  %v3390_v57 = vld [vmem:[%s3228_s12 + $0x6c] sm:$0xff] }
  0x1e   : > { %3079 = vmatpush.bf16.msra.mxu2 %v2926_v4  ;;  %3080 = vmatpush.bf16.msra.mxu3 %v2926_v4  ;;  %v3362_v49 = vld [vmem:[%s3228_s12 + $0x60] sm:$0xff]  ;;  %v2922_v54 = vld [vmem:[%s4004_s1 + $0xb8] sm:$0xff]  ;;  %v3396_v59 = vld [vmem:[%s3228_s12 + $0xcc] sm:$0xff] }
  0x1f   : > { %v3368_v51 = vld [vmem:[%s3228_s12 + $0xc0] sm:$0xff]  ;;  %v2970_v55 = vld [vmem:[%s4004_s1 + $0x238] sm:$0xff]  ;;  %v262_v61 = vld [vmem:[%s3228_s12 + $0x8] sm:$0x3] }
  0x20   : > { %v3393_v58 = vld [vmem:[%s3228_s12 + $0x9c] sm:$0xff]  ;;  %v432_v63 = vunpack.c.l.b16 %v262_v61 }
  0x21   : > { %874 = vmatpush.bf16.msra.mxu0 %v2925_v5  ;;  %3081 = vmatpush.bf16.msra.mxu1 %v2925_v5  ;;  %v268_v60 = vld [vmem:[%s3228_s12 + $0x20] sm:$0x3] }
  0x22   : > { %3082 = vmatpush.bf16.msra.mxu2 %v2925_v5  ;;  %3083 = vmatpush.bf16.msra.mxu3 %v2925_v5  ;;  %v434_v62 = vunpack.c.l.b16 %v268_v60  ;;  %v3405_v1 = vld [vmem:[%s3228_s12] sm:$0xff]  ;;  %v3407_v2 = vpack.c.b16 %v432_v63, %v432_v63  ;;  %v2960_v60 = vld [vmem:[%s4004_s1 + $0x1e8] sm:$0xff]  ;;  %v480_v63 = vrot.slane %v3387_v56, 1 }
  0x23   : > { %v465_v5 = vrot.slane %v3405_v1, 1 }
  0x24   : > { %v450_v0 = vpack.c.b16 %v434_v62, %v434_v62  ;;  %v2920_v62 = vld [vmem:[%s4004_s1 + $0xa8] sm:$0xff] }
  0x25   : > { %875 = vmatpush.bf16.msra.mxu0 %v2924_v6  ;;  %3084 = vmatpush.bf16.msra.mxu1 %v2924_v6 }
  0x26   : > { %3085 = vmatpush.bf16.msra.mxu2 %v2924_v6  ;;  %3086 = vmatpush.bf16.msra.mxu3 %v2924_v6  ;;  %v472_v4 = vrot.slane %v450_v0, 1  ;;  %v466_v6 = vrot.slane %v3407_v2, 1 }
  0x29   : > { %876 = vmatpush.bf16.msra.mxu0 %v2923_v7  ;;  %3087 = vmatpush.bf16.msra.mxu1 %v2923_v7 }
  0x2a   : > { %3088 = vmatpush.bf16.msra.mxu2 %v2923_v7  ;;  %3089 = vmatpush.bf16.msra.mxu3 %v2923_v7  ;;  %v536_v7 = vrot.slane %v3237_v10, 2 }
  0x2c   : > { %877 = vmatmul.bf16.vlgmr.msra.gmra.mxu0 %v3237_v10  ;;  %897 = vmatmul.bf16.vlgmr.msra.gmra.mxu1 %v3240_v11 }
  0x2d   : > { %917 = vmatmul.bf16.vlgmr.msra.gmra.mxu2 %v3243_v12  ;;  %937 = vmatmul.bf16.vlgmr.msra.gmra.mxu3 %v3246_v13 }
  0x2e   : > { %1047 = vmatpush.bf16.msrb.mxu2 %v2946_v8  ;;  %1280 = vmatpush.bf16.msrb.mxu3 %v2906_v9  ;;  %v537_v8 = vrot.slane %v450_v0, 2  ;;  %v473_v9 = vsel %vm464_vm0, %v471_v3, %v472_v4  ;;  %v545_v3 = vrot.slane %v3387_v56, 2 }
  0x2f   : > { %958 = vmatpush.bf16.msrb.mxu1 %v2938_v14  ;;  %1369 = vmatpush.bf16.msrb.mxu0 %v2914_v15  ;;  %v467_v14 = vsel %vm464_vm0, %v465_v5, %v466_v6 }
  0x30   : > { %v3416_v15 = vsel %vm529_vm1, %v536_v7, %v537_v8  ;;  %v280_v7 = vld [vmem:[%s3228_s12 + $0x50] sm:$0x3] }
  0x31   : > { %v438_v8 = vunpack.c.l.b16 %v280_v7 }
  0x32   : > { %1048 = vmatpush.bf16.msrb.mxu2 %v2945_v16  ;;  %1281 = vmatpush.bf16.msrb.mxu3 %v2905_v17  ;;  %v271_v16 = vld [vmem:[%s3228_s12 + $0x2c] sm:$0x3]  ;;  %v265_v17 = vld [vmem:[%s3228_s12 + $0x14] sm:$0x3] }
  0x33   : > { %959 = vmatpush.bf16.msrb.mxu1 %v2937_v18  ;;  %1370 = vmatpush.bf16.msrb.mxu0 %v2913_v19  ;;  %v435_v18 = vunpack.c.l.b16 %v271_v16  ;;  %v433_v19 = vunpack.c.l.b16 %v265_v17  ;;  %v548_v17 = vrot.slane %v3240_v11, 2 }
  0x36   : > { %1049 = vmatpush.bf16.msrb.mxu2 %v2944_v20  ;;  %1282 = vmatpush.bf16.msrb.mxu3 %v2904_v21  ;;  %v2953_v20 = vld [vmem:[%s4004_s1 + $0x1b0] sm:$0xff] }
  0x37   : > { %960 = vmatpush.bf16.msrb.mxu1 %v2936_v22  ;;  %1371 = vmatpush.bf16.msrb.mxu0 %v2912_v23  ;;  %v2961_v21 = vld [vmem:[%s4004_s1 + $0x1f0] sm:$0xff] }
  0x38   : > { %v2921_v22 = vld [vmem:[%s4004_s1 + $0xb0] sm:$0xff] }
  0x39   : > { %v2969_v23 = vld [vmem:[%s4004_s1 + $0x230] sm:$0xff] }
  0x3a   : > { %1050 = vmatpush.bf16.msrb.mxu2 %v2943_v24  ;;  %1283 = vmatpush.bf16.msrb.mxu3 %v2903_v25  ;;  %v451_v24 = vpack.c.b16 %v435_v18, %v435_v18  ;;  %v3435_v25 = vld [vmem:[%s3228_s12 + $0xc] sm:$0xff] }
  0x3b   : > { %961 = vmatpush.bf16.msrb.mxu1 %v2935_v26  ;;  %1372 = vmatpush.bf16.msrb.mxu0 %v2911_v27  ;;  %v3437_v26 = vpack.c.b16 %v433_v19, %v433_v19  ;;  %v474_v27 = vrot.slane %v3301_v30, 1 }
  0x3c   : > { %882 = vmatmul.bf16.gmra.mxu0 %v3301_v30  ;;  %902 = vmatmul.bf16.gmra.mxu1 %v3304_v31 }
  0x3d   : > { %922 = vmatmul.bf16.gmra.mxu2 %v3307_v32  ;;  %942 = vmatmul.bf16.gmra.mxu3 %v3310_v33 }
  0x3e   : > { %1051 = vmatpush.bf16.msrb.mxu2 %v2942_v28  ;;  %1284 = vmatpush.bf16.msrb.mxu3 %v2902_v29  ;;  %v475_v28 = vrot.slane %v451_v24, 1  ;;  %v468_v29 = vrot.slane %v3435_v25, 1 }
  0x3f   : > { %962 = vmatpush.bf16.msrb.mxu1 %v2934_v34  ;;  %1373 = vmatpush.bf16.msrb.mxu0 %v2910_v35  ;;  %v469_v34 = vrot.slane %v3437_v26, 1  ;;  %v539_v35 = vrot.slane %v3301_v30, 2 }
  0x42   : > { %1052 = vmatpush.bf16.msrb.mxu2 %v2941_v36  ;;  %1285 = vmatpush.bf16.msrb.mxu3 %v2901_v37  ;;  %v540_v36 = vrot.slane %v451_v24, 2  ;;  %v476_v37 = vsel %vm464_vm0, %v474_v27, %v475_v28  ;;  %v2951_v24 = vld [vmem:[%s4004_s1 + $0x1a0] sm:$0xff] }
  0x43   : > { %963 = vmatpush.bf16.msrb.mxu1 %v2933_v38  ;;  %1374 = vmatpush.bf16.msrb.mxu0 %v2909_v39  ;;  %v470_v38 = vsel %vm464_vm0, %v468_v29, %v469_v34  ;;  %v2959_v27 = vld [vmem:[%s4004_s1 + $0x1e0] sm:$0xff] }
  0x44   : > { %v3446_v39 = vsel %vm529_vm1, %v539_v35, %v540_v36 }
  0x45   : > { %4019 = vst [vmem:[#allocation2_spill] sm:$0xff] %v3446_v39 }
  0x46   : > { %1053 = vmatpush.bf16.msrb.mxu2 %v2940_v40  ;;  %1286 = vmatpush.bf16.msrb.mxu3 %v2900_v41  ;;  %v274_v40 = vld [vmem:[%s3228_s12 + $0x38] sm:$0x3] }
  0x47   : > { %964 = vmatpush.bf16.msrb.mxu1 %v2932_v42  ;;  %1375 = vmatpush.bf16.msrb.mxu0 %v2908_v43  ;;  %v436_v41 = vunpack.c.l.b16 %v274_v40  ;;  %v477_v43 = vrot.slane %v3359_v48, 1  ;;  %v486_v40 = vrot.slane %v3304_v31, 1 }
  0x49   : > { %v452_v42 = vpack.c.b16 %v436_v41, %v436_v41 }
  0x4a   : > { %1054 = vmatpush.bf16.msrb.mxu2 %v2939_v44  ;;  %1287 = vmatpush.bf16.msrb.mxu3 %v2899_v45  ;;  %v542_v45 = vrot.slane %v3359_v48, 2 }
  0x4b   : > { %965 = vmatpush.bf16.msrb.mxu1 %v2931_v46  ;;  %1376 = vmatpush.bf16.msrb.mxu0 %v2907_v47  ;;  %v478_v44 = vrot.slane %v452_v42, 1  ;;  %v543_v46 = vrot.slane %v452_v42, 2  ;;  %v551_v42 = vrot.slane %v3304_v31, 2 }
  0x4c   : > { %887 = vmatmul.bf16.gmra.mxu0 %v3359_v48  ;;  %907 = vmatmul.bf16.gmra.mxu1 %v3362_v49 }
  0x4d   : > { %927 = vmatmul.bf16.gmra.mxu2 %v3365_v50  ;;  %947 = vmatmul.bf16.gmra.mxu3 %v3368_v51  ;;  %v3454_v47 = vsel %vm464_vm0, %v477_v43, %v478_v44 }
  0x4e   : > { %1774 = vmatpush.bf16.msra.mxu2 %v2954_v52  ;;  %1863 = vmatpush.bf16.msra.mxu3 %v2962_v53  ;;  %v3457_v52 = vsel %vm529_vm1, %v542_v45, %v543_v46  ;;  %v277_v53 = vld [vmem:[%s3228_s12 + $0x44] sm:$0x3] }
  0x4f   : > { %1458 = vmatpush.bf16.msra.mxu1 %v2922_v54  ;;  %1952 = vmatpush.bf16.msra.mxu0 %v2970_v55  ;;  %v437_v54 = vunpack.c.l.b16 %v277_v53  ;;  %v2952_v55 = vld [vmem:[%s4004_s1 + $0x1a8] sm:$0xff] }
  0x51   : > { %v453_v61 = vpack.c.b16 %v437_v54, %v437_v54 }
  0x52   : > { %1775 = vmatpush.bf16.msra.mxu2 %v2953_v20  ;;  %1864 = vmatpush.bf16.msra.mxu3 %v2961_v21 }
  0x53   : > { %1459 = vmatpush.bf16.msra.mxu1 %v2921_v22  ;;  %1953 = vmatpush.bf16.msra.mxu0 %v2969_v23  ;;  %v481_v0 = vrot.slane %v453_v61, 1  ;;  %v546_v4 = vrot.slane %v453_v61, 2  ;;  %v283_v23 = vld [vmem:[%s3228_s12 + $0x5c] sm:$0x3] }
  0x55   : > { %v3478_v5 = vsel %vm464_vm0, %v480_v63, %v481_v0  ;;  %v3481_v6 = vsel %vm529_vm1, %v545_v3, %v546_v4  ;;  %v489_v4 = vrot.slane %v3362_v49, 1 }
  0x56   : > { %1776 = vmatpush.bf16.msra.mxu2 %v2952_v55  ;;  %1865 = vmatpush.bf16.msra.mxu3 %v2960_v60  ;;  %v286_v60 = vld [vmem:[%s3228_s12 + $0x68] sm:$0x3] }
  0x57   : > { %1460 = vmatpush.bf16.msra.mxu1 %v2920_v62  ;;  %v440_v61 = vunpack.c.l.b16 %v286_v60  ;;  %v2966_v60 = vld [vmem:[%s4004_s1 + $0x218] sm:$0xff] }
  0x59   : > { %v456_v3 = vpack.c.b16 %v440_v61, %v440_v61  ;;  %v492_v61 = vrot.slane %v3390_v57, 1 }
  0x5a   : > { %1777 = vmatpush.bf16.msra.mxu2 %v2951_v24  ;;  %1866 = vmatpush.bf16.msra.mxu3 %v2959_v27  ;;  %v289_v24 = vld [vmem:[%s3228_s12 + $0x74] sm:$0x3] }
  0x5b   : > { %v490_v7 = vrot.slane %v456_v3, 1  ;;  %v441_v27 = vunpack.c.l.b16 %v289_v24 }
  0x5c   : > { %892 = vmatmul.bf16.gmra.mxu0 %v3387_v56  ;;  %912 = vmatmul.bf16.gmra.mxu1 %v3390_v57 }
  0x5d   : > { %932 = vmatmul.bf16.gmra.mxu2 %v3393_v58  ;;  %952 = vmatmul.bf16.gmra.mxu3 %v3396_v59 }
  0x6c   : > { %966 = vmatmul.bf16.vlgmr.msrb.gmra.mxu1 %v473_v9  ;;  %1377 = vmatmul.bf16.vlgmr.msrb.gmra.mxu0 %v467_v14  ;;  %v483_v14 = vrot.slane %v3240_v11, 1 }
  0x6d   : > { %1055 = vmatmul.bf16.vlgmr.msrb.gmra.mxu2 %v3416_v15  ;;  %1288 = vmatmul.bf16.vlgmr.msrb.gmra.mxu3 %v3405_v1 }
  0x7c   : > { %971 = vmatmul.bf16.gmra.mxu1 %v476_v37  ;;  %1382 = vmatmul.bf16.gmra.mxu0 %v470_v38  ;;  %v2967_v38 = vld [vmem:[%s4004_s1 + $0x220] sm:$0xff] }
  0x7d   : > { %1060 = vmatmul.bf16.gmra.mxu2 %v3446_v39  ;;  %1293 = vmatmul.bf16.gmra.mxu3 %v3435_v25 }
  0x8c   : > { %976 = vmatmul.bf16.gmra.mxu1 %v3454_v47  ;;  %1387 = vmatmul.bf16.gmra.mxu0 %v473_v9  ;;  %v454_v9 = vpack.c.b16 %v438_v8, %v438_v8  ;;  %v554_v8 = vrot.slane %v3362_v49, 2 }
  0x8d   : > { %1065 = vmatmul.bf16.gmra.mxu2 %v3457_v52  ;;  %1298 = vmatmul.bf16.gmra.mxu3 %v3237_v10  ;;  %v2968_v10 = vld [vmem:[%s4004_s1 + $0x228] sm:$0xff] }
  0x8e   : > { %1954 = vmatpush.bf16.msra.mxu0 %v2968_v10  ;;  %v484_v16 = vrot.slane %v454_v9, 1  ;;  %v549_v18 = vrot.slane %v454_v9, 2  ;;  %v555_v9 = vrot.slane %v456_v3, 2 }
  0x90   : > { %v3494_v21 = vsel %vm464_vm0, %v483_v14, %v484_v16  ;;  %v3497_v22 = vsel %vm529_vm1, %v548_v17, %v549_v18 }
  0x92   : > { %1955 = vmatpush.bf16.msra.mxu0 %v2967_v38 }
  0x96   : > { %1956 = vmatpush.bf16.msra.mxu0 %v2966_v60 }
  0x9c   : > { %981 = vmatmul.bf16.gmra.mxu1 %v3478_v5  ;;  %1392 = vmatmul.bf16.gmra.mxu0 %v476_v37  ;;  %v2919_v37 = vld [vmem:[%s4004_s1 + $0xa0] sm:$0xff] }
  0x9d   : > { %1070 = vmatmul.bf16.gmra.mxu2 %v3481_v6  ;;  %1303 = vmatmul.bf16.gmra.mxu3 %v3301_v30  ;;  %v439_v30 = vunpack.c.l.b16 %v283_v23  ;;  %v3564_v23 = vsel %vm464_vm0, %v489_v4, %v490_v7  ;;  %v557_v4 = vrot.slane %v3390_v57, 2 }
  0x9e   : > { %1461 = vmatpush.bf16.msra.mxu1 %v2919_v37  ;;  %4026 = vst [vmem:[#allocation9_spill] sm:$0xff] %v3564_v23  ;;  %v2958_v37 = vld [vmem:[%s4004_s1 + $0x1d8] sm:$0xff] }
  0x9f   : > { %v455_v36 = vpack.c.b16 %v439_v30, %v439_v30  ;;  %v3567_v30 = vsel %vm529_vm1, %v554_v8, %v555_v9  ;;  %1867 = vmatpush.bf16.msra.mxu3 %v2958_v37 }
  0xa0   : > { %4027 = vst [vmem:[#allocation10_spill] sm:$0xff] %v3567_v30 }
  0xa1   : > { %v487_v41 = vrot.slane %v455_v36, 1  ;;  %v552_v43 = vrot.slane %v455_v36, 2  ;;  %v2950_v36 = vld [vmem:[%s4004_s1 + $0x198] sm:$0xff] }
  0xa2   : > { %1778 = vmatpush.bf16.msra.mxu2 %v2950_v36 }
  0xa3   : > { %v3535_v54 = vsel %vm464_vm0, %v486_v40, %v487_v41  ;;  %v3538_v55 = vsel %vm529_vm1, %v551_v42, %v552_v43  ;;  %v2918_v43 = vld [vmem:[%s4004_s1 + $0x98] sm:$0xff] }
  0xa4   : > { %4022 = vst [vmem:[#allocation5_spill] sm:$0xff] %v3535_v54  ;;  %1462 = vmatpush.bf16.msra.mxu1 %v2918_v43 }
  0xa5   : > { %4023 = vst [vmem:[#allocation6_spill] sm:$0xff] %v3538_v55 }
  0xa9   : > { %v3489_v19 = vpop.f32.mrf.mxu0  ;;  %v3491_v20 = vpop.f32.mrf.mxu1 }
  0xac   : > { %986 = vmatmul.bf16.gmra.mxu1 %v3494_v21  ;;  %1397 = vmatmul.bf16.gmra.mxu0 %v3454_v47 }
  0xad   : > { %1075 = vmatmul.bf16.gmra.mxu2 %v3497_v22  ;;  %1308 = vmatmul.bf16.gmra.mxu3 %v3359_v48 }
  0xb0   : > { %v3510_v28 = vpop.f32.mrf.mxu2  ;;  %v3512_v29 = vpop.f32.mrf.mxu3 }
  0xb1   : > { %4020 = vst [vmem:[#allocation3_spill] sm:$0xff] %v3512_v29  ;;  %v3514_v34 = vpop.f32.mrf.mxu0  ;;  %v3516_v35 = vpop.f32.mrf.mxu1 }
  0xb8   : > { %v3526_v44 = vpop.f32.mrf.mxu2  ;;  %v3528_v45 = vpop.f32.mrf.mxu3 }
  0xb9   : > { %4021 = vst [vmem:[#allocation4_spill] sm:$0xff] %v3528_v45  ;;  %v3530_v46 = vpop.f32.mrf.mxu0  ;;  %v3532_v53 = vpop.f32.mrf.mxu1 }
  0xbc   : > { %991 = vmatmul.bf16.gmra.mxu1 %v3535_v54  ;;  %1402 = vmatmul.bf16.gmra.mxu0 %v3478_v5 }
  0xbd   : > { %1080 = vmatmul.bf16.gmra.mxu2 %v3538_v55  ;;  %1313 = vmatmul.bf16.gmra.mxu3 %v3387_v56 }
  0xc0   : > { %v3545_v62 = vpop.f32.mrf.mxu2  ;;  %v3547_v10 = vpop.f32.mrf.mxu3 }
  0xc1   : > { %4024 = vst [vmem:[#allocation7_spill] sm:$0xff] %v3547_v10  ;;  %v3549_v63 = vpop.f32.mrf.mxu0  ;;  %v3551_v0 = vpop.f32.mrf.mxu1 }
  0xc8   : > { %v3555_v14 = vpop.f32.mrf.mxu2  ;;  %v3557_v16 = vpop.f32.mrf.mxu3 }
  0xc9   : > { %4025 = vst [vmem:[#allocation8_spill] sm:$0xff] %v3557_v16  ;;  %v3559_v17 = vpop.f32.mrf.mxu0  ;;  %v3561_v18 = vpop.f32.mrf.mxu1  ;;  %v560_v16 = vrot.slane %v3243_v12, 2 }
  0xcc   : > { %996 = vmatmul.bf16.gmra.mxu1 %v3564_v23  ;;  %1407 = vmatmul.bf16.gmra.mxu0 %v3494_v21 }
  0xcd   : > { %1085 = vmatmul.bf16.gmra.mxu2 %v3567_v30  ;;  %1318 = vmatmul.bf16.gmra.mxu3 %v3240_v11  ;;  %v457_v11 = vpack.c.b16 %v441_v27, %v441_v27 }
  0xcf   : > { %v493_v3 = vrot.slane %v457_v11, 1  ;;  %v558_v7 = vrot.slane %v457_v11, 2 }
  0xd0   : > { %v3580_v38 = vpop.f32.mrf.mxu2  ;;  %v3582_v40 = vpop.f32.mrf.mxu3 }
  0xd1   : > { %4028 = vst [vmem:[#allocation11_spill] sm:$0xff] %v3582_v40  ;;  %v3584_v41 = vpop.f32.mrf.mxu0  ;;  %v3586_v42 = vpop.f32.mrf.mxu1  ;;  %v3605_v36 = vsel %vm464_vm0, %v492_v61, %v493_v3  ;;  %v3608_v37 = vsel %vm529_vm1, %v557_v4, %v558_v7  ;;  %v292_v40 = vld [vmem:[%s3228_s12 + $0x80] sm:$0x3]  ;;  %v495_v7 = vrot.slane %v3243_v12, 1 }
  0xd2   : > { %4030 = vst [vmem:[#allocation13_spill] sm:$0xff] %v3608_v37  ;;  %v442_v11 = vunpack.c.l.b16 %v292_v40 }
  0xd4   : > { %v458_v4 = vpack.c.b16 %v442_v11, %v442_v11  ;;  %v295_v11 = vld [vmem:[%s3228_s12 + $0x8c] sm:$0x3] }
  0xd6   : > { %v561_v10 = vrot.slane %v458_v4, 2 }
  0xd8   : > { %v3596_v8 = vpop.f32.mrf.mxu2  ;;  %v3598_v9 = vpop.f32.mrf.mxu3  ;;  %v3634_v30 = vsel %vm529_vm1, %v560_v16, %v561_v10 }
  0xd9   : > { %4029 = vst [vmem:[#allocation12_spill] sm:$0xff] %v3598_v9  ;;  %v3600_v24 = vpop.f32.mrf.mxu0  ;;  %v3602_v27 = vpop.f32.mrf.mxu1  ;;  %v496_v9 = vrot.slane %v458_v4, 1  ;;  %v443_v4 = vunpack.c.l.b16 %v295_v11  ;;  %v2917_v11 = vld [vmem:[%s4004_s1 + $0x90] sm:$0xff] }
  0xda   : > { %4035 = vst [vmem:[#allocation18_spill] sm:$0xff] %v3634_v30  ;;  %1463 = vmatpush.bf16.msra.mxu1 %v2917_v11  ;;  %v298_v11 = vld [vmem:[%s3228_s12 + $0x98] sm:$0x3] }
  0xdb   : > { %v3630_v29 = vsel %vm464_vm0, %v495_v7, %v496_v9  ;;  %v2949_v9 = vld [vmem:[%s4004_s1 + $0x190] sm:$0xff] }
  0xdc   : > { %1001 = vmatmul.bf16.gmra.mxu1 %v3605_v36  ;;  %1412 = vmatmul.bf16.gmra.mxu0 %v3535_v54 }
  0xdd   : > { %1090 = vmatmul.bf16.gmra.mxu2 %v3608_v37  ;;  %1323 = vmatmul.bf16.gmra.mxu3 %v3304_v31 }
  0xde   : > { %1779 = vmatpush.bf16.msra.mxu2 %v2949_v9  ;;  %v498_v9 = vrot.slane %v3307_v32, 1 }
  0xe0   : > { %v3615_v43 = vpop.f32.mrf.mxu2  ;;  %v3617_v60 = vpop.f32.mrf.mxu3 }
  0xe1   : > { %4031 = vst [vmem:[#allocation14_spill] sm:$0xff] %v3615_v43  ;;  %v3619_v61 = vpop.f32.mrf.mxu0  ;;  %v3621_v3 = vpop.f32.mrf.mxu1 }
  0xe2   : > { %4032 = vst [vmem:[#allocation15_spill] sm:$0xff] %v3617_v60 }
  0xe8   : > { %v3625_v37 = vpop.f32.mrf.mxu2  ;;  %v3627_v31 = vpop.f32.mrf.mxu3 }
  0xe9   : > { %4033 = vst [vmem:[#allocation16_spill] sm:$0xff] %v3625_v37  ;;  %v967_v40 = vpop.f32.mrf.mxu1  ;;  %v1378_v45 = vpop.f32.mrf.mxu0  ;;  %v2965_v37 = vld [vmem:[%s4004_s1 + $0x210] sm:$0xff] }
  0xea   : > { %4034 = vst [vmem:[#allocation17_spill] sm:$0xff] %v3627_v31  ;;  %v968_v60 = vadd.f32 %v967_v40, %v3489_v19  ;;  %v2957_v19 = vld [vmem:[%s4004_s1 + $0x1d0] sm:$0xff]  ;;  %1957 = vmatpush.bf16.msra.mxu0 %v2965_v37 }
  0xeb   : > { %1868 = vmatpush.bf16.msra.mxu3 %v2957_v19 }
  0xec   : > { %1006 = vmatmul.bf16.gmra.mxu1 %v3630_v29  ;;  %1417 = vmatmul.bf16.gmra.mxu0 %v3564_v23  ;;  %v459_v23 = vpack.c.b16 %v443_v4, %v443_v4  ;;  %v563_v4 = vrot.slane %v3307_v32, 2 }
  0xed   : > { %1095 = vmatmul.bf16.gmra.mxu2 %v3634_v30  ;;  %1328 = vmatmul.bf16.gmra.mxu3 %v3362_v49 }
  0xee   : > { %v499_v19 = vrot.slane %v459_v23, 1 }
  0xf0   : > { %v1056_v10 = vpop.f32.mrf.mxu2  ;;  %v1289_v16 = vpop.f32.mrf.mxu3  ;;  %v3659_v54 = vsel %vm464_vm0, %v498_v9, %v499_v19 }
  0xf1   : > { %v1057_v7 = vadd.f32 %v1056_v10, %v968_v60  ;;  %v969_v40 = vpop.f32.mrf.mxu1  ;;  %v1380_v31 = vpop.f32.mrf.mxu0 }
  0xf2   : > { %v970_v30 = vadd.f32 %v969_v40, %v3514_v34  ;;  %v564_v34 = vrot.slane %v459_v23, 2 }
  0xf3   : > { %v1290_v49 = vadd.f32 %v1289_v16, %v1057_v7 }
  0xf4   : > { %v3663_v39 = vsel %vm529_vm1, %v563_v4, %v564_v34 }
  0xf5   : > { %v3655_v60 = vadd.f32 %v1378_v45, %v1290_v49  ;;  %v444_v45 = vunpack.c.l.b16 %v298_v11 }
  0xf7   : > { %4036 = vst [vmem:[#allocation19_spill] sm:$0xff] %v3655_v60  ;;  %v460_v4 = vpack.c.b16 %v444_v45, %v444_v45 }
  0xf8   : > { %v1058_v10 = vpop.f32.mrf.mxu2  ;;  %v1291_v16 = vpop.f32.mrf.mxu3 }
  0xf9   : > { %v1059_v7 = vadd.f32 %v1058_v10, %v970_v30  ;;  %v972_v40 = vpop.f32.mrf.mxu1  ;;  %v1383_v43 = vpop.f32.mrf.mxu0  ;;  %v567_v11 = vrot.slane %v460_v4, 2 }
  0xfa   : > { %v973_v55 = vadd.f32 %v972_v40, %v3530_v46 }
  0xfb   : > { %v1292_v37 = vadd.f32 %v1291_v16, %v1059_v7  ;;  %v501_v16 = vrot.slane %v3365_v50, 1  ;;  %v502_v7 = vrot.slane %v460_v4, 1 }
  0xfc   : > { %1011 = vmatmul.bf16.gmra.mxu1 %v3659_v54  ;;  %1422 = vmatmul.bf16.gmra.mxu0 %v3605_v36 }
  0xfd   : > { %1100 = vmatmul.bf16.gmra.mxu2 %v3663_v39  ;;  %1333 = vmatmul.bf16.gmra.mxu3 %v3390_v57  ;;  %v3670_v23 = vadd.f32 %v1380_v31, %v1292_v37  ;;  %v566_v57 = vrot.slane %v3365_v50, 2 }
  0xff   : > { %4037 = vst [vmem:[#allocation20_spill] sm:$0xff] %v3670_v23 }
 0x100   : > { %v1061_v30 = vpop.f32.mrf.mxu2  ;;  %v1294_v49 = vpop.f32.mrf.mxu3 }
 0x101   : > { %v1062_v9 = vadd.f32 %v1061_v30, %v973_v55  ;;  %v974_v46 = vpop.f32.mrf.mxu1  ;;  %v1385_v19 = vpop.f32.mrf.mxu0  ;;  %v3678_v30 = vsel %vm464_vm0, %v501_v16, %v502_v7 }
 0x102   : > { %v975_v34 = vadd.f32 %v974_v46, %v3549_v63  ;;  %v3682_v63 = vsel %vm529_vm1, %v566_v57, %v567_v11  ;;  %v2948_v46 = vld [vmem:[%s4004_s1 + $0x188] sm:$0xff] }
 0x103   : > { %v1295_v10 = vadd.f32 %v1294_v49, %v1062_v9  ;;  %v301_v49 = vld [vmem:[%s3228_s12 + $0xa4] sm:$0x3]  ;;  %1780 = vmatpush.bf16.msra.mxu2 %v2948_v46  ;;  %v2916_v11 = vld [vmem:[%s4004_s1 + $0x88] sm:$0xff] }
 0x104   : > { %1464 = vmatpush.bf16.msra.mxu1 %v2916_v11  ;;  %v304_v11 = vld [vmem:[%s3228_s12 + $0xb0] sm:$0x3] }
 0x105   : > { %v3674_v40 = vadd.f32 %v1383_v43, %v1295_v10  ;;  %v445_v43 = vunpack.c.l.b16 %v301_v49  ;;  %v569_v49 = vrot.slane %v3393_v58, 2 }
 0x107   : > { %v461_v7 = vpack.c.b16 %v445_v43, %v445_v43 }
 0x108   : > { %v1063_v31 = vpop.f32.mrf.mxu2  ;;  %v1296_v37 = vpop.f32.mrf.mxu3 }
 0x109   : > { %v1064_v23 = vadd.f32 %v1063_v31, %v975_v34  ;;  %v977_v60 = vpop.f32.mrf.mxu1  ;;  %v1388_v55 = vpop.f32.mrf.mxu0  ;;  %v504_v31 = vrot.slane %v3393_v58, 1 }
 0x10a   : > { %v978_v45 = vadd.f32 %v977_v60, %v3559_v17  ;;  %v2956_v17 = vld [vmem:[%s4004_s1 + $0x1c8] sm:$0xff] }
 0x10b   : > { %v1297_v9 = vadd.f32 %v1296_v37, %v1064_v23  ;;  %1869 = vmatpush.bf16.msra.mxu3 %v2956_v17  ;;  %v505_v37 = vrot.slane %v461_v7, 1 }
 0x10c   : > { %1016 = vmatmul.bf16.gmra.mxu1 %v3678_v30  ;;  %1427 = vmatmul.bf16.gmra.mxu0 %v3630_v29 }
 0x10d   : > { %1105 = vmatmul.bf16.gmra.mxu2 %v3682_v63  ;;  %1338 = vmatmul.bf16.gmra.mxu3 %v3243_v12  ;;  %v3695_v60 = vadd.f32 %v1385_v19, %v1297_v9  ;;  %v2964_v19 = vld [vmem:[%s4004_s1 + $0x208] sm:$0xff] }
 0x10e   : > { %1958 = vmatpush.bf16.msra.mxu0 %v2964_v19 }
 0x110   : > { %v1066_v23 = vpop.f32.mrf.mxu2  ;;  %v1299_v4 = vpop.f32.mrf.mxu3 }
 0x111   : > { %v1067_v34 = vadd.f32 %v1066_v23, %v978_v45  ;;  %v979_v10 = vpop.f32.mrf.mxu1  ;;  %v1390_v16 = vpop.f32.mrf.mxu0 }
 0x112   : > { %v980_v12 = vadd.f32 %v979_v10, %v3584_v41  ;;  %v570_v41 = vrot.slane %v461_v7, 2 }
 0x113   : > { %v1300_v57 = vadd.f32 %v1299_v4, %v1067_v34  ;;  %v3709_v4 = vsel %vm464_vm0, %v504_v31, %v505_v37 }
 0x114   : > { %v3713_v10 = vsel %vm529_vm1, %v569_v49, %v570_v41 }
 0x115   : > { %v3705_v45 = vadd.f32 %v1388_v55, %v1300_v57  ;;  %v446_v55 = vunpack.c.l.b16 %v304_v11 }
 0x117   : > { %4038 = vst [vmem:[#allocation21_spill] sm:$0xff] %v3705_v45  ;;  %v462_v49 = vpack.c.b16 %v446_v55, %v446_v55 }
 0x118   : > { %v1068_v9 = vpop.f32.mrf.mxu2  ;;  %v1301_v43 = vpop.f32.mrf.mxu3 }
 0x119   : > { %v1069_v46 = vadd.f32 %v1068_v9, %v980_v12  ;;  %v982_v17 = vpop.f32.mrf.mxu1  ;;  %v1393_v23 = vpop.f32.mrf.mxu0  ;;  %v573_v11 = vrot.slane %v462_v49, 2 }
 0x11a   : > { %v983_v34 = vadd.f32 %v982_v17, %v3600_v24 }
 0x11b   : > { %v1302_v19 = vadd.f32 %v1301_v43, %v1069_v46  ;;  %v507_v43 = vrot.slane %v3246_v13, 1  ;;  %v508_v46 = vrot.slane %v462_v49, 1 }
 0x11c   : > { %1021 = vmatmul.bf16.gmra.mxu1 %v3709_v4  ;;  %1432 = vmatmul.bf16.gmra.mxu0 %v3659_v54 }
 0x11d   : > { %1110 = vmatmul.bf16.gmra.mxu2 %v3713_v10  ;;  %1343 = vmatmul.bf16.gmra.mxu3 %v3307_v32  ;;  %v3720_v7 = vadd.f32 %v1390_v16, %v1302_v19  ;;  %v572_v32 = vrot.slane %v3246_v13, 2 }
 0x11f   : > { %4039 = vst [vmem:[#allocation22_spill] sm:$0xff] %v3720_v7  ;;  %v3731_v55 = vsel %vm529_vm1, %v572_v32, %v573_v11 }
 0x120   : > { %v1071_v12 = vpop.f32.mrf.mxu2  ;;  %v1304_v57 = vpop.f32.mrf.mxu3 }
 0x121   : > { %v1072_v31 = vadd.f32 %v1071_v12, %v983_v34  ;;  %v984_v24 = vpop.f32.mrf.mxu1  ;;  %v1395_v37 = vpop.f32.mrf.mxu0  ;;  %v3728_v12 = vsel %vm464_vm0, %v507_v43, %v508_v46 }
 0x122   : > { %v985_v41 = vadd.f32 %v984_v24, %v3619_v61  ;;  %v307_v61 = vld [vmem:[%s3228_s12 + $0xbc] sm:$0x3]  ;;  %v2955_v24 = vld [vmem:[%s4004_s1 + $0x1c0] sm:$0xff] }
 0x123   : > { %v1305_v9 = vadd.f32 %v1304_v57, %v1072_v31  ;;  %v2947_v31 = vld [vmem:[%s4004_s1 + $0x180] sm:$0xff]  ;;  %1870 = vmatpush.bf16.msra.mxu3 %v2955_v24 }
 0x124   : > { %1781 = vmatpush.bf16.msra.mxu2 %v2947_v31 }
 0x125   : > { %v3724_v17 = vadd.f32 %v1393_v23, %v1305_v9  ;;  %v447_v23 = vunpack.c.l.b16 %v307_v61  ;;  %v575_v61 = vrot.slane %v3310_v33, 2 }
 0x127   : > { %v463_v32 = vpack.c.b16 %v447_v23, %v447_v23 }
 0x128   : > { %v1073_v16 = vpop.f32.mrf.mxu2  ;;  %v1306_v19 = vpop.f32.mrf.mxu3 }
 0x129   : > { %v1074_v7 = vadd.f32 %v1073_v16, %v985_v41  ;;  %v987_v45 = vpop.f32.mrf.mxu1  ;;  %v1398_v34 = vpop.f32.mrf.mxu0  ;;  %v2915_v16 = vld [vmem:[%s4004_s1 + $0x80] sm:$0xff] }
 0x12a   : > { %1465 = vmatpush.bf16.msra.mxu1 %v2915_v16  ;;  %v310_v16 = vld [vmem:[%s3228_s12 + $0xc8] sm:$0x3] }
 0x12b   : > { %v1307_v57 = vadd.f32 %v1306_v19, %v1074_v7  ;;  %v988_v7 = vadd.f32 %v987_v45, %v3491_v20  ;;  %v510_v20 = vrot.slane %v3310_v33, 1  ;;  %v511_v45 = vrot.slane %v463_v32, 1 }
 0x12c   : > { %1026 = vmatmul.bf16.gmra.mxu1 %v3728_v12  ;;  %1437 = vmatmul.bf16.gmra.mxu0 %v3678_v30 }
 0x12d   : > { %1115 = vmatmul.bf16.gmra.mxu2 %v3731_v55  ;;  %1348 = vmatmul.bf16.gmra.mxu3 %v3365_v50  ;;  %v3744_v49 = vadd.f32 %v1395_v37, %v1307_v57  ;;  %v2963_v37 = vld [vmem:[%s4004_s1 + $0x200] sm:$0xff]  ;;  %v576_v57 = vrot.slane %v463_v32, 2 }
 0x12e   : > { %1959 = vmatpush.bf16.msra.mxu0 %v2963_v37 }
 0x12f   : > { %4040 = vst [vmem:[#allocation23_spill] sm:$0xff] %v3744_v49  ;;  %v3762_v49 = vsel %vm529_vm1, %v575_v61, %v576_v57 }
 0x130   : > { %v1076_v41 = vpop.f32.mrf.mxu2  ;;  %v1309_v9 = vpop.f32.mrf.mxu3 }
 0x131   : > { %v1077_v43 = vadd.f32 %v1076_v41, %v988_v7  ;;  %v989_v46 = vpop.f32.mrf.mxu1  ;;  %v1400_v50 = vpop.f32.mrf.mxu0 }
 0x132   : > { %v990_v23 = vadd.f32 %v989_v46, %v3516_v35  ;;  %v656_v35 = vunpack.c.l.b16 %v310_v16 }
 0x133   : > { %v1310_v11 = vadd.f32 %v1309_v9, %v1077_v43  ;;  %v3759_v43 = vsel %vm464_vm0, %v510_v20, %v511_v45 }
 0x134   : > { %v658_v57 = vpack.c.b16 %v656_v35, %v656_v35 }
 0x135   : > { %v3754_v19 = vadd.f32 %v1398_v34, %v1310_v11 }
 0x136   : > { %v669_v16 = vrot.slane %v658_v57, 2 }
 0x138   : > { %v1078_v31 = vpop.f32.mrf.mxu2  ;;  %v1311_v24 = vpop.f32.mrf.mxu3 }
 0x139   : > { %v1079_v7 = vadd.f32 %v1078_v31, %v990_v23  ;;  %v992_v41 = vpop.f32.mrf.mxu1  ;;  %v1403_v9 = vpop.f32.mrf.mxu0  ;;  %v660_v31 = vrot.slane %v3368_v51, 1 }
 0x13a   : > { %v993_v46 = vadd.f32 %v992_v41, %v3532_v53 }
 0x13b   : > { %v1312_v37 = vadd.f32 %v1311_v24, %v1079_v7  ;;  %v661_v24 = vrot.slane %v658_v57, 1 }
 0x13c   : > { %1031 = vmatmul.bf16.gmra.mxu1 %v3759_v43  ;;  %1442 = vmatmul.bf16.gmra.mxu0 %v3709_v4 }
 0x13d   : > { %1120 = vmatmul.bf16.gmra.mxu2 %v3762_v49  ;;  %1353 = vmatmul.bf16.gmra.mxu3 %v3393_v58  ;;  %v3769_v34 = vadd.f32 %v1400_v50, %v1312_v37  ;;  %v668_v58 = vrot.slane %v3368_v51, 2 }
 0x13f   : > { %4041 = vst [vmem:[#allocation24_spill] sm:$0xff] %v3769_v34  ;;  %v3781_v35 = vsel %vm529_vm1, %v668_v58, %v669_v16 }
 0x140   : > { %v1081_v32 = vpop.f32.mrf.mxu2  ;;  %v1314_v11 = vpop.f32.mrf.mxu3 }
 0x141   : > { %v1082_v20 = vadd.f32 %v1081_v32, %v993_v46  ;;  %v994_v45 = vpop.f32.mrf.mxu1  ;;  %v1405_v61 = vpop.f32.mrf.mxu0  ;;  %v3778_v32 = vsel %vm464_vm0, %v660_v31, %v661_v24 }
 0x142   : > { %v995_v50 = vadd.f32 %v994_v45, %v3551_v0 }
 0x143   : > { %v1315_v23 = vadd.f32 %v1314_v11, %v1082_v20  ;;  %v313_v11 = vld [vmem:[%s3228_s12 + $0xd4] sm:$0x3] }
 0x144   : > { %v657_v51 = vunpack.c.l.b16 %v313_v11 }
 0x145   : > { %v3773_v7 = vadd.f32 %v1403_v9, %v1315_v23 }
 0x146   : > { %v659_v58 = vpack.c.b16 %v657_v51, %v657_v51 }
 0x148   : > { %v1083_v37 = vpop.f32.mrf.mxu2  ;;  %v1316_v53 = vpop.f32.mrf.mxu3 }
 0x149   : > { %v1084_v41 = vadd.f32 %v1083_v37, %v995_v50  ;;  %v997_v34 = vpop.f32.mrf.mxu1  ;;  %v1408_v46 = vpop.f32.mrf.mxu0  ;;  %v663_v50 = vrot.slane %v3396_v59, 1  ;;  %v664_v37 = vrot.slane %v659_v58, 1 }
 0x14a   : > { %v998_v9 = vadd.f32 %v997_v34, %v3561_v18 }
 0x14b   : > { %v1317_v20 = vadd.f32 %v1316_v53, %v1084_v41  ;;  %v671_v41 = vrot.slane %v3396_v59, 2 }
 0x14c   : > { %1036 = vmatmul.bf16.gmra.mxu1 %v3778_v32  ;;  %1447 = vmatmul.bf16.gmra.mxu0 %v3728_v12 }
 0x14d   : > { %1125 = vmatmul.bf16.gmra.mxu2 %v3781_v35  ;;  %1358 = vmatmul.bf16.gmra.mxu3 %v3246_v13  ;;  %v3788_v0 = vadd.f32 %v1405_v61, %v1317_v20  ;;  %v672_v13 = vrot.slane %v659_v58, 2 }
 0x14f   : > { %4042 = vst [vmem:[#allocation25_spill] sm:$0xff] %v3788_v0  ;;  %v3800_v51 = vsel %vm529_vm1, %v671_v41, %v672_v13 }
 0x150   : > { %v1086_v45 = vpop.f32.mrf.mxu2  ;;  %v1319_v57 = vpop.f32.mrf.mxu3 }
 0x151   : > { %v1087_v23 = vadd.f32 %v1086_v45, %v998_v9  ;;  %v999_v31 = vpop.f32.mrf.mxu1  ;;  %v1410_v24 = vpop.f32.mrf.mxu0  ;;  %v3797_v9 = vsel %vm464_vm0, %v663_v50, %v664_v37  ;;  %v530_v50 = vrot.slane %v3405_v1, 2  ;;  %v531_v37 = vrot.slane %v3407_v2, 2 }
 0x152   : > { %v1000_v61 = vadd.f32 %v999_v31, %v3586_v42 }
 0x153   : > { %v1320_v16 = vadd.f32 %v1319_v57, %v1087_v23 }
 0x155   : > { %v3792_v53 = vadd.f32 %v1408_v46, %v1320_v16 }
 0x158   : > { %v1088_v11 = vpop.f32.mrf.mxu2  ;;  %v1321_v20 = vpop.f32.mrf.mxu3 }
 0x159   : > { %v1089_v18 = vadd.f32 %v1088_v11, %v1000_v61  ;;  %v1002_v34 = vpop.f32.mrf.mxu1  ;;  %v1413_v0 = vpop.f32.mrf.mxu0 }
 0x15a   : > { %v1003_v42 = vadd.f32 %v1002_v34, %v3602_v27  ;;  %v532_v27 = vsel %vm529_vm1, %v530_v50, %v531_v37 }
 0x15b   : > { %v1322_v45 = vadd.f32 %v1321_v20, %v1089_v18 }
 0x15c   : > { %1041 = vmatmul.bf16.gmra.mxu1 %v3797_v9  ;;  %1452 = vmatmul.bf16.gmra.mxu0 %v3759_v43 }
 0x15d   : > { %1130 = vmatmul.bf16.gmra.mxu2 %v3800_v51  ;;  %1363 = vmatmul.bf16.gmra.mxu3 %v3310_v33  ;;  %v3806_v59 = vadd.f32 %v1410_v24, %v1322_v45 }
 0x160   : > { %v1091_v46 = vpop.f32.mrf.mxu2  ;;  %v1324_v57 = vpop.f32.mrf.mxu3 }
 0x161   : > { %v1092_v23 = vadd.f32 %v1091_v46, %v1003_v42  ;;  %v1004_v31 = vpop.f32.mrf.mxu1  ;;  %v1415_v58 = vpop.f32.mrf.mxu0 }
 0x162   : > { %v1005_v13 = vadd.f32 %v1004_v31, %v3621_v3 }
 0x163   : > { %v1325_v16 = vadd.f32 %v1324_v57, %v1092_v23  ;;  %v533_v57 = vrot.slane %v3435_v25, 2  ;;  %v534_v23 = vrot.slane %v3437_v26, 2 }
 0x165   : > { %v3811_v41 = vadd.f32 %v1413_v0, %v1325_v16 }
 0x168   : > { %v1093_v61 = vpop.f32.mrf.mxu2  ;;  %v1326_v33 = vpop.f32.mrf.mxu3 }
 0x169   : > { %v1094_v24 = vadd.f32 %v1093_v61, %v1005_v13  ;;  %v1007_v11 = vpop.f32.mrf.mxu1  ;;  %v1418_v20 = vpop.f32.mrf.mxu0 }
 0x16a   : > { %v1008_v2 = vadd.f32 %v1007_v11, %v3510_v28  ;;  %v535_v28 = vsel %vm529_vm1, %v533_v57, %v534_v23 }
 0x16b   : > { %v1327_v18 = vadd.f32 %v1326_v33, %v1094_v24 }
 0x16c   : > { %1466 = vmatmul.bf16.vlgmr.msra.gmra.mxu1 %v532_v27  ;;  %1960 = vmatmul.bf16.vlgmr.msra.gmra.mxu0 %v3457_v52 }
 0x16d   : > { %1782 = vmatmul.bf16.vlgmr.msra.gmra.mxu2 %v3359_v48  ;;  %1871 = vmatmul.bf16.vlgmr.msra.gmra.mxu3 %v3454_v47  ;;  %v3818_v1 = vadd.f32 %v1415_v58, %v1327_v18 }
 0x170   : > { %v1096_v3 = vpop.f32.mrf.mxu2  ;;  %v1329_v0 = vpop.f32.mrf.mxu3 }
 0x171   : > { %v1097_v34 = vadd.f32 %v1096_v3, %v1008_v2  ;;  %v1009_v45 = vpop.f32.mrf.mxu1  ;;  %v1420_v42 = vpop.f32.mrf.mxu0 }
 0x172   : > { %v1010_v48 = vadd.f32 %v1009_v45, %v3526_v44 }
 0x173   : > { %v1330_v46 = vadd.f32 %v1329_v0, %v1097_v34 }
 0x175   : > { %v3823_v31 = vadd.f32 %v1418_v20, %v1330_v46 }
 0x178   : > { %v1098_v16 = vpop.f32.mrf.mxu2  ;;  %v1331_v47 = vpop.f32.mrf.mxu3 }
 0x179   : > { %v1099_v58 = vadd.f32 %v1098_v16, %v1010_v48  ;;  %v1012_v50 = vpop.f32.mrf.mxu1  ;;  %v1423_v37 = vpop.f32.mrf.mxu0 }
 0x17a   : > { %v1013_v26 = vadd.f32 %v1012_v50, %v3545_v62  ;;  %v3115_v62 = vld [vmem:[%s3228_s12 + $0x48] sm:$0xff] }
 0x17b   : > { %v1332_v13 = vadd.f32 %v1331_v47, %v1099_v58 }
 0x17c   : > { %1471 = vmatmul.bf16.gmra.mxu1 %v535_v28  ;;  %1965 = vmatmul.bf16.gmra.mxu0 %v3481_v6 }
 0x17d   : > { %1787 = vmatmul.bf16.gmra.mxu2 %v3387_v56  ;;  %1876 = vmatmul.bf16.gmra.mxu3 %v3478_v5  ;;  %v3830_v25 = vadd.f32 %v1420_v42, %v1332_v13 }
 0x180   : > { %v1101_v44 = vpop.f32.mrf.mxu2  ;;  %v1334_v61 = vpop.f32.mrf.mxu3 }
 0x181   : > { %v1102_v33 = vadd.f32 %v1101_v44, %v1013_v26  ;;  %v1014_v24 = vpop.f32.mrf.mxu1  ;;  %v1425_v11 = vpop.f32.mrf.mxu0  ;;  %v4043_v26 = vld [vmem:[#allocation2_spill] sm:$0xff]  ;;  %v3116_v44 = vld [vmem:[%s3228_s12 + $0x54] sm:$0xff] }
 0x182   : > { %v1015_v18 = vadd.f32 %v1014_v24, %v3555_v14  ;;  %v4046_v24 = vld [vmem:[#allocation14_spill] sm:$0xff] }
 0x183   : > { %v1335_v20 = vadd.f32 %v1334_v61, %v1102_v33  ;;  %v4045_v61 = vld [vmem:[#allocation5_spill] sm:$0xff] }
 0x185   : > { %v3833_v27 = vadd.f32 %v1423_v37, %v1335_v20 }
 0x188   : > { %v1103_v2 = vpop.f32.mrf.mxu2  ;;  %v1336_v3 = vpop.f32.mrf.mxu3 }
 0x189   : > { %v1104_v56 = vadd.f32 %v1103_v2, %v1015_v18  ;;  %v1017_v0 = vpop.f32.mrf.mxu1  ;;  %v1428_v5 = vpop.f32.mrf.mxu0 }
 0x18a   : > { %v1018_v42 = vadd.f32 %v1017_v0, %v3580_v38  ;;  %v4044_v38 = vld [vmem:[#allocation6_spill] sm:$0xff] }
 0x18b   : > { %v1337_v34 = vadd.f32 %v1336_v3, %v1104_v56 }
 0x18c   : > { %1476 = vmatmul.bf16.gmra.mxu1 %v3416_v15  ;;  %1970 = vmatmul.bf16.gmra.mxu0 %v3497_v22 }
 0x18d   : > { %1792 = vmatmul.bf16.gmra.mxu2 %v3115_v62  ;;  %1881 = vmatmul.bf16.gmra.mxu3 %v3494_v21  ;;  %v3840_v45 = vadd.f32 %v1425_v11, %v1337_v34 }
 0x190   : > { %v1106_v46 = vpop.f32.mrf.mxu2  ;;  %v1339_v14 = vpop.f32.mrf.mxu3 }
 0x191   : > { %v1107_v57 = vadd.f32 %v1106_v46, %v1018_v42  ;;  %v1019_v23 = vpop.f32.mrf.mxu1  ;;  %v1430_v48 = vpop.f32.mrf.mxu0 }
 0x192   : > { %v1020_v15 = vadd.f32 %v1019_v23, %v3596_v8 }
 0x193   : > { %v1340_v16 = vadd.f32 %v1339_v14, %v1107_v57 }
 0x195   : > { %v3843_v47 = vadd.f32 %v1428_v5, %v1340_v16  ;;  %v4047_v5 = vld [vmem:[#allocation16_spill] sm:$0xff]  ;;  %v3117_v16 = vld [vmem:[%s3228_s12 + $0x60] sm:$0xff] }
 0x198   : > { %v1108_v58 = vpop.f32.mrf.mxu2  ;;  %v1341_v50 = vpop.f32.mrf.mxu3 }
 0x199   : > { %v1109_v37 = vadd.f32 %v1108_v58, %v1020_v15  ;;  %v1022_v28 = vpop.f32.mrf.mxu1  ;;  %v1433_v21 = vpop.f32.mrf.mxu0  ;;  %v4049_v15 = vld [vmem:[#allocation9_spill] sm:$0xff] }
 0x19a   : > { %v1023_v11 = vadd.f32 %v1022_v28, %v4046_v24 }
 0x19b   : > { %v1342_v13 = vadd.f32 %v1341_v50, %v1109_v37  ;;  %v4050_v50 = vld [vmem:[#allocation3_spill] sm:$0xff] }
 0x19c   : > { %1481 = vmatmul.bf16.gmra.mxu1 %v4043_v26  ;;  %1975 = vmatmul.bf16.gmra.mxu0 %v4044_v38 }
 0x19d   : > { %1797 = vmatmul.bf16.gmra.mxu2 %v3116_v44  ;;  %1886 = vmatmul.bf16.gmra.mxu3 %v4045_v61  ;;  %v3850_v33 = vadd.f32 %v1430_v48, %v1342_v13  ;;  %v4048_v48 = vld [vmem:[#allocation10_spill] sm:$0xff] }
 0x1a0   : > { %v1111_v20 = vpop.f32.mrf.mxu2  ;;  %v1344_v8 = vpop.f32.mrf.mxu3 }
 0x1a1   : > { %v1112_v18 = vadd.f32 %v1111_v20, %v1023_v11  ;;  %v1024_v2 = vpop.f32.mrf.mxu1  ;;  %v1435_v3 = vpop.f32.mrf.mxu0 }
 0x1a2   : > { %v1025_v34 = vadd.f32 %v1024_v2, %v4047_v5  ;;  %v4052_v5 = vld [vmem:[#allocation13_spill] sm:$0xff] }
 0x1a3   : > { %v1345_v56 = vadd.f32 %v1344_v8, %v1112_v18 }
 0x1a5   : > { %v3853_v0 = vadd.f32 %v1433_v21, %v1345_v56 }
 0x1a8   : > { %v1113_v62 = vpop.f32.mrf.mxu2  ;;  %v1346_v42 = vpop.f32.mrf.mxu3 }
 0x1a9   : > { %v1114_v46 = vadd.f32 %v1113_v62, %v1025_v34  ;;  %v1027_v14 = vpop.f32.mrf.mxu1  ;;  %v1438_v57 = vpop.f32.mrf.mxu0  ;;  %v3118_v34 = vld [vmem:[%s3228_s12 + $0x6c] sm:$0xff] }
 0x1aa   : > { %v1028_v37 = vadd.f32 %v1027_v14, %v4050_v50 }
 0x1ab   : > { %v1347_v23 = vadd.f32 %v1346_v42, %v1114_v46  ;;  %v4053_v42 = vld [vmem:[#allocation7_spill] sm:$0xff] }
 0x1ac   : > { %1486 = vmatmul.bf16.gmra.mxu1 %v3457_v52  ;;  %1980 = vmatmul.bf16.gmra.mxu0 %v4048_v48  ;;  %v4051_v52 = vld [vmem:[#allocation4_spill] sm:$0xff] }
 0x1ad   : > { %1802 = vmatmul.bf16.gmra.mxu2 %v3117_v16  ;;  %1891 = vmatmul.bf16.gmra.mxu3 %v4049_v15  ;;  %v3860_v58 = vadd.f32 %v1435_v3, %v1347_v23 }
 0x1b0   : > { %v1116_v28 = vpop.f32.mrf.mxu2  ;;  %v1349_v21 = vpop.f32.mrf.mxu3 }
 0x1b1   : > { %v1117_v13 = vadd.f32 %v1116_v28, %v1028_v37  ;;  %v1029_v26 = vpop.f32.mrf.mxu1  ;;  %v1440_v44 = vpop.f32.mrf.mxu0 }
 0x1b2   : > { %v1030_v11 = vadd.f32 %v1029_v26, %v4051_v52  ;;  %v4055_v52 = vld [vmem:[#allocation18_spill] sm:$0xff] }
 0x1b3   : > { %v1350_v61 = vadd.f32 %v1349_v21, %v1117_v13 }
 0x1b5   : > { %v3863_v24 = vadd.f32 %v1438_v57, %v1350_v61 }
 0x1b8   : > { %v1118_v20 = vpop.f32.mrf.mxu2  ;;  %v1351_v8 = vpop.f32.mrf.mxu3 }
 0x1b9   : > { %v1119_v18 = vadd.f32 %v1118_v20, %v1030_v11  ;;  %v1032_v2 = vpop.f32.mrf.mxu1  ;;  %v1443_v56 = vpop.f32.mrf.mxu0  ;;  %v3119_v11 = vld [vmem:[%s3228_s12 + $0x78] sm:$0xff] }
 0x1ba   : > { %v1033_v46 = vadd.f32 %v1032_v2, %v4053_v42 }
 0x1bb   : > { %v1352_v3 = vadd.f32 %v1351_v8, %v1119_v18  ;;  %v4056_v8 = vld [vmem:[#allocation11_spill] sm:$0xff] }
 0x1bc   : > { %1491 = vmatmul.bf16.gmra.mxu1 %v3481_v6  ;;  %1985 = vmatmul.bf16.gmra.mxu0 %v4052_v5  ;;  %v4054_v6 = vld [vmem:[#allocation8_spill] sm:$0xff] }
 0x1bd   : > { %1807 = vmatmul.bf16.gmra.mxu2 %v3118_v34  ;;  %1896 = vmatmul.bf16.gmra.mxu3 %v3605_v36  ;;  %v3870_v62 = vadd.f32 %v1440_v44, %v1352_v3 }
 0x1c0   : > { %v1121_v14 = vpop.f32.mrf.mxu2  ;;  %v1354_v57 = vpop.f32.mrf.mxu3 }
 0x1c1   : > { %v1122_v23 = vadd.f32 %v1121_v14, %v1033_v46  ;;  %v1034_v16 = vpop.f32.mrf.mxu1  ;;  %v1445_v15 = vpop.f32.mrf.mxu0 }
 0x1c2   : > { %v1035_v28 = vadd.f32 %v1034_v16, %v4054_v6 }
 0x1c3   : > { %v1355_v50 = vadd.f32 %v1354_v57, %v1122_v23 }
 0x1c5   : > { %v3873_v37 = vadd.f32 %v1443_v56, %v1355_v50 }
 0x1c8   : > { %v1123_v21 = vpop.f32.mrf.mxu2  ;;  %v1356_v13 = vpop.f32.mrf.mxu3 }
 0x1c9   : > { %v1124_v26 = vadd.f32 %v1123_v21, %v1035_v28  ;;  %v1037_v61 = vpop.f32.mrf.mxu1  ;;  %v1448_v36 = vpop.f32.mrf.mxu0  ;;  %v3120_v28 = vld [vmem:[%s3228_s12 + $0x84] sm:$0xff] }
 0x1ca   : > { %v1038_v18 = vadd.f32 %v1037_v61, %v4056_v8 }
 0x1cb   : > { %v1357_v44 = vadd.f32 %v1356_v13, %v1124_v26  ;;  %v4058_v13 = vld [vmem:[#allocation15_spill] sm:$0xff] }
 0x1cc   : > { %1496 = vmatmul.bf16.gmra.mxu1 %v3497_v22  ;;  %1990 = vmatmul.bf16.gmra.mxu0 %v4055_v52  ;;  %v4057_v22 = vld [vmem:[#allocation12_spill] sm:$0xff] }
 0x1cd   : > { %1812 = vmatmul.bf16.gmra.mxu2 %v3119_v11  ;;  %1901 = vmatmul.bf16.gmra.mxu3 %v3630_v29  ;;  %v3880_v20 = vadd.f32 %v1445_v15, %v1357_v44 }
 0x1d0   : > { %v1126_v2 = vpop.f32.mrf.mxu2  ;;  %v1359_v56 = vpop.f32.mrf.mxu3 }
 0x1d1   : > { %v1127_v3 = vadd.f32 %v1126_v2, %v1038_v18  ;;  %v1039_v34 = vpop.f32.mrf.mxu1  ;;  %v1450_v42 = vpop.f32.mrf.mxu0 }
 0x1d2   : > { %v1040_v57 = vadd.f32 %v1039_v34, %v4057_v22 }
 0x1d3   : > { %v1360_v46 = vadd.f32 %v1359_v56, %v1127_v3 }
 0x1d5   : > { %v3883_v14 = vadd.f32 %v1448_v36, %v1360_v46 }
 0x1d8   : > { %v1128_v23 = vpop.f32.mrf.mxu2  ;;  %v1361_v16 = vpop.f32.mrf.mxu3 }
 0x1d9   : > { %v1129_v50 = vadd.f32 %v1128_v23, %v1040_v57  ;;  %v1042_v6 = vpop.f32.mrf.mxu1  ;;  %v1453_v29 = vpop.f32.mrf.mxu0  ;;  %v3121_v57 = vld [vmem:[%s3228_s12 + $0x90] sm:$0xff] }
 0x1da   : > { %v1043_v26 = vadd.f32 %v1042_v6, %v4058_v13 }
 0x1db   : > { %v1362_v15 = vadd.f32 %v1361_v16, %v1129_v50 }
 0x1dc   : > { %1501 = vmatmul.bf16.gmra.mxu1 %v4044_v38  ;;  %1995 = vmatmul.bf16.gmra.mxu0 %v3663_v39  ;;  %v4059_v38 = vld [vmem:[#allocation17_spill] sm:$0xff] }
 0x1dd   : > { %1817 = vmatmul.bf16.gmra.mxu2 %v3120_v28  ;;  %1906 = vmatmul.bf16.gmra.mxu3 %v3659_v54  ;;  %v3890_v21 = vadd.f32 %v1450_v42, %v1362_v15 }
 0x1e0   : > { %v1131_v61 = vpop.f32.mrf.mxu2  ;;  %v1364_v36 = vpop.f32.mrf.mxu3 }
 0x1e1   : > { %v1132_v44 = vadd.f32 %v1131_v61, %v1043_v26  ;;  %v1044_v11 = vpop.f32.mrf.mxu1  ;;  %v1455_v8 = vpop.f32.mrf.mxu0  ;;  %v4060_v61 = vld [vmem:[#allocation19_spill] sm:$0xff] }
 0x1e2   : > { %v1045_v56 = vadd.f32 %v1044_v11, %v4059_v38  ;;  %v4061_v38 = vld [vmem:[#allocation20_spill] sm:$0xff] }
 0x1e3   : > { %v1365_v18 = vadd.f32 %v1364_v36, %v1132_v44 }
 0x1e5   : > { %v3893_v2 = vadd.f32 %v1453_v29, %v1365_v18 }
 0x1e8   : > { %v1133_v3 = vpop.f32.mrf.mxu2  ;;  %v1366_v34 = vpop.f32.mrf.mxu3 }
 0x1e9   : > { %v1134_v46 = vadd.f32 %v1133_v3, %v1045_v56  ;;  %v1467_v22 = vpop.f32.mrf.mxu1  ;;  %v1961_v54 = vpop.f32.mrf.mxu0  ;;  %v3122_v3 = vld [vmem:[%s3228_s12 + $0x9c] sm:$0xff] }
 0x1eb   : > { %v1367_v42 = vadd.f32 %v1366_v34, %v1134_v46 }
 0x1ec   : > { %1506 = vmatmul.bf16.gmra.mxu1 %v4048_v48  ;;  %2000 = vmatmul.bf16.gmra.mxu0 %v3682_v63  ;;  %v1468_v48 = vadd.f32 %v1467_v22, %v4060_v61 }
 0x1ed   : > { %1822 = vmatmul.bf16.gmra.mxu2 %v3121_v57  ;;  %1911 = vmatmul.bf16.gmra.mxu3 %v3678_v30  ;;  %v3900_v23 = vadd.f32 %v1455_v8, %v1367_v42 }
 0x1f0   : > { %v1783_v16 = vpop.f32.mrf.mxu2  ;;  %v1872_v50 = vpop.f32.mrf.mxu3 }
 0x1f1   : > { %v1469_v6 = vpop.f32.mrf.mxu1  ;;  %v1963_v29 = vpop.f32.mrf.mxu0  ;;  %v1873_v15 = vadd.f32 %v1872_v50, %v1783_v16 }
 0x1f2   : > { %v1470_v30 = vadd.f32 %v1469_v6, %v4061_v38 }
 0x1f3   : > { %v1962_v28 = vadd.f32 %v1961_v54, %v1873_v15 }
 0x1f5   : > { %v2041_v18 = vadd.f32 %v1962_v28, %v1468_v48 }
 0x1f7   : > { %v2175_v34 = vmul.f32 %v2041_v18, %v2041_v18 }
 0x1f8   : > { %v1785_v13 = vpop.f32.mrf.mxu2  ;;  %v1874_v26 = vpop.f32.mrf.mxu3 }
 0x1f9   : > { %v1875_v36 = vadd.f32 %v1874_v26, %v1785_v13  ;;  %v1472_v44 = vpop.f32.mrf.mxu1  ;;  %v1966_v11 = vpop.f32.mrf.mxu0 }
 0x1fb   : > { %v1964_v8 = vadd.f32 %v1963_v29, %v1875_v36  ;;  %v1473_v29 = vadd.f32 %v1472_v44, %v3674_v40  ;;  %v3123_v44 = vld [vmem:[%s3228_s12 + $0xa8] sm:$0xff] }
 0x1fc   : > { %1511 = vmatmul.bf16.gmra.mxu1 %v4052_v5  ;;  %2005 = vmatmul.bf16.gmra.mxu0 %v3713_v10 }
 0x1fd   : > { %v2042_v56 = vadd.f32 %v1964_v8, %v1470_v30  ;;  %1827 = vmatmul.bf16.gmra.mxu2 %v3122_v3  ;;  %1916 = vmatmul.bf16.gmra.mxu3 %v3709_v4 }
 0x1ff   : > { %v2974_v46 = vpack.c.bf16 %v2042_v56, %v2041_v18  ;;  %v2137_v22 = vadd.f32 %v2042_v56, %v2041_v18  ;;  %v2176_v54 = vmul.f32 %v2042_v56, %v2042_v56 }
 0x200   : > { %v1788_v42 = vpop.f32.mrf.mxu2  ;;  %v1877_v57 = vpop.f32.mrf.mxu3 }
 0x201   : > { %2975 = vst [vmem:[%s3912_s22] sm:$0xff] %v2974_v46   ;;  %v2207_v5 = vadd.f32 %v2176_v54, %v2175_v34  ;;  %v1878_v16 = vadd.f32 %v1877_v57, %v1788_v42  ;;  %v1474_v50 = vpop.f32.mrf.mxu1  ;;  %v1968_v6 = vpop.f32.mrf.mxu0  ;;  %v4062_v57 = vld [vmem:[#allocation21_spill] sm:$0xff] }
 0x202   : > { %v1475_v30 = vadd.f32 %v1474_v50, %v3695_v60 }
 0x203   : > { %v1967_v4 = vadd.f32 %v1966_v11, %v1878_v16 }
 0x205   : > { %v2043_v15 = vadd.f32 %v1967_v4, %v1473_v29 }
 0x207   : > { %v2138_v28 = vadd.f32 %v2137_v22, %v2043_v15  ;;  %v2177_v13 = vmul.f32 %v2043_v15, %v2043_v15 }
 0x208   : > { %v1790_v26 = vpop.f32.mrf.mxu2  ;;  %v1879_v61 = vpop.f32.mrf.mxu3 }
 0x209   : > { %v2208_v48 = vadd.f32 %v2207_v5, %v2177_v13  ;;  %v1880_v36 = vadd.f32 %v1879_v61, %v1790_v26  ;;  %v1477_v18 = vpop.f32.mrf.mxu1  ;;  %v1971_v38 = vpop.f32.mrf.mxu0  ;;  %v4063_v26 = vld [vmem:[#allocation22_spill] sm:$0xff] }
 0x20a   : > { %v1478_v5 = vadd.f32 %v1477_v18, %v4062_v57  ;;  %v3124_v18 = vld [vmem:[%s3228_s12 + $0xb4] sm:$0xff] }
 0x20b   : > { %v1969_v8 = vadd.f32 %v1968_v6, %v1880_v36 }
 0x20c   : > { %1516 = vmatmul.bf16.gmra.mxu1 %v4055_v52  ;;  %2010 = vmatmul.bf16.gmra.mxu0 %v3731_v55 }
 0x20d   : > { %v2044_v40 = vadd.f32 %v1969_v8, %v1475_v30  ;;  %1832 = vmatmul.bf16.gmra.mxu2 %v3123_v44  ;;  %1921 = vmatmul.bf16.gmra.mxu3 %v3728_v12 }
 0x20f   : > { %v2979_v11 = vpack.c.bf16 %v2044_v40, %v2043_v15  ;;  %v2139_v56 = vadd.f32 %v2138_v28, %v2044_v40  ;;  %v2178_v3 = vmul.f32 %v2044_v40, %v2044_v40 }
 0x210   : > { %v1793_v34 = vpop.f32.mrf.mxu2  ;;  %v1882_v46 = vpop.f32.mrf.mxu3 }
 0x211   : > { %3051 = vst [vmem:[%s3912_s22 + $0x8] sm:$0xff] %v2979_v11   ;;  %v2209_v22 = vadd.f32 %v2208_v48, %v2178_v3  ;;  %v1883_v54 = vadd.f32 %v1882_v46, %v1793_v34  ;;  %v1479_v42 = vpop.f32.mrf.mxu1  ;;  %v1973_v60 = vpop.f32.mrf.mxu0 }
 0x212   : > { %v1480_v61 = vadd.f32 %v1479_v42, %v4063_v26 }
 0x213   : > { %v1972_v52 = vadd.f32 %v1971_v38, %v1883_v54 }
 0x215   : > { %v2045_v16 = vadd.f32 %v1972_v52, %v1478_v5 }
 0x217   : > { %v2140_v50 = vadd.f32 %v2139_v56, %v2045_v16  ;;  %v2179_v6 = vmul.f32 %v2045_v16, %v2045_v16 }
 0x218   : > { %v1795_v29 = vpop.f32.mrf.mxu2  ;;  %v1884_v4 = vpop.f32.mrf.mxu3 }
 0x219   : > { %v2210_v12 = vadd.f32 %v2209_v22, %v2179_v6  ;;  %v1885_v15 = vadd.f32 %v1884_v4, %v1795_v29  ;;  %v1482_v28 = vpop.f32.mrf.mxu1  ;;  %v1976_v13 = vpop.f32.mrf.mxu0  ;;  %v3125_v4 = vld [vmem:[%s3228_s12 + $0xc0] sm:$0xff] }
 0x21a   : > { %v1483_v46 = vadd.f32 %v1482_v28, %v3724_v17 }
 0x21b   : > { %v1974_v48 = vadd.f32 %v1973_v60, %v1885_v15 }
 0x21c   : > { %1521 = vmatmul.bf16.gmra.mxu1 %v3663_v39  ;;  %2015 = vmatmul.bf16.gmra.mxu0 %v3762_v49 }
 0x21d   : > { %v2046_v36 = vadd.f32 %v1974_v48, %v1480_v61  ;;  %1837 = vmatmul.bf16.gmra.mxu2 %v3124_v18  ;;  %1926 = vmatmul.bf16.gmra.mxu3 %v3759_v43 }
 0x21f   : > { %v2984_v38 = vpack.c.bf16 %v2046_v36, %v2045_v16  ;;  %v2141_v30 = vadd.f32 %v2140_v50, %v2046_v36  ;;  %v2180_v8 = vmul.f32 %v2046_v36, %v2046_v36  ;;  %v4064_v50 = vld [vmem:[#allocation23_spill] sm:$0xff] }
 0x220   : > { %v1798_v40 = vpop.f32.mrf.mxu2  ;;  %v1887_v44 = vpop.f32.mrf.mxu3 }
 0x221   : > { %3052 = vst [vmem:[%s3912_s22 + $0x10] sm:$0xff] %v2984_v38   ;;  %v2211_v11 = vadd.f32 %v2210_v12, %v2180_v8  ;;  %v1888_v56 = vadd.f32 %v1887_v44, %v1798_v40  ;;  %v1484_v3 = vpop.f32.mrf.mxu1  ;;  %v1978_v34 = vpop.f32.mrf.mxu0 }
 0x222   : > { %v1485_v6 = vadd.f32 %v1484_v3, %v4064_v50 }
 0x223   : > { %v1977_v39 = vadd.f32 %v1976_v13, %v1888_v56 }
 0x225   : > { %v2047_v22 = vadd.f32 %v1977_v39, %v1483_v46  ;;  %v4065_v46 = vld [vmem:[#allocation24_spill] sm:$0xff] }
 0x227   : > { %v2142_v54 = vadd.f32 %v2141_v30, %v2047_v22  ;;  %v2181_v42 = vmul.f32 %v2047_v22, %v2047_v22 }
 0x228   : > { %v1800_v60 = vpop.f32.mrf.mxu2  ;;  %v1889_v57 = vpop.f32.mrf.mxu3 }
 0x229   : > { %v2212_v43 = vadd.f32 %v2211_v11, %v2181_v42  ;;  %v1890_v5 = vadd.f32 %v1889_v57, %v1800_v60  ;;  %v1487_v52 = vpop.f32.mrf.mxu1  ;;  %v1981_v16 = vpop.f32.mrf.mxu0 }
 0x22b   : > { %v1979_v29 = vadd.f32 %v1978_v34, %v1890_v5  ;;  %v316_v34 = vld [vmem:[%s3228_s12 + $0xe0] sm:$0x3] }
 0x22c   : > { %1526 = vmatmul.bf16.gmra.mxu1 %v3682_v63  ;;  %2020 = vmatmul.bf16.gmra.mxu0 %v3781_v35  ;;  %v1488_v63 = vadd.f32 %v1487_v52, %v3754_v19  ;;  %v1561_v42 = vunpack.c.l.b16 %v316_v34 }
 0x22d   : > { %v2048_v17 = vadd.f32 %v1979_v29, %v1485_v6  ;;  %1842 = vmatmul.bf16.gmra.mxu2 %v3125_v4  ;;  %1931 = vmatmul.bf16.gmra.mxu3 %v3778_v32 }
 0x22f   : > { %v2989_v12 = vpack.c.bf16 %v2048_v17, %v2047_v22  ;;  %v2143_v15 = vadd.f32 %v2142_v54, %v2048_v17  ;;  %v2182_v28 = vmul.f32 %v2048_v17, %v2048_v17  ;;  %v3126_v54 = vld [vmem:[%s3228_s12 + $0xcc] sm:$0xff]  ;;  %v1563_v17 = vpack.c.b16 %v1561_v42, %v1561_v42 }
 0x230   : > { %v1803_v13 = vpop.f32.mrf.mxu2  ;;  %v1892_v26 = vpop.f32.mrf.mxu3 }
 0x231   : > { %3053 = vst [vmem:[%s3912_s22 + $0x18] sm:$0xff] %v2989_v12   ;;  %v2213_v61 = vadd.f32 %v2212_v43, %v2182_v28  ;;  %v1893_v48 = vadd.f32 %v1892_v26, %v1803_v13  ;;  %v1489_v36 = vpop.f32.mrf.mxu1  ;;  %v1983_v18 = vpop.f32.mrf.mxu0  ;;  %v1566_v13 = vrot.slane %v1563_v17, 1 }
 0x232   : > { %v1490_v39 = vadd.f32 %v1489_v36, %v4065_v46 }
 0x233   : > { %v1982_v38 = vadd.f32 %v1981_v16, %v1893_v48 }
 0x235   : > { %v2049_v35 = vadd.f32 %v1982_v38, %v1488_v63 }
 0x237   : > { %v2144_v30 = vadd.f32 %v2143_v15, %v2049_v35  ;;  %v2183_v8 = vmul.f32 %v2049_v35, %v2049_v35 }
 0x238   : > { %v1805_v40 = vpop.f32.mrf.mxu2  ;;  %v1894_v32 = vpop.f32.mrf.mxu3 }
 0x239   : > { %v2214_v44 = vadd.f32 %v2213_v61, %v2183_v8  ;;  %v1895_v11 = vadd.f32 %v1894_v32, %v1805_v40  ;;  %v1492_v56 = vpop.f32.mrf.mxu1  ;;  %v1986_v3 = vpop.f32.mrf.mxu0  ;;  %v319_v8 = vld [vmem:[%s3228_s12 + $0xec] sm:$0x3]  ;;  %v4066_v40 = vld [vmem:[#allocation25_spill] sm:$0xff] }
 0x23b   : > { %v1984_v22 = vadd.f32 %v1983_v18, %v1895_v11 }
 0x23c   : > { %1531 = vmatmul.bf16.gmra.mxu1 %v3713_v10  ;;  %2025 = vmatmul.bf16.gmra.mxu0 %v3800_v51  ;;  %v2897_v10 = vld [vmem:[%s3228_s12 + $0xd8] sm:$0xff]  ;;  %v1493_v51 = vadd.f32 %v1492_v56, %v3773_v7  ;;  %v1562_v56 = vunpack.c.l.b16 %v319_v8 }
 0x23d   : > { %v2050_v19 = vadd.f32 %v1984_v22, %v1490_v39  ;;  %1847 = vmatmul.bf16.gmra.mxu2 %v3126_v54  ;;  %1936 = vmatmul.bf16.gmra.mxu3 %v3797_v9  ;;  %v1573_v15 = vrot.slane %v2897_v10, 2  ;;  %v1574_v9 = vrot.slane %v1563_v17, 2  ;;  %v1565_v28 = vrot.slane %v2897_v10, 1 }
 0x23f   : > { %v2994_v60 = vpack.c.bf16 %v2050_v19, %v2049_v35  ;;  %v2145_v57 = vadd.f32 %v2144_v30, %v2050_v19  ;;  %v2184_v43 = vmul.f32 %v2050_v19, %v2050_v19  ;;  %v1575_v30 = vsel %vm529_vm1, %v1573_v15, %v1574_v9 }
 0x240   : > { %v1808_v5 = vpop.f32.mrf.mxu2  ;;  %v1897_v52 = vpop.f32.mrf.mxu3  ;;  %v1567_v7 = vsel %vm464_vm0, %v1565_v28, %v1566_v13 }
 0x241   : > { %3054 = vst [vmem:[%s3912_s22 + $0x20] sm:$0xff] %v2994_v60   ;;  %v2215_v16 = vadd.f32 %v2214_v44, %v2184_v43  ;;  %v1898_v50 = vadd.f32 %v1897_v52, %v1808_v5  ;;  %v1494_v6 = vpop.f32.mrf.mxu1  ;;  %v1988_v29 = vpop.f32.mrf.mxu0  ;;  %v1564_v43 = vpack.c.b16 %v1562_v56, %v1562_v56 }
 0x242   : > { %v1495_v32 = vadd.f32 %v1494_v6, %v4066_v40 }
 0x243   : > { %v1987_v4 = vadd.f32 %v1986_v3, %v1898_v50  ;;  %v1577_v50 = vrot.slane %v1564_v43, 2 }
 0x245   : > { %v2051_v12 = vadd.f32 %v1987_v4, %v1493_v51 }
 0x247   : > { %v2146_v26 = vadd.f32 %v2145_v57, %v2051_v12  ;;  %v2185_v61 = vmul.f32 %v2051_v12, %v2051_v12  ;;  %v2898_v57 = vld [vmem:[%s3228_s12 + $0xe4] sm:$0xff] }
 0x248   : > { %v1810_v48 = vpop.f32.mrf.mxu2  ;;  %v1899_v36 = vpop.f32.mrf.mxu3  ;;  %v1568_v6 = vrot.slane %v2898_v57, 1 }
 0x249   : > { %v2216_v18 = vadd.f32 %v2215_v16, %v2185_v61  ;;  %v1900_v63 = vadd.f32 %v1899_v36, %v1810_v48  ;;  %v1497_v38 = vpop.f32.mrf.mxu1  ;;  %v1991_v35 = vpop.f32.mrf.mxu0  ;;  %v1576_v16 = vrot.slane %v2898_v57, 2 }
 0x24b   : > { %v1989_v44 = vadd.f32 %v1988_v29, %v1900_v63  ;;  %v1569_v29 = vrot.slane %v1564_v43, 1  ;;  %v1578_v13 = vsel %vm529_vm1, %v1576_v16, %v1577_v50 }
 0x24c   : > { %1536 = vmatmul.bf16.gmra.mxu1 %v3731_v55  ;;  %2030 = vmatmul.bf16.gmra.mxu0 %v1575_v30  ;;  %v1498_v55 = vadd.f32 %v1497_v38, %v3792_v53 }
 0x24d   : > { %v2052_v11 = vadd.f32 %v1989_v44, %v1495_v32  ;;  %1852 = vmatmul.bf16.gmra.mxu2 %v2897_v10  ;;  %1941 = vmatmul.bf16.gmra.mxu3 %v1567_v7 }
 0x24f   : > { %v2999_v3 = vpack.c.bf16 %v2052_v11, %v2051_v12  ;;  %v2147_v34 = vadd.f32 %v2146_v26, %v2052_v11  ;;  %v2186_v46 = vmul.f32 %v2052_v11, %v2052_v11  ;;  %v1570_v26 = vsel %vm464_vm0, %v1568_v6, %v1569_v29 }
 0x250   : > { %v1813_v39 = vpop.f32.mrf.mxu2  ;;  %v1902_v22 = vpop.f32.mrf.mxu3 }
 0x251   : > { %3055 = vst [vmem:[%s3912_s22 + $0x28] sm:$0xff] %v2999_v3   ;;  %v2217_v19 = vadd.f32 %v2216_v18, %v2186_v46  ;;  %v1903_v54 = vadd.f32 %v1902_v22, %v1813_v39  ;;  %v1499_v42 = vpop.f32.mrf.mxu1  ;;  %v1993_v60 = vpop.f32.mrf.mxu0 }
 0x252   : > { %v1500_v53 = vadd.f32 %v1499_v42, %v3806_v59 }
 0x253   : > { %v1992_v5 = vadd.f32 %v1991_v35, %v1903_v54 }
 0x255   : > { %v2053_v52 = vadd.f32 %v1992_v5, %v1498_v55 }
 0x257   : > { %v2148_v10 = vadd.f32 %v2147_v34, %v2053_v52  ;;  %v2187_v17 = vmul.f32 %v2053_v52, %v2053_v52 }
 0x258   : > { %v1815_v51 = vpop.f32.mrf.mxu2  ;;  %v1904_v4 = vpop.f32.mrf.mxu3 }
 0x259   : > { %v2218_v12 = vadd.f32 %v2217_v19, %v2187_v17  ;;  %v1905_v15 = vadd.f32 %v1904_v4, %v1815_v51  ;;  %v1502_v9 = vpop.f32.mrf.mxu1  ;;  %v1996_v28 = vpop.f32.mrf.mxu0 }
 0x25a   : > { %v1503_v32 = vadd.f32 %v1502_v9, %v3811_v41 }
 0x25b   : > { %v1994_v61 = vadd.f32 %v1993_v60, %v1905_v15 }
 0x25c   : > { %1541 = vmatmul.bf16.gmra.mxu1 %v3762_v49  ;;  %2035 = vmatmul.bf16.gmra.mxu0 %v1578_v13 }
 0x25d   : > { %v2054_v48 = vadd.f32 %v1994_v61, %v1500_v53  ;;  %1857 = vmatmul.bf16.gmra.mxu2 %v2898_v57  ;;  %1946 = vmatmul.bf16.gmra.mxu3 %v1570_v26 }
 0x25f   : > { %v3004_v36 = vpack.c.bf16 %v2054_v48, %v2053_v52  ;;  %v2149_v18 = vadd.f32 %v2148_v10, %v2054_v48  ;;  %v2188_v63 = vmul.f32 %v2054_v48, %v2054_v48 }
 0x260   : > { %v1818_v38 = vpop.f32.mrf.mxu2  ;;  %v1907_v35 = vpop.f32.mrf.mxu3 }
 0x261   : > { %3056 = vst [vmem:[%s3912_s22 + $0x30] sm:$0xff] %v3004_v36   ;;  %v2219_v30 = vadd.f32 %v2218_v12, %v2188_v63  ;;  %v1908_v7 = vadd.f32 %v1907_v35, %v1818_v38  ;;  %v1504_v8 = vpop.f32.mrf.mxu1  ;;  %v1998_v40 = vpop.f32.mrf.mxu0 }
 0x262   : > { %v1505_v19 = vadd.f32 %v1504_v8, %v3818_v1 }
 0x263   : > { %v1997_v59 = vadd.f32 %v1996_v28, %v1908_v7 }
 0x265   : > { %v2055_v44 = vadd.f32 %v1997_v59, %v1503_v32 }
 0x267   : > { %v2150_v11 = vadd.f32 %v2149_v18, %v2055_v44  ;;  %v2189_v49 = vmul.f32 %v2055_v44, %v2055_v44 }
 0x268   : > { %v1820_v56 = vpop.f32.mrf.mxu2  ;;  %v1909_v3 = vpop.f32.mrf.mxu3 }
 0x269   : > { %v2220_v34 = vadd.f32 %v2219_v30, %v2189_v49  ;;  %v1910_v46 = vadd.f32 %v1909_v3, %v1820_v56  ;;  %v1507_v39 = vpop.f32.mrf.mxu1  ;;  %v2001_v22 = vpop.f32.mrf.mxu0 }
 0x26a   : > { %v1508_v6 = vadd.f32 %v1507_v39, %v3823_v31 }
 0x26b   : > { %v1999_v54 = vadd.f32 %v1998_v40, %v1910_v46 }
 0x26d   : > { %v2056_v42 = vadd.f32 %v1999_v54, %v1505_v19 }
 0x26f   : > { %v3009_v60 = vpack.c.bf16 %v2056_v42, %v2055_v44  ;;  %v2151_v57 = vadd.f32 %v2150_v11, %v2056_v42  ;;  %v2190_v43 = vmul.f32 %v2056_v42, %v2056_v42 }
 0x270   : > { %v1823_v55 = vpop.f32.mrf.mxu2  ;;  %v1912_v41 = vpop.f32.mrf.mxu3 }
 0x271   : > { %3057 = vst [vmem:[%s3912_s22 + $0x38] sm:$0xff] %v3009_v60   ;;  %v2221_v5 = vadd.f32 %v2220_v34, %v2190_v43  ;;  %v1913_v52 = vadd.f32 %v1912_v41, %v1823_v55  ;;  %v1509_v16 = vpop.f32.mrf.mxu1  ;;  %v2003_v50 = vpop.f32.mrf.mxu0 }
 0x272   : > { %v1510_v13 = vadd.f32 %v1509_v16, %v3830_v25 }
 0x273   : > { %v2002_v29 = vadd.f32 %v2001_v22, %v1913_v52 }
 0x275   : > { %v2057_v10 = vadd.f32 %v2002_v29, %v1508_v6 }
 0x277   : > { %v2152_v17 = vadd.f32 %v2151_v57, %v2057_v10  ;;  %v2191_v51 = vmul.f32 %v2057_v10, %v2057_v10 }
 0x278   : > { %v1825_v1 = vpop.f32.mrf.mxu2  ;;  %v1914_v4 = vpop.f32.mrf.mxu3 }
 0x279   : > { %v2222_v12 = vadd.f32 %v2221_v5, %v2191_v51  ;;  %v1915_v15 = vadd.f32 %v1914_v4, %v1825_v1  ;;  %v1512_v9 = vpop.f32.mrf.mxu1  ;;  %v2006_v28 = vpop.f32.mrf.mxu0 }
 0x27a   : > { %v1513_v7 = vadd.f32 %v1512_v9, %v3833_v27 }
 0x27b   : > { %v2004_v26 = vadd.f32 %v2003_v50, %v1915_v15 }
 0x27d   : > { %v2058_v53 = vadd.f32 %v2004_v26, %v1510_v13 }
 0x27f   : > { %v3014_v61 = vpack.c.bf16 %v2058_v53, %v2057_v10  ;;  %v2153_v48 = vadd.f32 %v2152_v17, %v2058_v53  ;;  %v2192_v36 = vmul.f32 %v2058_v53, %v2058_v53 }
 0x280   : > { %v1828_v18 = vpop.f32.mrf.mxu2  ;;  %v1917_v31 = vpop.f32.mrf.mxu3 }
 0x281   : > { %3058 = vst [vmem:[%s3912_s22 + $0x40] sm:$0xff] %v3014_v61   ;;  %v2223_v63 = vadd.f32 %v2222_v12, %v2192_v36  ;;  %v1918_v38 = vadd.f32 %v1917_v31, %v1828_v18  ;;  %v1514_v35 = vpop.f32.mrf.mxu1  ;;  %v2008_v30 = vpop.f32.mrf.mxu0 }
 0x282   : > { %v1515_v34 = vadd.f32 %v1514_v35, %v3840_v45 }
 0x283   : > { %v2007_v8 = vadd.f32 %v2006_v28, %v1918_v38 }
 0x285   : > { %v2059_v40 = vadd.f32 %v2007_v8, %v1513_v7 }
 0x287   : > { %v2154_v32 = vadd.f32 %v2153_v48, %v2059_v40  ;;  %v2193_v59 = vmul.f32 %v2059_v40, %v2059_v40 }
 0x288   : > { %v1830_v25 = vpop.f32.mrf.mxu2  ;;  %v1919_v44 = vpop.f32.mrf.mxu3 }
 0x289   : > { %v2224_v11 = vadd.f32 %v2223_v63, %v2193_v59  ;;  %v1920_v49 = vadd.f32 %v1919_v44, %v1830_v25  ;;  %v1517_v56 = vpop.f32.mrf.mxu1  ;;  %v2011_v3 = vpop.f32.mrf.mxu0 }
 0x28a   : > { %v1518_v41 = vadd.f32 %v1517_v56, %v3843_v47 }
 0x28b   : > { %v2009_v46 = vadd.f32 %v2008_v30, %v1920_v49 }
 0x28d   : > { %v2060_v39 = vadd.f32 %v2009_v46, %v1515_v34 }
 0x28f   : > { %v3019_v22 = vpack.c.bf16 %v2060_v39, %v2059_v40  ;;  %v2155_v19 = vadd.f32 %v2154_v32, %v2060_v39  ;;  %v2194_v54 = vmul.f32 %v2060_v39, %v2060_v39 }
 0x290   : > { %v1833_v42 = vpop.f32.mrf.mxu2  ;;  %v1922_v27 = vpop.f32.mrf.mxu3 }
 0x291   : > { %3059 = vst [vmem:[%s3912_s22 + $0x48] sm:$0xff] %v3019_v22   ;;  %v2225_v60 = vadd.f32 %v2224_v11, %v2194_v54  ;;  %v1923_v57 = vadd.f32 %v1922_v27, %v1833_v42  ;;  %v1519_v43 = vpop.f32.mrf.mxu1  ;;  %v2013_v55 = vpop.f32.mrf.mxu0 }
 0x292   : > { %v1520_v1 = vadd.f32 %v1519_v43, %v3850_v33 }
 0x293   : > { %v2012_v5 = vadd.f32 %v2011_v3, %v1923_v57 }
 0x295   : > { %v2061_v52 = vadd.f32 %v2012_v5, %v1518_v41 }
 0x297   : > { %v2156_v16 = vadd.f32 %v2155_v19, %v2061_v52  ;;  %v2195_v50 = vmul.f32 %v2061_v52, %v2061_v52 }
 0x298   : > { %v1835_v45 = vpop.f32.mrf.mxu2  ;;  %v1924_v6 = vpop.f32.mrf.mxu3 }
 0x299   : > { %v2226_v29 = vadd.f32 %v2225_v60, %v2195_v50  ;;  %v1925_v10 = vadd.f32 %v1924_v6, %v1835_v45  ;;  %v1522_v17 = vpop.f32.mrf.mxu1  ;;  %v2016_v51 = vpop.f32.mrf.mxu0 }
 0x29a   : > { %v1523_v36 = vadd.f32 %v1522_v17, %v3853_v0 }
 0x29b   : > { %v2014_v4 = vadd.f32 %v2013_v55, %v1925_v10 }
 0x29d   : > { %v2062_v12 = vadd.f32 %v2014_v4, %v1520_v1 }
 0x29f   : > { %v3024_v15 = vpack.c.bf16 %v2062_v12, %v2061_v52  ;;  %v2157_v9 = vadd.f32 %v2156_v16, %v2062_v12  ;;  %v2196_v28 = vmul.f32 %v2062_v12, %v2062_v12 }
 0x2a0   : > { %v1838_v13 = vpop.f32.mrf.mxu2  ;;  %v1927_v47 = vpop.f32.mrf.mxu3 }
 0x2a1   : > { %3060 = vst [vmem:[%s3912_s22 + $0x50] sm:$0xff] %v3024_v15   ;;  %v2227_v26 = vadd.f32 %v2226_v29, %v2196_v28  ;;  %v1928_v53 = vadd.f32 %v1927_v47, %v1838_v13  ;;  %v1524_v61 = vpop.f32.mrf.mxu1  ;;  %v2018_v48 = vpop.f32.mrf.mxu0 }
 0x2a2   : > { %v1525_v32 = vadd.f32 %v1524_v61, %v3860_v58 }
 0x2a3   : > { %v2017_v18 = vadd.f32 %v2016_v51, %v1928_v53 }
 0x2a5   : > { %v2063_v31 = vadd.f32 %v2017_v18, %v1523_v36 }
 0x2a7   : > { %v2158_v63 = vadd.f32 %v2157_v9, %v2063_v31  ;;  %v2197_v38 = vmul.f32 %v2063_v31, %v2063_v31 }
 0x2a8   : > { %v1840_v33 = vpop.f32.mrf.mxu2  ;;  %v1929_v35 = vpop.f32.mrf.mxu3 }
 0x2a9   : > { %v2228_v30 = vadd.f32 %v2227_v26, %v2197_v38  ;;  %v1930_v7 = vadd.f32 %v1929_v35, %v1840_v33  ;;  %v1527_v8 = vpop.f32.mrf.mxu1  ;;  %v2021_v40 = vpop.f32.mrf.mxu0 }
 0x2aa   : > { %v1528_v22 = vadd.f32 %v1527_v8, %v3863_v24 }
 0x2ab   : > { %v2019_v59 = vadd.f32 %v2018_v48, %v1930_v7 }
 0x2ad   : > { %v2064_v25 = vadd.f32 %v2019_v59, %v1525_v32 }
 0x2af   : > { %v3029_v44 = vpack.c.bf16 %v2064_v25, %v2063_v31  ;;  %v2159_v11 = vadd.f32 %v2158_v63, %v2064_v25  ;;  %v2198_v49 = vmul.f32 %v2064_v25, %v2064_v25 }
 0x2b0   : > { %v1843_v56 = vpop.f32.mrf.mxu2  ;;  %v1932_v0 = vpop.f32.mrf.mxu3 }
 0x2b1   : > { %3061 = vst [vmem:[%s3912_s22 + $0x58] sm:$0xff] %v3029_v44   ;;  %v2229_v3 = vadd.f32 %v2228_v30, %v2198_v49  ;;  %v1933_v34 = vadd.f32 %v1932_v0, %v1843_v56  ;;  %v1529_v46 = vpop.f32.mrf.mxu1  ;;  %v2023_v39 = vpop.f32.mrf.mxu0 }
 0x2b2   : > { %v1530_v5 = vadd.f32 %v1529_v46, %v3870_v62 }
 0x2b3   : > { %v2022_v19 = vadd.f32 %v2021_v40, %v1933_v34 }
 0x2b5   : > { %v2065_v54 = vadd.f32 %v2022_v19, %v1528_v22 }
 0x2b7   : > { %v2160_v42 = vadd.f32 %v2159_v11, %v2065_v54  ;;  %v2199_v27 = vmul.f32 %v2065_v54, %v2065_v54 }
 0x2b8   : > { %v1845_v58 = vpop.f32.mrf.mxu2  ;;  %v1934_v60 = vpop.f32.mrf.mxu3 }
 0x2b9   : > { %v2230_v57 = vadd.f32 %v2229_v3, %v2199_v27  ;;  %v1935_v43 = vadd.f32 %v1934_v60, %v1845_v58  ;;  %v1532_v55 = vpop.f32.mrf.mxu1  ;;  %v2026_v41 = vpop.f32.mrf.mxu0 }
 0x2ba   : > { %v1533_v4 = vadd.f32 %v1532_v55, %v3873_v37 }
 0x2bb   : > { %v2024_v52 = vadd.f32 %v2023_v39, %v1935_v43 }
 0x2bd   : > { %v2066_v16 = vadd.f32 %v2024_v52, %v1530_v5 }
 0x2bf   : > { %v3034_v50 = vpack.c.bf16 %v2066_v16, %v2065_v54  ;;  %v2161_v45 = vadd.f32 %v2160_v42, %v2066_v16  ;;  %v2200_v6 = vmul.f32 %v2066_v16, %v2066_v16 }
 0x2c0   : > { %v1848_v29 = vpop.f32.mrf.mxu2  ;;  %v1937_v24 = vpop.f32.mrf.mxu3 }
 0x2c1   : > { %3062 = vst [vmem:[%s3912_s22 + $0x60] sm:$0xff] %v3034_v50   ;;  %v2231_v10 = vadd.f32 %v2230_v57, %v2200_v6  ;;  %v1938_v17 = vadd.f32 %v1937_v24, %v1848_v29  ;;  %v1534_v51 = vpop.f32.mrf.mxu1  ;;  %v2028_v1 = vpop.f32.mrf.mxu0 }
 0x2c2   : > { %v1535_v61 = vadd.f32 %v1534_v51, %v3880_v20 }
 0x2c3   : > { %v2027_v12 = vadd.f32 %v2026_v41, %v1938_v17 }
 0x2c5   : > { %v2067_v15 = vadd.f32 %v2027_v12, %v1533_v4 }
 0x2c7   : > { %v2162_v9 = vadd.f32 %v2161_v45, %v2067_v15  ;;  %v2201_v28 = vmul.f32 %v2067_v15, %v2067_v15 }
 0x2c8   : > { %v1850_v62 = vpop.f32.mrf.mxu2  ;;  %v1939_v13 = vpop.f32.mrf.mxu3 }
 0x2c9   : > { %v2232_v47 = vadd.f32 %v2231_v10, %v2201_v28  ;;  %v1940_v26 = vadd.f32 %v1939_v13, %v1850_v62  ;;  %v1537_v53 = vpop.f32.mrf.mxu1  ;;  %v2031_v36 = vpop.f32.mrf.mxu0 }
 0x2ca   : > { %v1538_v7 = vadd.f32 %v1537_v53, %v3883_v14 }
 0x2cb   : > { %v2029_v48 = vadd.f32 %v2028_v1, %v1940_v26 }
 0x2cd   : > { %v2068_v18 = vadd.f32 %v2029_v48, %v1535_v61 }
 0x2cf   : > { %v3039_v31 = vpack.c.bf16 %v2068_v18, %v2067_v15  ;;  %v2163_v63 = vadd.f32 %v2162_v9, %v2068_v18  ;;  %v2202_v38 = vmul.f32 %v2068_v18, %v2068_v18 }
 0x2d0   : > { %v1853_v33 = vpop.f32.mrf.mxu2  ;;  %v1942_v37 = vpop.f32.mrf.mxu3 }
 0x2d1   : > { %3063 = vst [vmem:[%s3912_s22 + $0x68] sm:$0xff] %v3039_v31   ;;  %v2233_v35 = vadd.f32 %v2232_v47, %v2202_v38  ;;  %v1943_v30 = vadd.f32 %v1942_v37, %v1853_v33  ;;  %v1539_v40 = vpop.f32.mrf.mxu1  ;;  %v2033_v59 = vpop.f32.mrf.mxu0 }
 0x2d2   : > { %v1540_v0 = vadd.f32 %v1539_v40, %v3890_v21 }
 0x2d3   : > { %v2032_v8 = vadd.f32 %v2031_v36, %v1943_v30 }
 0x2d5   : > { %v2069_v32 = vadd.f32 %v2032_v8, %v1538_v7 }
 0x2d7   : > { %v2164_v25 = vadd.f32 %v2163_v63, %v2069_v32  ;;  %v2203_v20 = vmul.f32 %v2069_v32, %v2069_v32 }
 0x2d8   : > { %v1855_v44 = vpop.f32.mrf.mxu2  ;;  %v1944_v11 = vpop.f32.mrf.mxu3 }
 0x2d9   : > { %v2234_v49 = vadd.f32 %v2233_v35, %v2203_v20  ;;  %v1945_v56 = vadd.f32 %v1944_v11, %v1855_v44  ;;  %v1542_v46 = vpop.f32.mrf.mxu1  ;;  %v2036_v14 = vpop.f32.mrf.mxu0 }
 0x2da   : > { %v1543_v60 = vadd.f32 %v1542_v46, %v3893_v2 }
 0x2db   : > { %v2034_v3 = vadd.f32 %v2033_v59, %v1945_v56 }
 0x2dd   : > { %v2070_v34 = vadd.f32 %v2034_v3, %v1540_v0 }
 0x2df   : > { %v3044_v39 = vpack.c.bf16 %v2070_v34, %v2069_v32  ;;  %v2165_v22 = vadd.f32 %v2164_v25, %v2070_v34  ;;  %v2204_v19 = vmul.f32 %v2070_v34, %v2070_v34 }
 0x2e0   : > { %v1858_v54 = vpop.f32.mrf.mxu2  ;;  %v1947_v42 = vpop.f32.mrf.mxu3 }
 0x2e1   : > { %3064 = vst [vmem:[%s3912_s22 + $0x70] sm:$0xff] %v3044_v39   ;;  %v2235_v27 = vadd.f32 %v2234_v49, %v2204_v19  ;;  %v1948_v58 = vadd.f32 %v1947_v42, %v1858_v54  ;;  %v1544_v21 = vpop.f32.mrf.mxu1  ;;  %v2038_v45 = vpop.f32.mrf.mxu0 }
 0x2e2   : > { %v1545_v6 = vadd.f32 %v1544_v21, %v3900_v23 }
 0x2e3   : > { %v2037_v57 = vadd.f32 %v2036_v14, %v1948_v58 }
 0x2e5   : > { %v2071_v43 = vadd.f32 %v2037_v57, %v1543_v60 }
 0x2e7   : > { %v2166_v55 = vadd.f32 %v2165_v22, %v2071_v43  ;;  %v2205_v41 = vmul.f32 %v2071_v43, %v2071_v43 }
 0x2e8   : > { %v1860_v5 = vpop.f32.mrf.mxu2  ;;  %v1949_v52 = vpop.f32.mrf.mxu3 }
 0x2e9   : > { %v2236_v16 = vadd.f32 %v2235_v27, %v2205_v41  ;;  %v1950_v50 = vadd.f32 %v1949_v52, %v1860_v5 }
 0x2eb   : > { %v2039_v29 = vadd.f32 %v2038_v45, %v1950_v50 }
 0x2ed   : > { %v2072_v24 = vadd.f32 %v2039_v29, %v1545_v6 }
 0x2ef   : > { %v3049_v10 = vpack.c.bf16 %v2072_v24, %v2071_v43  ;;  %v2167_v17 = vadd.f32 %v2166_v55, %v2072_v24  ;;  %v2206_v2 = vmul.f32 %v2072_v24, %v2072_v24 }
 0x2f1   : > { %3065 = vst [vmem:[%s3912_s22 + $0x78] sm:$0xff] %v3049_v10   ;;  %v2168_v51 = vrot.slane %v2167_v17, 4  ;;  %v2237_v1 = vadd.f32 %v2236_v16, %v2206_v2 }
 0x2f3   : > { %v2169_v4 = vadd.f32 %v2168_v51, %v2167_v17  ;;  %v2238_v12 = vrot.slane %v2237_v1, 4 }
 0x2f5   : > { %v2170_v15 = vrot.slane %v2169_v4, 2  ;;  %v2239_v9 = vadd.f32 %v2238_v12, %v2237_v1 }
 0x2f7   : > { %v2171_v28 = vadd.f32 %v2170_v15, %v2169_v4  ;;  %v2240_v62 = vrot.slane %v2239_v9, 2 }
 0x2f9   : > { %v2172_v13 = vrot.slane %v2171_v28, 1  ;;  %v2241_v47 = vadd.f32 %v2240_v62, %v2239_v9 }
 0x2fb   : > { %v2173_v23 = vadd.f32 %v2172_v13, %v2171_v28  ;;  %v2242_v26 = vrot.slane %v2241_v47, 1 }
 0x2fd   : > { %2174 = vst [vmem:[%s249_s24] sm:$0x1] %v2173_v23  ;;  %v2243_v53 = vadd.f32 %v2242_v26, %v2241_v47 }
 0x2ff   : > { %2244 = vst [vmem:[%s255_s27] sm:$0x1] %v2243_v53 }
 0x300 PF: > { %s15_s17 = sadd.s32 1, %s3149_s17   ;;  %s4067_s15 = smov %s3145_s16 }
 0x301   : > { %p12_p5 = scmp.ge.s32.totalorder %s15_s17, 4   ;;  %s4068_s16 = smov %s4070_s18 }
 0x303   :  { %14 = sbr.rel (!%p12_p5) target bundleno = 2 (0x2), region = 85 }

</bundles_post_ra>
